<compile_context>
chip_gen: v5e
topology: v5e:2x2
jax: 0.10.0
libtpu: 0.0.40
codegen_flags: <defaults>
</compile_context>

<pallas_src>
import math

import jax
import jax.numpy as jnp
from jax import lax
from jax.experimental import pallas as pl
from jax.experimental.pallas import tpu as pltpu

# ---------------- small synthetic BERT config ----------------
VOCAB = 512
MAX_POS = 64
TYPE_VOCAB = 2
HIDDEN = 128
N_HEADS = 2
HEAD_DIM = HIDDEN // N_HEADS
INTERMEDIATE = 256
N_LAYERS = 2
N_CLASSES = 3
N_CLASSES_PAD = 128          # lane-dense classifier output; sliced to N_CLASSES in the wrapper
LN_EPS = 1e-12

# Batch elements per grid step.  BATCH_BLOCK=2 flattens the dense matmuls to (2S, H)
# rows (feeds the MXU better and halves the ~0.35us per-step overhead on single-TC
# v5e/v6e).  On v7x with a tiny batch, set BATCH_BLOCK=1 so grid=(B,) gives both
# TensorCores work; at realistic batch sizes B//2 >= 2 and both goals are met.
BATCH_BLOCK = 2


# ---------------- fully fused kernel: embeddings + encoder + pooler + classifier ----------------
def _sentiment_kernel(ids_ref,                              # SMEM (B, S) int32 (scalar prefetch)
                      mask_ref,                             # (BB, S) f32 attention mask
                      word_ref, pos_ref, type_ref,          # f32 embedding tables (VMEM resident)
                      emb_g_ref, emb_b_ref,
                      wqkv_ref, bqkv_ref, wo_ref, bo_ref, ln1_g_ref, ln1_b_ref,
                      wi_ref, bi_ref, wo2_ref, bo2_ref, ln2_g_ref, ln2_b_ref,
                      wp_ref, bp_ref, wc_ref, bc_ref,
                      logits_ref):
    BB, S = mask_ref.shape
    vocab = word_ref.shape[0]

    def layernorm(x, g, b):
        mean = jnp.mean(x, axis=-1, keepdims=True)
        var = jnp.mean(jnp.square(x - mean), axis=-1, keepdims=True)
        return (x - mean) * lax.rsqrt(var + LN_EPS) * g + b

    c_gelu = jnp.float32(math.sqrt(2.0 / math.pi))

    def gelu(x):
        # TODO(synk): HF BERT default 'gelu' is the exact erf form; tanh approximation used here.
        return 0.5 * x * (1.0 + jnp.tanh(c_gelu * (x + 0.044715 * x * x * x)))

    scale = jnp.float32(1.0 / math.sqrt(HEAD_DIM))

    # ---- embeddings: one-hot MXU gather of word ids prefetched into SMEM ----
    b0 = pl.program_id(0) * BB
    iota_v = lax.broadcasted_iota(jnp.int32, (1, vocab), 1)            # hoisted
    pe = pos_ref[0:S, :]                                               # (S, H) static slice
    te = type_ref[0:1, :]                                              # token_type_ids == 0
    word = word_ref[...]                                               # (V, H) f32

    x_blocks = []
    for bb in range(BB):
        oh_rows = [(iota_v == ids_ref[b0 + bb, s]).astype(jnp.float32) for s in range(S)]
        onehot = jnp.concatenate(oh_rows, axis=0)                      # (S, V)
        we = jnp.dot(onehot, word, preferred_element_type=jnp.float32) # (S, H) exact gather
        x_blocks.append(we + pe + te)
    x = jnp.concatenate(x_blocks, axis=0)                              # (BB*S, H)

    # embedding LayerNorm (embedding dropout: eval -> identity)
    h = layernorm(x, emb_g_ref[...], emb_b_ref[...])

    # additive mask; broadcast hoisted out of the layer/head loops
    neg = (1.0 - mask_ref[...]) * jnp.float32(-10000.0)                # (BB, S)
    mask_bcast = [jnp.broadcast_to(neg[bb:bb + 1, :], (S, S)) for bb in range(BB)]

    for l in range(N_LAYERS):                                          # static unroll (N_LAYERS = 2)
        # ---- fused QKV projection over all BB*S rows: (BB*S, H) @ (H, 3H) ----
        qkv = jnp.dot(h.astype(jnp.bfloat16), wqkv_ref[l],
                      preferred_element_type=jnp.float32) + bqkv_ref[l]

        # ---- attention: per-batch static sublane slices, per-head lane slices ----
        attn_blocks = []
        for bb in range(BB):
            r0 = bb * S
            attn_b = jnp.zeros((S, HIDDEN), jnp.float32)
            for hh in range(N_HEADS):
                lo = hh * HEAD_DIM
                qh = qkv[r0:r0 + S, lo:lo + HEAD_DIM].astype(jnp.bfloat16)
                kh = qkv[r0:r0 + S, HIDDEN + lo:HIDDEN + lo + HEAD_DIM].astype(jnp.bfloat16)
                vh = qkv[r0:r0 + S, 2 * HIDDEN + lo:2 * HIDDEN + lo + HEAD_DIM].astype(jnp.bfloat16)
                # q @ k^T without materializing the transpose (bf16 in, f32 accumulate)
                s = lax.dot_general(qh, kh, (((1,), (1,)), ((), ())),
                                    preferred_element_type=jnp.float32)
                s = s * scale + mask_bcast[bb]
                s = s - jnp.max(s, axis=-1, keepdims=True)
                p = jnp.exp(s)
                p = p / jnp.sum(p, axis=-1, keepdims=True)              # exact reciprocal
                ctx_h = jnp.dot(p.astype(jnp.bfloat16), vh,
                                preferred_element_type=jnp.float32)     # (S, HEAD_DIM)
                # per-head partial output projection: avoids the head-concat relayout
                attn_b = attn_b + jnp.dot(ctx_h.astype(jnp.bfloat16),
                                          wo_ref[l, lo:lo + HEAD_DIM, :],
                                          preferred_element_type=jnp.float32)
            attn_blocks.append(attn_b)
        attn = jnp.concatenate(attn_blocks, axis=0) + bo_ref[l]         # (BB*S, H)
        h = layernorm(attn + h, ln1_g_ref[l], ln1_b_ref[l])

        # ---- FFN: intermediate never leaves VMEM ----
        ffn = jnp.dot(h.astype(jnp.bfloat16), wi_ref[l],
                      preferred_element_type=jnp.float32) + bi_ref[l]
        ffn = gelu(ffn)
        ffn = jnp.dot(ffn.astype(jnp.bfloat16), wo2_ref[l],
                      preferred_element_type=jnp.float32) + bo2_ref[l]
        h = layernorm(ffn + h, ln2_g_ref[l], ln2_b_ref[l])

    # ---- fused pooler(tanh) + dropout(eval) + classifier on the CLS rows ----
    cls = jnp.concatenate([h[bb * S:bb * S + 1, :] for bb in range(BB)], axis=0)   # (BB, H)
    pooled = jnp.tanh(jnp.dot(cls.astype(jnp.bfloat16), wp_ref[...],
                              preferred_element_type=jnp.float32) + bp_ref[...])
    # self.drop = nn.Dropout(p=0.3): identity in eval mode
    # TODO(synk): training-mode dropout (p=0.3) not implemented; forward assumes eval().
    logits = jnp.dot(pooled.astype(jnp.bfloat16), wc_ref[...],
                     preferred_element_type=jnp.float32) + bc_ref[...]
    logits_ref[...] = logits.astype(logits_ref.dtype)


def fused_sentiment_forward(input_ids, attention_mask_f32, p):
    """input_ids: (B, S) int32; attention_mask_f32: (B, S) f32; p: packed params."""
    B, S = input_ids.shape
    BB = BATCH_BLOCK
    assert B % BB == 0, "pad the batch to a multiple of BATCH_BLOCK"
    L = N_LAYERS

    full2 = lambda i, ids: (0, 0)
    full3 = lambda i, ids: (0, 0, 0)
    per_b = lambda i, ids: (i, 0)

    grid_spec = pltpu.PrefetchScalarGridSpec(
        num_scalar_prefetch=1,                               # input_ids -> SMEM
        grid=(B // BB,),
        in_specs=[
            pl.BlockSpec((BB, S), per_b),                    # attention mask (f32)
            pl.BlockSpec((VOCAB, HIDDEN), full2),            # word emb table (f32)
            pl.BlockSpec((MAX_POS, HIDDEN), full2),          # pos emb table
            pl.BlockSpec((TYPE_VOCAB, HIDDEN), full2),       # type emb table
            pl.BlockSpec((1, HIDDEN), full2),                # emb_ln_g
            pl.BlockSpec((1, HIDDEN), full2),                # emb_ln_b
            pl.BlockSpec((L, HIDDEN, 3 * HIDDEN), full3),    # wqkv (bf16)
            pl.BlockSpec((L, 1, 3 * HIDDEN), full3),         # bqkv
            pl.BlockSpec((L, HIDDEN, HIDDEN), full3),        # wo   (bf16)
            pl.BlockSpec((L, 1, HIDDEN), full3),             # bo
            pl.BlockSpec((L, 1, HIDDEN), full3),             # ln1_g
            pl.BlockSpec((L, 1, HIDDEN), full3),             # ln1_b
            pl.BlockSpec((L, HIDDEN, INTERMEDIATE), full3),  # wi   (bf16)
            pl.BlockSpec((L, 1, INTERMEDIATE), full3),       # bi
            pl.BlockSpec((L, INTERMEDIATE, HIDDEN), full3),  # wo2  (bf16)
            pl.BlockSpec((L, 1, HIDDEN), full3),             # bo2
            pl.BlockSpec((L, 1, HIDDEN), full3),             # ln2_g
            pl.BlockSpec((L, 1, HIDDEN), full3),             # ln2_b
            pl.BlockSpec((HIDDEN, HIDDEN), full2),           # w_pool (bf16)
            pl.BlockSpec((1, HIDDEN), full2),                # b_pool
            pl.BlockSpec((HIDDEN, N_CLASSES_PAD), full2),    # w_cls (bf16, lane padded)
            pl.BlockSpec((1, N_CLASSES_PAD), full2),         # b_cls (lane padded)
        ],
        out_specs=pl.BlockSpec((BB, N_CLASSES_PAD), per_b),  # logits only output (lane-dense)
    )
    # NOTE: VMEM footprint ~1.5 MB including default double-buffering of the constant-index
    # weight blocks; fine on every generation.  If HIDDEN/S/N_LAYERS scale toward BERT-base,
    # mark the stacked-weight specs pipeline_mode=pl.Buffered(1) and re-derive the budget
    # against v7x's 64 MiB/TC (not 128 MiB).
    return pl.pallas_call(
        _sentiment_kernel,
        out_shape=jax.ShapeDtypeStruct((B, N_CLASSES_PAD), jnp.float32),
        grid_spec=grid_spec,
        compiler_params=pltpu.CompilerParams(
            dimension_semantics=("parallel",)),
    )(input_ids, attention_mask_f32,
      p["word_emb"], p["pos_emb"], p["type_emb"], p["emb_ln_g"], p["emb_ln_b"],
      p["wqkv"], p["bqkv"], p["wo"], p["bo"], p["ln1_g"], p["ln1_b"],
      p["wi"], p["bi"], p["wo2"], p["bo2"], p["ln2_g"], p["ln2_b"],
      p["w_pool"], p["b_pool"], p["w_cls_pad"], p["b_cls_pad"])


# ---------------- parameter init (deterministic, synthetic) ----------------
def init_params(key):
    def normal(k, shape):
        return 0.02 * jax.random.normal(k, shape, dtype=jnp.float32)

    keys = iter(jax.random.split(key, 8 + N_LAYERS * 8))
    params = {
        "word_emb": normal(next(keys), (VOCAB, HIDDEN)),
        "pos_emb": normal(next(keys), (MAX_POS, HIDDEN)),
        "type_emb": normal(next(keys), (TYPE_VOCAB, HIDDEN)),
        "emb_ln_g": jnp.ones((HIDDEN,), jnp.float32),
        "emb_ln_b": jnp.zeros((HIDDEN,), jnp.float32),
        "w_pool": normal(next(keys), (HIDDEN, HIDDEN)),
        "b_pool": jnp.zeros((HIDDEN,), jnp.float32),
        "w_cls": normal(next(keys), (HIDDEN, N_CLASSES)),
        "b_cls": jnp.zeros((N_CLASSES,), jnp.float32),
        "layers": [],
    }
    for _ in range(N_LAYERS):
        layer = {
            "wq": normal(next(keys), (HIDDEN, HIDDEN)), "bq": jnp.zeros((HIDDEN,), jnp.float32),
            "wk": normal(next(keys), (HIDDEN, HIDDEN)), "bk": jnp.zeros((HIDDEN,), jnp.float32),
            "wv": normal(next(keys), (HIDDEN, HIDDEN)), "bv": jnp.zeros((HIDDEN,), jnp.float32),
            "wo": normal(next(keys), (HIDDEN, HIDDEN)), "bo": jnp.zeros((HIDDEN,), jnp.float32),
            "wi": normal(next(keys), (HIDDEN, INTERMEDIATE)), "bi": jnp.zeros((INTERMEDIATE,), jnp.float32),
            "wo2": normal(next(keys), (INTERMEDIATE, HIDDEN)), "bo2": jnp.zeros((HIDDEN,), jnp.float32),
            "ln1_g": jnp.ones((HIDDEN,), jnp.float32), "ln1_b": jnp.zeros((HIDDEN,), jnp.float32),
            "ln2_g": jnp.ones((HIDDEN,), jnp.float32), "ln2_b": jnp.zeros((HIDDEN,), jnp.float32),
        }
        params["layers"].append(layer)
    return params


def pack_params(params):
    """Stack per-layer weights along a leading layer axis; fuse wq|wk|wv; pad classifier lanes."""
    layers = params["layers"]

    def stack(name):
        return jnp.stack([ly[name] for ly in layers])

    return {
        "word_emb": params["word_emb"],                                  # f32 (exact one-hot gather)
        "pos_emb": params["pos_emb"],
        "type_emb": params["type_emb"],
        "emb_ln_g": params["emb_ln_g"].reshape(1, HIDDEN),
        "emb_ln_b": params["emb_ln_b"].reshape(1, HIDDEN),
        "wqkv": jnp.stack([jnp.concatenate([ly["wq"], ly["wk"], ly["wv"]], axis=1)
                           for ly in layers]).astype(jnp.bfloat16),      # (L, H, 3H)
        "bqkv": jnp.stack([jnp.concatenate([ly["bq"], ly["bk"], ly["bv"]])[None, :]
                           for ly in layers]),                           # (L, 1, 3H)
        "wo": stack("wo").astype(jnp.bfloat16),
        "bo": stack("bo")[:, None, :],
        "ln1_g": stack("ln1_g")[:, None, :],
        "ln1_b": stack("ln1_b")[:, None, :],
        "wi": stack("wi").astype(jnp.bfloat16),
        "bi": stack("bi")[:, None, :],
        "wo2": stack("wo2").astype(jnp.bfloat16),
        "bo2": stack("bo2")[:, None, :],
        "ln2_g": stack("ln2_g")[:, None, :],
        "ln2_b": stack("ln2_b")[:, None, :],
        "w_pool": params["w_pool"].astype(jnp.bfloat16),
        "b_pool": params["b_pool"].reshape(1, HIDDEN),
        "w_cls_pad": jnp.zeros((HIDDEN, N_CLASSES_PAD), jnp.float32)
                        .at[:, :N_CLASSES].set(params["w_cls"]).astype(jnp.bfloat16),
        "b_cls_pad": jnp.zeros((1, N_CLASSES_PAD), jnp.float32)
                        .at[0, :N_CLASSES].set(params["b_cls"]),
    }


# ---------------- forward pass (SentimentClassifier.forward, eval mode) ----------------
def sentiment_classifier_forward(params, input_ids, attention_mask):
    packed = pack_params(params)
    logits_pad = fused_sentiment_forward(input_ids.astype(jnp.int32),
                                         attention_mask.astype(jnp.float32),
                                         packed)
    return logits_pad[:, :N_CLASSES]


if __name__ == "__main__":
    key = jax.random.PRNGKey(0)
    kp, kids = jax.random.split(key)
    params = init_params(kp)

    B, S = 2, 16
    input_ids = jax.random.randint(kids, (B, S), 0, VOCAB, dtype=jnp.int32)
    attention_mask = jnp.ones((B, S), dtype=jnp.int32).at[1, 12:].set(0)

    logits = sentiment_classifier_forward(params, input_ids, attention_mask)
    logits = jax.block_until_ready(logits)
    assert logits.shape == (B, N_CLASSES) and logits.dtype == jnp.float32
    assert bool(jnp.all(jnp.isfinite(logits)))
    print("KERNEL_OK")
</pallas_src>

<mosaic_0001>
module attributes {stable_mosaic.version = 11 : i64} {
  func.func @_sentiment_kernel(%arg0: i32, %arg1: memref<2x16xi32, #tpu.memory_space<smem>>, %arg2: memref<2x16xf32, #tpu.memory_space<vmem>>, %arg3: memref<512x128xf32, #tpu.memory_space<vmem>>, %arg4: memref<64x128xf32, #tpu.memory_space<vmem>>, %arg5: memref<2x128xf32, #tpu.memory_space<vmem>>, %arg6: memref<1x128xf32, #tpu.memory_space<vmem>>, %arg7: memref<1x128xf32, #tpu.memory_space<vmem>>, %arg8: memref<2x128x384xbf16, #tpu.memory_space<vmem>>, %arg9: memref<2x1x384xf32, #tpu.memory_space<vmem>>, %arg10: memref<2x128x128xbf16, #tpu.memory_space<vmem>>, %arg11: memref<2x1x128xf32, #tpu.memory_space<vmem>>, %arg12: memref<2x1x128xf32, #tpu.memory_space<vmem>>, %arg13: memref<2x1x128xf32, #tpu.memory_space<vmem>>, %arg14: memref<2x128x256xbf16, #tpu.memory_space<vmem>>, %arg15: memref<2x1x256xf32, #tpu.memory_space<vmem>>, %arg16: memref<2x256x128xbf16, #tpu.memory_space<vmem>>, %arg17: memref<2x1x128xf32, #tpu.memory_space<vmem>>, %arg18: memref<2x1x128xf32, #tpu.memory_space<vmem>>, %arg19: memref<2x1x128xf32, #tpu.memory_space<vmem>>, %arg20: memref<128x128xbf16, #tpu.memory_space<vmem>>, %arg21: memref<1x128xf32, #tpu.memory_space<vmem>>, %arg22: memref<128x128xbf16, #tpu.memory_space<vmem>>, %arg23: memref<1x128xf32, #tpu.memory_space<vmem>>, %arg24: memref<2x128xf32, #tpu.memory_space<vmem>>) attributes {dimension_semantics = [#tpu.dimension_semantics<parallel>], iteration_bounds = array<i64: 1>, scalar_prefetch = 1 : i64, scratch_operands = 0 : i64, tpu.core_type = #tpu.core_type<tc>, window_params = [{transform_indices = @transform_0, window_bounds = array<i64: 2, 16>}, {pipeline_mode = #tpu.pipeline_mode<synchronous>, transform_indices = @transform_1, window_bounds = array<i64: 512, 128>}, {pipeline_mode = #tpu.pipeline_mode<synchronous>, transform_indices = @transform_2, window_bounds = array<i64: 64, 128>}, {pipeline_mode = #tpu.pipeline_mode<synchronous>, transform_indices = @transform_3, window_bounds = array<i64: 2, 128>}, {pipeline_mode = #tpu.pipeline_mode<synchronous>, transform_indices = @transform_4, window_bounds = array<i64: 1, 128>}, {pipeline_mode = #tpu.pipeline_mode<synchronous>, transform_indices = @transform_5, window_bounds = array<i64: 1, 128>}, {pipeline_mode = #tpu.pipeline_mode<synchronous>, transform_indices = @transform_6, window_bounds = array<i64: 2, 128, 384>}, {pipeline_mode = #tpu.pipeline_mode<synchronous>, transform_indices = @transform_7, window_bounds = array<i64: 2, 1, 384>}, {pipeline_mode = #tpu.pipeline_mode<synchronous>, transform_indices = @transform_8, window_bounds = array<i64: 2, 128, 128>}, {pipeline_mode = #tpu.pipeline_mode<synchronous>, transform_indices = @transform_9, window_bounds = array<i64: 2, 1, 128>}, {pipeline_mode = #tpu.pipeline_mode<synchronous>, transform_indices = @transform_10, window_bounds = array<i64: 2, 1, 128>}, {pipeline_mode = #tpu.pipeline_mode<synchronous>, transform_indices = @transform_11, window_bounds = array<i64: 2, 1, 128>}, {pipeline_mode = #tpu.pipeline_mode<synchronous>, transform_indices = @transform_12, window_bounds = array<i64: 2, 128, 256>}, {pipeline_mode = #tpu.pipeline_mode<synchronous>, transform_indices = @transform_13, window_bounds = array<i64: 2, 1, 256>}, {pipeline_mode = #tpu.pipeline_mode<synchronous>, transform_indices = @transform_14, window_bounds = array<i64: 2, 256, 128>}, {pipeline_mode = #tpu.pipeline_mode<synchronous>, transform_indices = @transform_15, window_bounds = array<i64: 2, 1, 128>}, {pipeline_mode = #tpu.pipeline_mode<synchronous>, transform_indices = @transform_16, window_bounds = array<i64: 2, 1, 128>}, {pipeline_mode = #tpu.pipeline_mode<synchronous>, transform_indices = @transform_17, window_bounds = array<i64: 2, 1, 128>}, {pipeline_mode = #tpu.pipeline_mode<synchronous>, transform_indices = @transform_18, window_bounds = array<i64: 128, 128>}, {pipeline_mode = #tpu.pipeline_mode<synchronous>, transform_indices = @transform_19, window_bounds = array<i64: 1, 128>}, {pipeline_mode = #tpu.pipeline_mode<synchronous>, transform_indices = @transform_20, window_bounds = array<i64: 128, 128>}, {pipeline_mode = #tpu.pipeline_mode<synchronous>, transform_indices = @transform_21, window_bounds = array<i64: 1, 128>}, {transform_indices = @transform_22, window_bounds = array<i64: 2, 128>}]} {
    %c2_i32 = arith.constant 2 : i32
    %0 = arith.muli %arg0, %c2_i32 : i32
    %1 = tpu.iota {dimensions = array<i32: 1>} : vector<1x512xi32>
    %c0 = arith.constant 0 : index
    %c0_0 = arith.constant 0 : index
    %2 = vector.load %arg4[%c0, %c0_0] : memref<64x128xf32, #tpu.memory_space<vmem>>, vector<16x128xf32>
    %c0_1 = arith.constant 0 : index
    %c0_2 = arith.constant 0 : index
    %3 = vector.load %arg5[%c0_1, %c0_2] : memref<2x128xf32, #tpu.memory_space<vmem>>, vector<1x128xf32>
    %c0_3 = arith.constant 0 : index
    %c0_4 = arith.constant 0 : index
    %4 = vector.load %arg3[%c0_3, %c0_4] : memref<512x128xf32, #tpu.memory_space<vmem>>, vector<512x128xf32>
    %c0_i32 = arith.constant 0 : i32
    %5 = arith.addi %0, %c0_i32 : i32
    %6 = arith.index_cast %5 : i32 to index
    %c0_5 = arith.constant 0 : index
    %7 = memref.load %arg1[%6, %c0_5] : memref<2x16xi32, #tpu.memory_space<smem>>
    %8 = vector.broadcast %7 : i32 to vector<1x512xi32>
    %9 = arith.cmpi eq, %1, %8 : vector<1x512xi32>
    %10 = arith.extui %9 : vector<1x512xi1> to vector<1x512xi32>
    %11 = arith.sitofp %10 : vector<1x512xi32> to vector<1x512xf32>
    %c0_i32_6 = arith.constant 0 : i32
    %12 = arith.addi %0, %c0_i32_6 : i32
    %13 = arith.index_cast %12 : i32 to index
    %c1 = arith.constant 1 : index
    %14 = memref.load %arg1[%13, %c1] : memref<2x16xi32, #tpu.memory_space<smem>>
    %15 = vector.broadcast %14 : i32 to vector<1x512xi32>
    %16 = arith.cmpi eq, %1, %15 : vector<1x512xi32>
    %17 = arith.extui %16 : vector<1x512xi1> to vector<1x512xi32>
    %18 = arith.sitofp %17 : vector<1x512xi32> to vector<1x512xf32>
    %c0_i32_7 = arith.constant 0 : i32
    %19 = arith.addi %0, %c0_i32_7 : i32
    %20 = arith.index_cast %19 : i32 to index
    %c2 = arith.constant 2 : index
    %21 = memref.load %arg1[%20, %c2] : memref<2x16xi32, #tpu.memory_space<smem>>
    %22 = vector.broadcast %21 : i32 to vector<1x512xi32>
    %23 = arith.cmpi eq, %1, %22 : vector<1x512xi32>
    %24 = arith.extui %23 : vector<1x512xi1> to vector<1x512xi32>
    %25 = arith.sitofp %24 : vector<1x512xi32> to vector<1x512xf32>
    %c0_i32_8 = arith.constant 0 : i32
    %26 = arith.addi %0, %c0_i32_8 : i32
    %27 = arith.index_cast %26 : i32 to index
    %c3 = arith.constant 3 : index
    %28 = memref.load %arg1[%27, %c3] : memref<2x16xi32, #tpu.memory_space<smem>>
    %29 = vector.broadcast %28 : i32 to vector<1x512xi32>
    %30 = arith.cmpi eq, %1, %29 : vector<1x512xi32>
    %31 = arith.extui %30 : vector<1x512xi1> to vector<1x512xi32>
    %32 = arith.sitofp %31 : vector<1x512xi32> to vector<1x512xf32>
    %c0_i32_9 = arith.constant 0 : i32
    %33 = arith.addi %0, %c0_i32_9 : i32
    %34 = arith.index_cast %33 : i32 to index
    %c4 = arith.constant 4 : index
    %35 = memref.load %arg1[%34, %c4] : memref<2x16xi32, #tpu.memory_space<smem>>
    %36 = vector.broadcast %35 : i32 to vector<1x512xi32>
    %37 = arith.cmpi eq, %1, %36 : vector<1x512xi32>
    %38 = arith.extui %37 : vector<1x512xi1> to vector<1x512xi32>
    %39 = arith.sitofp %38 : vector<1x512xi32> to vector<1x512xf32>
    %c0_i32_10 = arith.constant 0 : i32
    %40 = arith.addi %0, %c0_i32_10 : i32
    %41 = arith.index_cast %40 : i32 to index
    %c5 = arith.constant 5 : index
    %42 = memref.load %arg1[%41, %c5] : memref<2x16xi32, #tpu.memory_space<smem>>
    %43 = vector.broadcast %42 : i32 to vector<1x512xi32>
    %44 = arith.cmpi eq, %1, %43 : vector<1x512xi32>
    %45 = arith.extui %44 : vector<1x512xi1> to vector<1x512xi32>
    %46 = arith.sitofp %45 : vector<1x512xi32> to vector<1x512xf32>
    %c0_i32_11 = arith.constant 0 : i32
    %47 = arith.addi %0, %c0_i32_11 : i32
    %48 = arith.index_cast %47 : i32 to index
    %c6 = arith.constant 6 : index
    %49 = memref.load %arg1[%48, %c6] : memref<2x16xi32, #tpu.memory_space<smem>>
    %50 = vector.broadcast %49 : i32 to vector<1x512xi32>
    %51 = arith.cmpi eq, %1, %50 : vector<1x512xi32>
    %52 = arith.extui %51 : vector<1x512xi1> to vector<1x512xi32>
    %53 = arith.sitofp %52 : vector<1x512xi32> to vector<1x512xf32>
    %c0_i32_12 = arith.constant 0 : i32
    %54 = arith.addi %0, %c0_i32_12 : i32
    %55 = arith.index_cast %54 : i32 to index
    %c7 = arith.constant 7 : index
    %56 = memref.load %arg1[%55, %c7] : memref<2x16xi32, #tpu.memory_space<smem>>
    %57 = vector.broadcast %56 : i32 to vector<1x512xi32>
    %58 = arith.cmpi eq, %1, %57 : vector<1x512xi32>
    %59 = arith.extui %58 : vector<1x512xi1> to vector<1x512xi32>
    %60 = arith.sitofp %59 : vector<1x512xi32> to vector<1x512xf32>
    %c0_i32_13 = arith.constant 0 : i32
    %61 = arith.addi %0, %c0_i32_13 : i32
    %62 = arith.index_cast %61 : i32 to index
    %c8 = arith.constant 8 : index
    %63 = memref.load %arg1[%62, %c8] : memref<2x16xi32, #tpu.memory_space<smem>>
    %64 = vector.broadcast %63 : i32 to vector<1x512xi32>
    %65 = arith.cmpi eq, %1, %64 : vector<1x512xi32>
    %66 = arith.extui %65 : vector<1x512xi1> to vector<1x512xi32>
    %67 = arith.sitofp %66 : vector<1x512xi32> to vector<1x512xf32>
    %c0_i32_14 = arith.constant 0 : i32
    %68 = arith.addi %0, %c0_i32_14 : i32
    %69 = arith.index_cast %68 : i32 to index
    %c9 = arith.constant 9 : index
    %70 = memref.load %arg1[%69, %c9] : memref<2x16xi32, #tpu.memory_space<smem>>
    %71 = vector.broadcast %70 : i32 to vector<1x512xi32>
    %72 = arith.cmpi eq, %1, %71 : vector<1x512xi32>
    %73 = arith.extui %72 : vector<1x512xi1> to vector<1x512xi32>
    %74 = arith.sitofp %73 : vector<1x512xi32> to vector<1x512xf32>
    %c0_i32_15 = arith.constant 0 : i32
    %75 = arith.addi %0, %c0_i32_15 : i32
    %76 = arith.index_cast %75 : i32 to index
    %c10 = arith.constant 10 : index
    %77 = memref.load %arg1[%76, %c10] : memref<2x16xi32, #tpu.memory_space<smem>>
    %78 = vector.broadcast %77 : i32 to vector<1x512xi32>
    %79 = arith.cmpi eq, %1, %78 : vector<1x512xi32>
    %80 = arith.extui %79 : vector<1x512xi1> to vector<1x512xi32>
    %81 = arith.sitofp %80 : vector<1x512xi32> to vector<1x512xf32>
    %c0_i32_16 = arith.constant 0 : i32
    %82 = arith.addi %0, %c0_i32_16 : i32
    %83 = arith.index_cast %82 : i32 to index
    %c11 = arith.constant 11 : index
    %84 = memref.load %arg1[%83, %c11] : memref<2x16xi32, #tpu.memory_space<smem>>
    %85 = vector.broadcast %84 : i32 to vector<1x512xi32>
    %86 = arith.cmpi eq, %1, %85 : vector<1x512xi32>
    %87 = arith.extui %86 : vector<1x512xi1> to vector<1x512xi32>
    %88 = arith.sitofp %87 : vector<1x512xi32> to vector<1x512xf32>
    %c0_i32_17 = arith.constant 0 : i32
    %89 = arith.addi %0, %c0_i32_17 : i32
    %90 = arith.index_cast %89 : i32 to index
    %c12 = arith.constant 12 : index
    %91 = memref.load %arg1[%90, %c12] : memref<2x16xi32, #tpu.memory_space<smem>>
    %92 = vector.broadcast %91 : i32 to vector<1x512xi32>
    %93 = arith.cmpi eq, %1, %92 : vector<1x512xi32>
    %94 = arith.extui %93 : vector<1x512xi1> to vector<1x512xi32>
    %95 = arith.sitofp %94 : vector<1x512xi32> to vector<1x512xf32>
    %c0_i32_18 = arith.constant 0 : i32
    %96 = arith.addi %0, %c0_i32_18 : i32
    %97 = arith.index_cast %96 : i32 to index
    %c13 = arith.constant 13 : index
    %98 = memref.load %arg1[%97, %c13] : memref<2x16xi32, #tpu.memory_space<smem>>
    %99 = vector.broadcast %98 : i32 to vector<1x512xi32>
    %100 = arith.cmpi eq, %1, %99 : vector<1x512xi32>
    %101 = arith.extui %100 : vector<1x512xi1> to vector<1x512xi32>
    %102 = arith.sitofp %101 : vector<1x512xi32> to vector<1x512xf32>
    %c0_i32_19 = arith.constant 0 : i32
    %103 = arith.addi %0, %c0_i32_19 : i32
    %104 = arith.index_cast %103 : i32 to index
    %c14 = arith.constant 14 : index
    %105 = memref.load %arg1[%104, %c14] : memref<2x16xi32, #tpu.memory_space<smem>>
    %106 = vector.broadcast %105 : i32 to vector<1x512xi32>
    %107 = arith.cmpi eq, %1, %106 : vector<1x512xi32>
    %108 = arith.extui %107 : vector<1x512xi1> to vector<1x512xi32>
    %109 = arith.sitofp %108 : vector<1x512xi32> to vector<1x512xf32>
    %c0_i32_20 = arith.constant 0 : i32
    %110 = arith.addi %0, %c0_i32_20 : i32
    %111 = arith.index_cast %110 : i32 to index
    %c15 = arith.constant 15 : index
    %112 = memref.load %arg1[%111, %c15] : memref<2x16xi32, #tpu.memory_space<smem>>
    %113 = vector.broadcast %112 : i32 to vector<1x512xi32>
    %114 = arith.cmpi eq, %1, %113 : vector<1x512xi32>
    %115 = arith.extui %114 : vector<1x512xi1> to vector<1x512xi32>
    %116 = arith.sitofp %115 : vector<1x512xi32> to vector<1x512xf32>
    %117 = tpu.concatenate %11, %18, %25, %32, %39, %46, %53, %60, %67, %74, %81, %88, %95, %102, %109, %116 in 0 : vector<1x512xf32>, vector<1x512xf32>, vector<1x512xf32>, vector<1x512xf32>, vector<1x512xf32>, vector<1x512xf32>, vector<1x512xf32>, vector<1x512xf32>, vector<1x512xf32>, vector<1x512xf32>, vector<1x512xf32>, vector<1x512xf32>, vector<1x512xf32>, vector<1x512xf32>, vector<1x512xf32>, vector<1x512xf32> -> vector<16x512xf32>
    %cst = arith.constant dense<0.000000e+00> : vector<16x128xf32>
    %118 = tpu.matmul %117, %4, %cst {dimension_numbers = #tpu.dot_dimension_numbers<[1], [0], [0], [1], [0, 0, 1, 1], [], []>} : vector<16x512xf32>, vector<512x128xf32>, vector<16x128xf32> -> vector<16x128xf32>
    %119 = arith.addf %118, %2 : vector<16x128xf32>
    %120 = vector.broadcast %3 : vector<1x128xf32> to vector<16x128xf32>
    %121 = arith.addf %119, %120 : vector<16x128xf32>
    %c1_i32 = arith.constant 1 : i32
    %122 = arith.addi %0, %c1_i32 : i32
    %123 = arith.index_cast %122 : i32 to index
    %c0_21 = arith.constant 0 : index
    %124 = memref.load %arg1[%123, %c0_21] : memref<2x16xi32, #tpu.memory_space<smem>>
    %125 = vector.broadcast %124 : i32 to vector<1x512xi32>
    %126 = arith.cmpi eq, %1, %125 : vector<1x512xi32>
    %127 = arith.extui %126 : vector<1x512xi1> to vector<1x512xi32>
    %128 = arith.sitofp %127 : vector<1x512xi32> to vector<1x512xf32>
    %c1_i32_22 = arith.constant 1 : i32
    %129 = arith.addi %0, %c1_i32_22 : i32
    %130 = arith.index_cast %129 : i32 to index
    %c1_23 = arith.constant 1 : index
    %131 = memref.load %arg1[%130, %c1_23] : memref<2x16xi32, #tpu.memory_space<smem>>
    %132 = vector.broadcast %131 : i32 to vector<1x512xi32>
    %133 = arith.cmpi eq, %1, %132 : vector<1x512xi32>
    %134 = arith.extui %133 : vector<1x512xi1> to vector<1x512xi32>
    %135 = arith.sitofp %134 : vector<1x512xi32> to vector<1x512xf32>
    %c1_i32_24 = arith.constant 1 : i32
    %136 = arith.addi %0, %c1_i32_24 : i32
    %137 = arith.index_cast %136 : i32 to index
    %c2_25 = arith.constant 2 : index
    %138 = memref.load %arg1[%137, %c2_25] : memref<2x16xi32, #tpu.memory_space<smem>>
    %139 = vector.broadcast %138 : i32 to vector<1x512xi32>
    %140 = arith.cmpi eq, %1, %139 : vector<1x512xi32>
    %141 = arith.extui %140 : vector<1x512xi1> to vector<1x512xi32>
    %142 = arith.sitofp %141 : vector<1x512xi32> to vector<1x512xf32>
    %c1_i32_26 = arith.constant 1 : i32
    %143 = arith.addi %0, %c1_i32_26 : i32
    %144 = arith.index_cast %143 : i32 to index
    %c3_27 = arith.constant 3 : index
    %145 = memref.load %arg1[%144, %c3_27] : memref<2x16xi32, #tpu.memory_space<smem>>
    %146 = vector.broadcast %145 : i32 to vector<1x512xi32>
    %147 = arith.cmpi eq, %1, %146 : vector<1x512xi32>
    %148 = arith.extui %147 : vector<1x512xi1> to vector<1x512xi32>
    %149 = arith.sitofp %148 : vector<1x512xi32> to vector<1x512xf32>
    %c1_i32_28 = arith.constant 1 : i32
    %150 = arith.addi %0, %c1_i32_28 : i32
    %151 = arith.index_cast %150 : i32 to index
    %c4_29 = arith.constant 4 : index
    %152 = memref.load %arg1[%151, %c4_29] : memref<2x16xi32, #tpu.memory_space<smem>>
    %153 = vector.broadcast %152 : i32 to vector<1x512xi32>
    %154 = arith.cmpi eq, %1, %153 : vector<1x512xi32>
    %155 = arith.extui %154 : vector<1x512xi1> to vector<1x512xi32>
    %156 = arith.sitofp %155 : vector<1x512xi32> to vector<1x512xf32>
    %c1_i32_30 = arith.constant 1 : i32
    %157 = arith.addi %0, %c1_i32_30 : i32
    %158 = arith.index_cast %157 : i32 to index
    %c5_31 = arith.constant 5 : index
    %159 = memref.load %arg1[%158, %c5_31] : memref<2x16xi32, #tpu.memory_space<smem>>
    %160 = vector.broadcast %159 : i32 to vector<1x512xi32>
    %161 = arith.cmpi eq, %1, %160 : vector<1x512xi32>
    %162 = arith.extui %161 : vector<1x512xi1> to vector<1x512xi32>
    %163 = arith.sitofp %162 : vector<1x512xi32> to vector<1x512xf32>
    %c1_i32_32 = arith.constant 1 : i32
    %164 = arith.addi %0, %c1_i32_32 : i32
    %165 = arith.index_cast %164 : i32 to index
    %c6_33 = arith.constant 6 : index
    %166 = memref.load %arg1[%165, %c6_33] : memref<2x16xi32, #tpu.memory_space<smem>>
    %167 = vector.broadcast %166 : i32 to vector<1x512xi32>
    %168 = arith.cmpi eq, %1, %167 : vector<1x512xi32>
    %169 = arith.extui %168 : vector<1x512xi1> to vector<1x512xi32>
    %170 = arith.sitofp %169 : vector<1x512xi32> to vector<1x512xf32>
    %c1_i32_34 = arith.constant 1 : i32
    %171 = arith.addi %0, %c1_i32_34 : i32
    %172 = arith.index_cast %171 : i32 to index
    %c7_35 = arith.constant 7 : index
    %173 = memref.load %arg1[%172, %c7_35] : memref<2x16xi32, #tpu.memory_space<smem>>
    %174 = vector.broadcast %173 : i32 to vector<1x512xi32>
    %175 = arith.cmpi eq, %1, %174 : vector<1x512xi32>
    %176 = arith.extui %175 : vector<1x512xi1> to vector<1x512xi32>
    %177 = arith.sitofp %176 : vector<1x512xi32> to vector<1x512xf32>
    %c1_i32_36 = arith.constant 1 : i32
    %178 = arith.addi %0, %c1_i32_36 : i32
    %179 = arith.index_cast %178 : i32 to index
    %c8_37 = arith.constant 8 : index
    %180 = memref.load %arg1[%179, %c8_37] : memref<2x16xi32, #tpu.memory_space<smem>>
    %181 = vector.broadcast %180 : i32 to vector<1x512xi32>
    %182 = arith.cmpi eq, %1, %181 : vector<1x512xi32>
    %183 = arith.extui %182 : vector<1x512xi1> to vector<1x512xi32>
    %184 = arith.sitofp %183 : vector<1x512xi32> to vector<1x512xf32>
    %c1_i32_38 = arith.constant 1 : i32
    %185 = arith.addi %0, %c1_i32_38 : i32
    %186 = arith.index_cast %185 : i32 to index
    %c9_39 = arith.constant 9 : index
    %187 = memref.load %arg1[%186, %c9_39] : memref<2x16xi32, #tpu.memory_space<smem>>
    %188 = vector.broadcast %187 : i32 to vector<1x512xi32>
    %189 = arith.cmpi eq, %1, %188 : vector<1x512xi32>
    %190 = arith.extui %189 : vector<1x512xi1> to vector<1x512xi32>
    %191 = arith.sitofp %190 : vector<1x512xi32> to vector<1x512xf32>
    %c1_i32_40 = arith.constant 1 : i32
    %192 = arith.addi %0, %c1_i32_40 : i32
    %193 = arith.index_cast %192 : i32 to index
    %c10_41 = arith.constant 10 : index
    %194 = memref.load %arg1[%193, %c10_41] : memref<2x16xi32, #tpu.memory_space<smem>>
    %195 = vector.broadcast %194 : i32 to vector<1x512xi32>
    %196 = arith.cmpi eq, %1, %195 : vector<1x512xi32>
    %197 = arith.extui %196 : vector<1x512xi1> to vector<1x512xi32>
    %198 = arith.sitofp %197 : vector<1x512xi32> to vector<1x512xf32>
    %c1_i32_42 = arith.constant 1 : i32
    %199 = arith.addi %0, %c1_i32_42 : i32
    %200 = arith.index_cast %199 : i32 to index
    %c11_43 = arith.constant 11 : index
    %201 = memref.load %arg1[%200, %c11_43] : memref<2x16xi32, #tpu.memory_space<smem>>
    %202 = vector.broadcast %201 : i32 to vector<1x512xi32>
    %203 = arith.cmpi eq, %1, %202 : vector<1x512xi32>
    %204 = arith.extui %203 : vector<1x512xi1> to vector<1x512xi32>
    %205 = arith.sitofp %204 : vector<1x512xi32> to vector<1x512xf32>
    %c1_i32_44 = arith.constant 1 : i32
    %206 = arith.addi %0, %c1_i32_44 : i32
    %207 = arith.index_cast %206 : i32 to index
    %c12_45 = arith.constant 12 : index
    %208 = memref.load %arg1[%207, %c12_45] : memref<2x16xi32, #tpu.memory_space<smem>>
    %209 = vector.broadcast %208 : i32 to vector<1x512xi32>
    %210 = arith.cmpi eq, %1, %209 : vector<1x512xi32>
    %211 = arith.extui %210 : vector<1x512xi1> to vector<1x512xi32>
    %212 = arith.sitofp %211 : vector<1x512xi32> to vector<1x512xf32>
    %c1_i32_46 = arith.constant 1 : i32
    %213 = arith.addi %0, %c1_i32_46 : i32
    %214 = arith.index_cast %213 : i32 to index
    %c13_47 = arith.constant 13 : index
    %215 = memref.load %arg1[%214, %c13_47] : memref<2x16xi32, #tpu.memory_space<smem>>
    %216 = vector.broadcast %215 : i32 to vector<1x512xi32>
    %217 = arith.cmpi eq, %1, %216 : vector<1x512xi32>
    %218 = arith.extui %217 : vector<1x512xi1> to vector<1x512xi32>
    %219 = arith.sitofp %218 : vector<1x512xi32> to vector<1x512xf32>
    %c1_i32_48 = arith.constant 1 : i32
    %220 = arith.addi %0, %c1_i32_48 : i32
    %221 = arith.index_cast %220 : i32 to index
    %c14_49 = arith.constant 14 : index
    %222 = memref.load %arg1[%221, %c14_49] : memref<2x16xi32, #tpu.memory_space<smem>>
    %223 = vector.broadcast %222 : i32 to vector<1x512xi32>
    %224 = arith.cmpi eq, %1, %223 : vector<1x512xi32>
    %225 = arith.extui %224 : vector<1x512xi1> to vector<1x512xi32>
    %226 = arith.sitofp %225 : vector<1x512xi32> to vector<1x512xf32>
    %c1_i32_50 = arith.constant 1 : i32
    %227 = arith.addi %0, %c1_i32_50 : i32
    %228 = arith.index_cast %227 : i32 to index
    %c15_51 = arith.constant 15 : index
    %229 = memref.load %arg1[%228, %c15_51] : memref<2x16xi32, #tpu.memory_space<smem>>
    %230 = vector.broadcast %229 : i32 to vector<1x512xi32>
    %231 = arith.cmpi eq, %1, %230 : vector<1x512xi32>
    %232 = arith.extui %231 : vector<1x512xi1> to vector<1x512xi32>
    %233 = arith.sitofp %232 : vector<1x512xi32> to vector<1x512xf32>
    %234 = tpu.concatenate %128, %135, %142, %149, %156, %163, %170, %177, %184, %191, %198, %205, %212, %219, %226, %233 in 0 : vector<1x512xf32>, vector<1x512xf32>, vector<1x512xf32>, vector<1x512xf32>, vector<1x512xf32>, vector<1x512xf32>, vector<1x512xf32>, vector<1x512xf32>, vector<1x512xf32>, vector<1x512xf32>, vector<1x512xf32>, vector<1x512xf32>, vector<1x512xf32>, vector<1x512xf32>, vector<1x512xf32>, vector<1x512xf32> -> vector<16x512xf32>
    %cst_52 = arith.constant dense<0.000000e+00> : vector<16x128xf32>
    %235 = tpu.matmul %234, %4, %cst_52 {dimension_numbers = #tpu.dot_dimension_numbers<[1], [0], [0], [1], [0, 0, 1, 1], [], []>} : vector<16x512xf32>, vector<512x128xf32>, vector<16x128xf32> -> vector<16x128xf32>
    %236 = arith.addf %235, %2 : vector<16x128xf32>
    %237 = vector.broadcast %3 : vector<1x128xf32> to vector<16x128xf32>
    %238 = arith.addf %236, %237 : vector<16x128xf32>
    %239 = tpu.concatenate %121, %238 in 0 : vector<16x128xf32>, vector<16x128xf32> -> vector<32x128xf32>
    %c0_53 = arith.constant 0 : index
    %c0_54 = arith.constant 0 : index
    %240 = vector.load %arg6[%c0_53, %c0_54] : memref<1x128xf32, #tpu.memory_space<vmem>>, vector<1x128xf32>
    %c0_55 = arith.constant 0 : index
    %c0_56 = arith.constant 0 : index
    %241 = vector.load %arg7[%c0_55, %c0_56] : memref<1x128xf32, #tpu.memory_space<vmem>>, vector<1x128xf32>
    %cst_57 = arith.constant dense<0.000000e+00> : vector<32xf32>
    %242 = vector.multi_reduction <add>, %239, %cst_57 [1] : vector<32x128xf32> to vector<32xf32>
    %243 = vector.shape_cast %242 : vector<32xf32> to vector<32x1xf32>
    %cst_58 = arith.constant 1.280000e+02 : f32
    %244 = vector.broadcast %cst_58 : f32 to vector<32x1xf32>
    %245 = arith.divf %243, %244 : vector<32x1xf32>
    %246 = vector.broadcast %245 : vector<32x1xf32> to vector<32x128xf32>
    %247 = arith.subf %239, %246 : vector<32x128xf32>
    %248 = arith.mulf %247, %247 : vector<32x128xf32>
    %cst_59 = arith.constant dense<0.000000e+00> : vector<32xf32>
    %249 = vector.multi_reduction <add>, %248, %cst_59 [1] : vector<32x128xf32> to vector<32xf32>
    %250 = vector.shape_cast %249 : vector<32xf32> to vector<32x1xf32>
    %cst_60 = arith.constant 1.280000e+02 : f32
    %251 = vector.broadcast %cst_60 : f32 to vector<32x1xf32>
    %252 = arith.divf %250, %251 : vector<32x1xf32>
    %253 = vector.broadcast %245 : vector<32x1xf32> to vector<32x128xf32>
    %254 = arith.subf %239, %253 : vector<32x128xf32>
    %cst_61 = arith.constant 9.99999996E-13 : f32
    %255 = vector.broadcast %cst_61 : f32 to vector<32x1xf32>
    %256 = arith.addf %252, %255 : vector<32x1xf32>
    %257 = math.rsqrt %256 : vector<32x1xf32>
    %258 = vector.broadcast %257 : vector<32x1xf32> to vector<32x128xf32>
    %259 = arith.mulf %254, %258 : vector<32x128xf32>
    %260 = vector.broadcast %240 : vector<1x128xf32> to vector<32x128xf32>
    %261 = arith.mulf %259, %260 : vector<32x128xf32>
    %262 = vector.broadcast %241 : vector<1x128xf32> to vector<32x128xf32>
    %263 = arith.addf %261, %262 : vector<32x128xf32>
    %c0_62 = arith.constant 0 : index
    %c0_63 = arith.constant 0 : index
    %264 = vector.load %arg2[%c0_62, %c0_63] : memref<2x16xf32, #tpu.memory_space<vmem>>, vector<2x16xf32>
    %cst_64 = arith.constant 1.000000e+00 : f32
    %265 = vector.broadcast %cst_64 : f32 to vector<2x16xf32>
    %266 = arith.subf %265, %264 : vector<2x16xf32>
    %cst_65 = arith.constant -1.000000e+04 : f32
    %267 = vector.broadcast %cst_65 : f32 to vector<2x16xf32>
    %268 = arith.mulf %266, %267 : vector<2x16xf32>
    %269 = vector.extract_strided_slice %268 {offsets = [0, 0], sizes = [1, 16], strides = [1, 1]} : vector<2x16xf32> to vector<1x16xf32>
    %270 = vector.shape_cast %269 : vector<1x16xf32> to vector<1x16xf32>
    %271 = vector.broadcast %270 : vector<1x16xf32> to vector<16x16xf32>
    %272 = vector.extract_strided_slice %268 {offsets = [1, 0], sizes = [1, 16], strides = [1, 1]} : vector<2x16xf32> to vector<1x16xf32>
    %273 = vector.shape_cast %272 : vector<1x16xf32> to vector<1x16xf32>
    %274 = vector.broadcast %273 : vector<1x16xf32> to vector<16x16xf32>
    %275 = arith.truncf %263 : vector<32x128xf32> to vector<32x128xbf16>
    %c0_66 = arith.constant 0 : index
    %c0_67 = arith.constant 0 : index
    %c0_68 = arith.constant 0 : index
    %276 = vector.load %arg8[%c0_66, %c0_67, %c0_68] : memref<2x128x384xbf16, #tpu.memory_space<vmem>>, vector<1x128x384xbf16>
    %277 = vector.shape_cast %276 : vector<1x128x384xbf16> to vector<128x384xbf16>
    %cst_69 = arith.constant dense<0.000000e+00> : vector<32x384xf32>
    %278 = tpu.matmul %275, %277, %cst_69 {dimension_numbers = #tpu.dot_dimension_numbers<[1], [0], [0], [1], [0, 0, 1, 1], [], []>} : vector<32x128xbf16>, vector<128x384xbf16>, vector<32x384xf32> -> vector<32x384xf32>
    %c0_70 = arith.constant 0 : index
    %c0_71 = arith.constant 0 : index
    %c0_72 = arith.constant 0 : index
    %279 = vector.load %arg9[%c0_70, %c0_71, %c0_72] : memref<2x1x384xf32, #tpu.memory_space<vmem>>, vector<1x1x384xf32>
    %280 = vector.shape_cast %279 : vector<1x1x384xf32> to vector<1x384xf32>
    %281 = vector.broadcast %280 : vector<1x384xf32> to vector<32x384xf32>
    %282 = arith.addf %278, %281 : vector<32x384xf32>
    %cst_73 = arith.constant 0.000000e+00 : f32
    %283 = vector.broadcast %cst_73 : f32 to vector<16x128xf32>
    %284 = vector.extract_strided_slice %282 {offsets = [0, 0], sizes = [16, 64], strides = [1, 1]} : vector<32x384xf32> to vector<16x64xf32>
    %285 = arith.truncf %284 : vector<16x64xf32> to vector<16x64xbf16>
    %286 = vector.extract_strided_slice %282 {offsets = [0, 128], sizes = [16, 64], strides = [1, 1]} : vector<32x384xf32> to vector<16x64xf32>
    %287 = arith.truncf %286 : vector<16x64xf32> to vector<16x64xbf16>
    %288 = vector.extract_strided_slice %282 {offsets = [0, 256], sizes = [16, 64], strides = [1, 1]} : vector<32x384xf32> to vector<16x64xf32>
    %289 = arith.truncf %288 : vector<16x64xf32> to vector<16x64xbf16>
    %cst_74 = arith.constant dense<0.000000e+00> : vector<16x16xf32>
    %290 = tpu.matmul %285, %287, %cst_74 {dimension_numbers = #tpu.dot_dimension_numbers<[1], [1], [0], [0], [0, 0, 1, 0], [], []>} : vector<16x64xbf16>, vector<16x64xbf16>, vector<16x16xf32> -> vector<16x16xf32>
    %cst_75 = arith.constant 1.250000e-01 : f32
    %291 = vector.broadcast %cst_75 : f32 to vector<16x16xf32>
    %292 = arith.mulf %290, %291 : vector<16x16xf32>
    %293 = arith.addf %292, %271 : vector<16x16xf32>
    %cst_76 = arith.constant dense<0xFF800000> : vector<16xf32>
    %294 = vector.multi_reduction <maximumf>, %293, %cst_76 [1] : vector<16x16xf32> to vector<16xf32>
    %295 = vector.shape_cast %294 : vector<16xf32> to vector<16x1xf32>
    %296 = vector.broadcast %295 : vector<16x1xf32> to vector<16x16xf32>
    %297 = arith.subf %293, %296 : vector<16x16xf32>
    %298 = math.exp %297 : vector<16x16xf32>
    %cst_77 = arith.constant dense<0.000000e+00> : vector<16xf32>
    %299 = vector.multi_reduction <add>, %298, %cst_77 [1] : vector<16x16xf32> to vector<16xf32>
    %300 = vector.shape_cast %299 : vector<16xf32> to vector<16x1xf32>
    %301 = vector.broadcast %300 : vector<16x1xf32> to vector<16x16xf32>
    %302 = arith.divf %298, %301 : vector<16x16xf32>
    %303 = arith.truncf %302 : vector<16x16xf32> to vector<16x16xbf16>
    %cst_78 = arith.constant dense<0.000000e+00> : vector<16x64xf32>
    %304 = tpu.matmul %303, %289, %cst_78 {dimension_numbers = #tpu.dot_dimension_numbers<[1], [0], [0], [1], [0, 0, 1, 1], [], []>} : vector<16x16xbf16>, vector<16x64xbf16>, vector<16x64xf32> -> vector<16x64xf32>
    %305 = arith.truncf %304 : vector<16x64xf32> to vector<16x64xbf16>
    %c0_79 = arith.constant 0 : index
    %c0_80 = arith.constant 0 : index
    %c0_81 = arith.constant 0 : index
    %306 = vector.load %arg10[%c0_79, %c0_80, %c0_81] : memref<2x128x128xbf16, #tpu.memory_space<vmem>>, vector<1x64x128xbf16>
    %307 = vector.shape_cast %306 : vector<1x64x128xbf16> to vector<64x128xbf16>
    %cst_82 = arith.constant dense<0.000000e+00> : vector<16x128xf32>
    %308 = tpu.matmul %305, %307, %cst_82 {dimension_numbers = #tpu.dot_dimension_numbers<[1], [0], [0], [1], [0, 0, 1, 1], [], []>} : vector<16x64xbf16>, vector<64x128xbf16>, vector<16x128xf32> -> vector<16x128xf32>
    %309 = arith.addf %283, %308 : vector<16x128xf32>
    %310 = vector.extract_strided_slice %282 {offsets = [0, 64], sizes = [16, 64], strides = [1, 1]} : vector<32x384xf32> to vector<16x64xf32>
    %311 = arith.truncf %310 : vector<16x64xf32> to vector<16x64xbf16>
    %312 = vector.extract_strided_slice %282 {offsets = [0, 192], sizes = [16, 64], strides = [1, 1]} : vector<32x384xf32> to vector<16x64xf32>
    %313 = arith.truncf %312 : vector<16x64xf32> to vector<16x64xbf16>
    %314 = vector.extract_strided_slice %282 {offsets = [0, 320], sizes = [16, 64], strides = [1, 1]} : vector<32x384xf32> to vector<16x64xf32>
    %315 = arith.truncf %314 : vector<16x64xf32> to vector<16x64xbf16>
    %cst_83 = arith.constant dense<0.000000e+00> : vector<16x16xf32>
    %316 = tpu.matmul %311, %313, %cst_83 {dimension_numbers = #tpu.dot_dimension_numbers<[1], [1], [0], [0], [0, 0, 1, 0], [], []>} : vector<16x64xbf16>, vector<16x64xbf16>, vector<16x16xf32> -> vector<16x16xf32>
    %cst_84 = arith.constant 1.250000e-01 : f32
    %317 = vector.broadcast %cst_84 : f32 to vector<16x16xf32>
    %318 = arith.mulf %316, %317 : vector<16x16xf32>
    %319 = arith.addf %318, %271 : vector<16x16xf32>
    %cst_85 = arith.constant dense<0xFF800000> : vector<16xf32>
    %320 = vector.multi_reduction <maximumf>, %319, %cst_85 [1] : vector<16x16xf32> to vector<16xf32>
    %321 = vector.shape_cast %320 : vector<16xf32> to vector<16x1xf32>
    %322 = vector.broadcast %321 : vector<16x1xf32> to vector<16x16xf32>
    %323 = arith.subf %319, %322 : vector<16x16xf32>
    %324 = math.exp %323 : vector<16x16xf32>
    %cst_86 = arith.constant dense<0.000000e+00> : vector<16xf32>
    %325 = vector.multi_reduction <add>, %324, %cst_86 [1] : vector<16x16xf32> to vector<16xf32>
    %326 = vector.shape_cast %325 : vector<16xf32> to vector<16x1xf32>
    %327 = vector.broadcast %326 : vector<16x1xf32> to vector<16x16xf32>
    %328 = arith.divf %324, %327 : vector<16x16xf32>
    %329 = arith.truncf %328 : vector<16x16xf32> to vector<16x16xbf16>
    %cst_87 = arith.constant dense<0.000000e+00> : vector<16x64xf32>
    %330 = tpu.matmul %329, %315, %cst_87 {dimension_numbers = #tpu.dot_dimension_numbers<[1], [0], [0], [1], [0, 0, 1, 1], [], []>} : vector<16x16xbf16>, vector<16x64xbf16>, vector<16x64xf32> -> vector<16x64xf32>
    %331 = arith.truncf %330 : vector<16x64xf32> to vector<16x64xbf16>
    %c0_88 = arith.constant 0 : index
    %c64 = arith.constant 64 : index
    %c0_89 = arith.constant 0 : index
    %332 = vector.load %arg10[%c0_88, %c64, %c0_89] : memref<2x128x128xbf16, #tpu.memory_space<vmem>>, vector<1x64x128xbf16>
    %333 = vector.shape_cast %332 : vector<1x64x128xbf16> to vector<64x128xbf16>
    %cst_90 = arith.constant dense<0.000000e+00> : vector<16x128xf32>
    %334 = tpu.matmul %331, %333, %cst_90 {dimension_numbers = #tpu.dot_dimension_numbers<[1], [0], [0], [1], [0, 0, 1, 1], [], []>} : vector<16x64xbf16>, vector<64x128xbf16>, vector<16x128xf32> -> vector<16x128xf32>
    %335 = arith.addf %309, %334 : vector<16x128xf32>
    %cst_91 = arith.constant 0.000000e+00 : f32
    %336 = vector.broadcast %cst_91 : f32 to vector<16x128xf32>
    %337 = vector.extract_strided_slice %282 {offsets = [16, 0], sizes = [16, 64], strides = [1, 1]} : vector<32x384xf32> to vector<16x64xf32>
    %338 = arith.truncf %337 : vector<16x64xf32> to vector<16x64xbf16>
    %339 = vector.extract_strided_slice %282 {offsets = [16, 128], sizes = [16, 64], strides = [1, 1]} : vector<32x384xf32> to vector<16x64xf32>
    %340 = arith.truncf %339 : vector<16x64xf32> to vector<16x64xbf16>
    %341 = vector.extract_strided_slice %282 {offsets = [16, 256], sizes = [16, 64], strides = [1, 1]} : vector<32x384xf32> to vector<16x64xf32>
    %342 = arith.truncf %341 : vector<16x64xf32> to vector<16x64xbf16>
    %cst_92 = arith.constant dense<0.000000e+00> : vector<16x16xf32>
    %343 = tpu.matmul %338, %340, %cst_92 {dimension_numbers = #tpu.dot_dimension_numbers<[1], [1], [0], [0], [0, 0, 1, 0], [], []>} : vector<16x64xbf16>, vector<16x64xbf16>, vector<16x16xf32> -> vector<16x16xf32>
    %cst_93 = arith.constant 1.250000e-01 : f32
    %344 = vector.broadcast %cst_93 : f32 to vector<16x16xf32>
    %345 = arith.mulf %343, %344 : vector<16x16xf32>
    %346 = arith.addf %345, %274 : vector<16x16xf32>
    %cst_94 = arith.constant dense<0xFF800000> : vector<16xf32>
    %347 = vector.multi_reduction <maximumf>, %346, %cst_94 [1] : vector<16x16xf32> to vector<16xf32>
    %348 = vector.shape_cast %347 : vector<16xf32> to vector<16x1xf32>
    %349 = vector.broadcast %348 : vector<16x1xf32> to vector<16x16xf32>
    %350 = arith.subf %346, %349 : vector<16x16xf32>
    %351 = math.exp %350 : vector<16x16xf32>
    %cst_95 = arith.constant dense<0.000000e+00> : vector<16xf32>
    %352 = vector.multi_reduction <add>, %351, %cst_95 [1] : vector<16x16xf32> to vector<16xf32>
    %353 = vector.shape_cast %352 : vector<16xf32> to vector<16x1xf32>
    %354 = vector.broadcast %353 : vector<16x1xf32> to vector<16x16xf32>
    %355 = arith.divf %351, %354 : vector<16x16xf32>
    %356 = arith.truncf %355 : vector<16x16xf32> to vector<16x16xbf16>
    %cst_96 = arith.constant dense<0.000000e+00> : vector<16x64xf32>
    %357 = tpu.matmul %356, %342, %cst_96 {dimension_numbers = #tpu.dot_dimension_numbers<[1], [0], [0], [1], [0, 0, 1, 1], [], []>} : vector<16x16xbf16>, vector<16x64xbf16>, vector<16x64xf32> -> vector<16x64xf32>
    %358 = arith.truncf %357 : vector<16x64xf32> to vector<16x64xbf16>
    %c0_97 = arith.constant 0 : index
    %c0_98 = arith.constant 0 : index
    %c0_99 = arith.constant 0 : index
    %359 = vector.load %arg10[%c0_97, %c0_98, %c0_99] : memref<2x128x128xbf16, #tpu.memory_space<vmem>>, vector<1x64x128xbf16>
    %360 = vector.shape_cast %359 : vector<1x64x128xbf16> to vector<64x128xbf16>
    %cst_100 = arith.constant dense<0.000000e+00> : vector<16x128xf32>
    %361 = tpu.matmul %358, %360, %cst_100 {dimension_numbers = #tpu.dot_dimension_numbers<[1], [0], [0], [1], [0, 0, 1, 1], [], []>} : vector<16x64xbf16>, vector<64x128xbf16>, vector<16x128xf32> -> vector<16x128xf32>
    %362 = arith.addf %336, %361 : vector<16x128xf32>
    %363 = vector.extract_strided_slice %282 {offsets = [16, 64], sizes = [16, 64], strides = [1, 1]} : vector<32x384xf32> to vector<16x64xf32>
    %364 = arith.truncf %363 : vector<16x64xf32> to vector<16x64xbf16>
    %365 = vector.extract_strided_slice %282 {offsets = [16, 192], sizes = [16, 64], strides = [1, 1]} : vector<32x384xf32> to vector<16x64xf32>
    %366 = arith.truncf %365 : vector<16x64xf32> to vector<16x64xbf16>
    %367 = vector.extract_strided_slice %282 {offsets = [16, 320], sizes = [16, 64], strides = [1, 1]} : vector<32x384xf32> to vector<16x64xf32>
    %368 = arith.truncf %367 : vector<16x64xf32> to vector<16x64xbf16>
    %cst_101 = arith.constant dense<0.000000e+00> : vector<16x16xf32>
    %369 = tpu.matmul %364, %366, %cst_101 {dimension_numbers = #tpu.dot_dimension_numbers<[1], [1], [0], [0], [0, 0, 1, 0], [], []>} : vector<16x64xbf16>, vector<16x64xbf16>, vector<16x16xf32> -> vector<16x16xf32>
    %cst_102 = arith.constant 1.250000e-01 : f32
    %370 = vector.broadcast %cst_102 : f32 to vector<16x16xf32>
    %371 = arith.mulf %369, %370 : vector<16x16xf32>
    %372 = arith.addf %371, %274 : vector<16x16xf32>
    %cst_103 = arith.constant dense<0xFF800000> : vector<16xf32>
    %373 = vector.multi_reduction <maximumf>, %372, %cst_103 [1] : vector<16x16xf32> to vector<16xf32>
    %374 = vector.shape_cast %373 : vector<16xf32> to vector<16x1xf32>
    %375 = vector.broadcast %374 : vector<16x1xf32> to vector<16x16xf32>
    %376 = arith.subf %372, %375 : vector<16x16xf32>
    %377 = math.exp %376 : vector<16x16xf32>
    %cst_104 = arith.constant dense<0.000000e+00> : vector<16xf32>
    %378 = vector.multi_reduction <add>, %377, %cst_104 [1] : vector<16x16xf32> to vector<16xf32>
    %379 = vector.shape_cast %378 : vector<16xf32> to vector<16x1xf32>
    %380 = vector.broadcast %379 : vector<16x1xf32> to vector<16x16xf32>
    %381 = arith.divf %377, %380 : vector<16x16xf32>
    %382 = arith.truncf %381 : vector<16x16xf32> to vector<16x16xbf16>
    %cst_105 = arith.constant dense<0.000000e+00> : vector<16x64xf32>
    %383 = tpu.matmul %382, %368, %cst_105 {dimension_numbers = #tpu.dot_dimension_numbers<[1], [0], [0], [1], [0, 0, 1, 1], [], []>} : vector<16x16xbf16>, vector<16x64xbf16>, vector<16x64xf32> -> vector<16x64xf32>
    %384 = arith.truncf %383 : vector<16x64xf32> to vector<16x64xbf16>
    %c0_106 = arith.constant 0 : index
    %c64_107 = arith.constant 64 : index
    %c0_108 = arith.constant 0 : index
    %385 = vector.load %arg10[%c0_106, %c64_107, %c0_108] : memref<2x128x128xbf16, #tpu.memory_space<vmem>>, vector<1x64x128xbf16>
    %386 = vector.shape_cast %385 : vector<1x64x128xbf16> to vector<64x128xbf16>
    %cst_109 = arith.constant dense<0.000000e+00> : vector<16x128xf32>
    %387 = tpu.matmul %384, %386, %cst_109 {dimension_numbers = #tpu.dot_dimension_numbers<[1], [0], [0], [1], [0, 0, 1, 1], [], []>} : vector<16x64xbf16>, vector<64x128xbf16>, vector<16x128xf32> -> vector<16x128xf32>
    %388 = arith.addf %362, %387 : vector<16x128xf32>
    %389 = tpu.concatenate %335, %388 in 0 : vector<16x128xf32>, vector<16x128xf32> -> vector<32x128xf32>
    %c0_110 = arith.constant 0 : index
    %c0_111 = arith.constant 0 : index
    %c0_112 = arith.constant 0 : index
    %390 = vector.load %arg11[%c0_110, %c0_111, %c0_112] : memref<2x1x128xf32, #tpu.memory_space<vmem>>, vector<1x1x128xf32>
    %391 = vector.shape_cast %390 : vector<1x1x128xf32> to vector<1x128xf32>
    %392 = vector.broadcast %391 : vector<1x128xf32> to vector<32x128xf32>
    %393 = arith.addf %389, %392 : vector<32x128xf32>
    %394 = arith.addf %393, %263 : vector<32x128xf32>
    %c0_113 = arith.constant 0 : index
    %c0_114 = arith.constant 0 : index
    %c0_115 = arith.constant 0 : index
    %395 = vector.load %arg12[%c0_113, %c0_114, %c0_115] : memref<2x1x128xf32, #tpu.memory_space<vmem>>, vector<1x1x128xf32>
    %396 = vector.shape_cast %395 : vector<1x1x128xf32> to vector<1x128xf32>
    %c0_116 = arith.constant 0 : index
    %c0_117 = arith.constant 0 : index
    %c0_118 = arith.constant 0 : index
    %397 = vector.load %arg13[%c0_116, %c0_117, %c0_118] : memref<2x1x128xf32, #tpu.memory_space<vmem>>, vector<1x1x128xf32>
    %398 = vector.shape_cast %397 : vector<1x1x128xf32> to vector<1x128xf32>
    %cst_119 = arith.constant dense<0.000000e+00> : vector<32xf32>
    %399 = vector.multi_reduction <add>, %394, %cst_119 [1] : vector<32x128xf32> to vector<32xf32>
    %400 = vector.shape_cast %399 : vector<32xf32> to vector<32x1xf32>
    %cst_120 = arith.constant 1.280000e+02 : f32
    %401 = vector.broadcast %cst_120 : f32 to vector<32x1xf32>
    %402 = arith.divf %400, %401 : vector<32x1xf32>
    %403 = vector.broadcast %402 : vector<32x1xf32> to vector<32x128xf32>
    %404 = arith.subf %394, %403 : vector<32x128xf32>
    %405 = arith.mulf %404, %404 : vector<32x128xf32>
    %cst_121 = arith.constant dense<0.000000e+00> : vector<32xf32>
    %406 = vector.multi_reduction <add>, %405, %cst_121 [1] : vector<32x128xf32> to vector<32xf32>
    %407 = vector.shape_cast %406 : vector<32xf32> to vector<32x1xf32>
    %cst_122 = arith.constant 1.280000e+02 : f32
    %408 = vector.broadcast %cst_122 : f32 to vector<32x1xf32>
    %409 = arith.divf %407, %408 : vector<32x1xf32>
    %410 = vector.broadcast %402 : vector<32x1xf32> to vector<32x128xf32>
    %411 = arith.subf %394, %410 : vector<32x128xf32>
    %cst_123 = arith.constant 9.99999996E-13 : f32
    %412 = vector.broadcast %cst_123 : f32 to vector<32x1xf32>
    %413 = arith.addf %409, %412 : vector<32x1xf32>
    %414 = math.rsqrt %413 : vector<32x1xf32>
    %415 = vector.broadcast %414 : vector<32x1xf32> to vector<32x128xf32>
    %416 = arith.mulf %411, %415 : vector<32x128xf32>
    %417 = vector.broadcast %396 : vector<1x128xf32> to vector<32x128xf32>
    %418 = arith.mulf %416, %417 : vector<32x128xf32>
    %419 = vector.broadcast %398 : vector<1x128xf32> to vector<32x128xf32>
    %420 = arith.addf %418, %419 : vector<32x128xf32>
    %421 = arith.truncf %420 : vector<32x128xf32> to vector<32x128xbf16>
    %c0_124 = arith.constant 0 : index
    %c0_125 = arith.constant 0 : index
    %c0_126 = arith.constant 0 : index
    %422 = vector.load %arg14[%c0_124, %c0_125, %c0_126] : memref<2x128x256xbf16, #tpu.memory_space<vmem>>, vector<1x128x256xbf16>
    %423 = vector.shape_cast %422 : vector<1x128x256xbf16> to vector<128x256xbf16>
    %cst_127 = arith.constant dense<0.000000e+00> : vector<32x256xf32>
    %424 = tpu.matmul %421, %423, %cst_127 {dimension_numbers = #tpu.dot_dimension_numbers<[1], [0], [0], [1], [0, 0, 1, 1], [], []>} : vector<32x128xbf16>, vector<128x256xbf16>, vector<32x256xf32> -> vector<32x256xf32>
    %c0_128 = arith.constant 0 : index
    %c0_129 = arith.constant 0 : index
    %c0_130 = arith.constant 0 : index
    %425 = vector.load %arg15[%c0_128, %c0_129, %c0_130] : memref<2x1x256xf32, #tpu.memory_space<vmem>>, vector<1x1x256xf32>
    %426 = vector.shape_cast %425 : vector<1x1x256xf32> to vector<1x256xf32>
    %427 = vector.broadcast %426 : vector<1x256xf32> to vector<32x256xf32>
    %428 = arith.addf %424, %427 : vector<32x256xf32>
    %cst_131 = arith.constant 5.000000e-01 : f32
    %429 = vector.broadcast %cst_131 : f32 to vector<32x256xf32>
    %430 = arith.mulf %429, %428 : vector<32x256xf32>
    %cst_132 = arith.constant 4.471500e-02 : f32
    %431 = vector.broadcast %cst_132 : f32 to vector<32x256xf32>
    %432 = arith.mulf %431, %428 : vector<32x256xf32>
    %433 = arith.mulf %432, %428 : vector<32x256xf32>
    %434 = arith.mulf %433, %428 : vector<32x256xf32>
    %435 = arith.addf %428, %434 : vector<32x256xf32>
    %cst_133 = arith.constant 0.797884583 : f32
    %436 = vector.broadcast %cst_133 : f32 to vector<32x256xf32>
    %437 = arith.mulf %436, %435 : vector<32x256xf32>
    %438 = math.tanh %437 : vector<32x256xf32>
    %cst_134 = arith.constant 1.000000e+00 : f32
    %439 = vector.broadcast %cst_134 : f32 to vector<32x256xf32>
    %440 = arith.addf %439, %438 : vector<32x256xf32>
    %441 = arith.mulf %430, %440 : vector<32x256xf32>
    %442 = arith.truncf %441 : vector<32x256xf32> to vector<32x256xbf16>
    %c0_135 = arith.constant 0 : index
    %c0_136 = arith.constant 0 : index
    %c0_137 = arith.constant 0 : index
    %443 = vector.load %arg16[%c0_135, %c0_136, %c0_137] : memref<2x256x128xbf16, #tpu.memory_space<vmem>>, vector<1x256x128xbf16>
    %444 = vector.shape_cast %443 : vector<1x256x128xbf16> to vector<256x128xbf16>
    %cst_138 = arith.constant dense<0.000000e+00> : vector<32x128xf32>
    %445 = tpu.matmul %442, %444, %cst_138 {dimension_numbers = #tpu.dot_dimension_numbers<[1], [0], [0], [1], [0, 0, 1, 1], [], []>} : vector<32x256xbf16>, vector<256x128xbf16>, vector<32x128xf32> -> vector<32x128xf32>
    %c0_139 = arith.constant 0 : index
    %c0_140 = arith.constant 0 : index
    %c0_141 = arith.constant 0 : index
    %446 = vector.load %arg17[%c0_139, %c0_140, %c0_141] : memref<2x1x128xf32, #tpu.memory_space<vmem>>, vector<1x1x128xf32>
    %447 = vector.shape_cast %446 : vector<1x1x128xf32> to vector<1x128xf32>
    %448 = vector.broadcast %447 : vector<1x128xf32> to vector<32x128xf32>
    %449 = arith.addf %445, %448 : vector<32x128xf32>
    %450 = arith.addf %449, %420 : vector<32x128xf32>
    %c0_142 = arith.constant 0 : index
    %c0_143 = arith.constant 0 : index
    %c0_144 = arith.constant 0 : index
    %451 = vector.load %arg18[%c0_142, %c0_143, %c0_144] : memref<2x1x128xf32, #tpu.memory_space<vmem>>, vector<1x1x128xf32>
    %452 = vector.shape_cast %451 : vector<1x1x128xf32> to vector<1x128xf32>
    %c0_145 = arith.constant 0 : index
    %c0_146 = arith.constant 0 : index
    %c0_147 = arith.constant 0 : index
    %453 = vector.load %arg19[%c0_145, %c0_146, %c0_147] : memref<2x1x128xf32, #tpu.memory_space<vmem>>, vector<1x1x128xf32>
    %454 = vector.shape_cast %453 : vector<1x1x128xf32> to vector<1x128xf32>
    %cst_148 = arith.constant dense<0.000000e+00> : vector<32xf32>
    %455 = vector.multi_reduction <add>, %450, %cst_148 [1] : vector<32x128xf32> to vector<32xf32>
    %456 = vector.shape_cast %455 : vector<32xf32> to vector<32x1xf32>
    %cst_149 = arith.constant 1.280000e+02 : f32
    %457 = vector.broadcast %cst_149 : f32 to vector<32x1xf32>
    %458 = arith.divf %456, %457 : vector<32x1xf32>
    %459 = vector.broadcast %458 : vector<32x1xf32> to vector<32x128xf32>
    %460 = arith.subf %450, %459 : vector<32x128xf32>
    %461 = arith.mulf %460, %460 : vector<32x128xf32>
    %cst_150 = arith.constant dense<0.000000e+00> : vector<32xf32>
    %462 = vector.multi_reduction <add>, %461, %cst_150 [1] : vector<32x128xf32> to vector<32xf32>
    %463 = vector.shape_cast %462 : vector<32xf32> to vector<32x1xf32>
    %cst_151 = arith.constant 1.280000e+02 : f32
    %464 = vector.broadcast %cst_151 : f32 to vector<32x1xf32>
    %465 = arith.divf %463, %464 : vector<32x1xf32>
    %466 = vector.broadcast %458 : vector<32x1xf32> to vector<32x128xf32>
    %467 = arith.subf %450, %466 : vector<32x128xf32>
    %cst_152 = arith.constant 9.99999996E-13 : f32
    %468 = vector.broadcast %cst_152 : f32 to vector<32x1xf32>
    %469 = arith.addf %465, %468 : vector<32x1xf32>
    %470 = math.rsqrt %469 : vector<32x1xf32>
    %471 = vector.broadcast %470 : vector<32x1xf32> to vector<32x128xf32>
    %472 = arith.mulf %467, %471 : vector<32x128xf32>
    %473 = vector.broadcast %452 : vector<1x128xf32> to vector<32x128xf32>
    %474 = arith.mulf %472, %473 : vector<32x128xf32>
    %475 = vector.broadcast %454 : vector<1x128xf32> to vector<32x128xf32>
    %476 = arith.addf %474, %475 : vector<32x128xf32>
    %477 = arith.truncf %476 : vector<32x128xf32> to vector<32x128xbf16>
    %c1_153 = arith.constant 1 : index
    %c0_154 = arith.constant 0 : index
    %c0_155 = arith.constant 0 : index
    %478 = vector.load %arg8[%c1_153, %c0_154, %c0_155] : memref<2x128x384xbf16, #tpu.memory_space<vmem>>, vector<1x128x384xbf16>
    %479 = vector.shape_cast %478 : vector<1x128x384xbf16> to vector<128x384xbf16>
    %cst_156 = arith.constant dense<0.000000e+00> : vector<32x384xf32>
    %480 = tpu.matmul %477, %479, %cst_156 {dimension_numbers = #tpu.dot_dimension_numbers<[1], [0], [0], [1], [0, 0, 1, 1], [], []>} : vector<32x128xbf16>, vector<128x384xbf16>, vector<32x384xf32> -> vector<32x384xf32>
    %c1_157 = arith.constant 1 : index
    %c0_158 = arith.constant 0 : index
    %c0_159 = arith.constant 0 : index
    %481 = vector.load %arg9[%c1_157, %c0_158, %c0_159] : memref<2x1x384xf32, #tpu.memory_space<vmem>>, vector<1x1x384xf32>
    %482 = vector.shape_cast %481 : vector<1x1x384xf32> to vector<1x384xf32>
    %483 = vector.broadcast %482 : vector<1x384xf32> to vector<32x384xf32>
    %484 = arith.addf %480, %483 : vector<32x384xf32>
    %cst_160 = arith.constant 0.000000e+00 : f32
    %485 = vector.broadcast %cst_160 : f32 to vector<16x128xf32>
    %486 = vector.extract_strided_slice %484 {offsets = [0, 0], sizes = [16, 64], strides = [1, 1]} : vector<32x384xf32> to vector<16x64xf32>
    %487 = arith.truncf %486 : vector<16x64xf32> to vector<16x64xbf16>
    %488 = vector.extract_strided_slice %484 {offsets = [0, 128], sizes = [16, 64], strides = [1, 1]} : vector<32x384xf32> to vector<16x64xf32>
    %489 = arith.truncf %488 : vector<16x64xf32> to vector<16x64xbf16>
    %490 = vector.extract_strided_slice %484 {offsets = [0, 256], sizes = [16, 64], strides = [1, 1]} : vector<32x384xf32> to vector<16x64xf32>
    %491 = arith.truncf %490 : vector<16x64xf32> to vector<16x64xbf16>
    %cst_161 = arith.constant dense<0.000000e+00> : vector<16x16xf32>
    %492 = tpu.matmul %487, %489, %cst_161 {dimension_numbers = #tpu.dot_dimension_numbers<[1], [1], [0], [0], [0, 0, 1, 0], [], []>} : vector<16x64xbf16>, vector<16x64xbf16>, vector<16x16xf32> -> vector<16x16xf32>
    %cst_162 = arith.constant 1.250000e-01 : f32
    %493 = vector.broadcast %cst_162 : f32 to vector<16x16xf32>
    %494 = arith.mulf %492, %493 : vector<16x16xf32>
    %495 = arith.addf %494, %271 : vector<16x16xf32>
    %cst_163 = arith.constant dense<0xFF800000> : vector<16xf32>
    %496 = vector.multi_reduction <maximumf>, %495, %cst_163 [1] : vector<16x16xf32> to vector<16xf32>
    %497 = vector.shape_cast %496 : vector<16xf32> to vector<16x1xf32>
    %498 = vector.broadcast %497 : vector<16x1xf32> to vector<16x16xf32>
    %499 = arith.subf %495, %498 : vector<16x16xf32>
    %500 = math.exp %499 : vector<16x16xf32>
    %cst_164 = arith.constant dense<0.000000e+00> : vector<16xf32>
    %501 = vector.multi_reduction <add>, %500, %cst_164 [1] : vector<16x16xf32> to vector<16xf32>
    %502 = vector.shape_cast %501 : vector<16xf32> to vector<16x1xf32>
    %503 = vector.broadcast %502 : vector<16x1xf32> to vector<16x16xf32>
    %504 = arith.divf %500, %503 : vector<16x16xf32>
    %505 = arith.truncf %504 : vector<16x16xf32> to vector<16x16xbf16>
    %cst_165 = arith.constant dense<0.000000e+00> : vector<16x64xf32>
    %506 = tpu.matmul %505, %491, %cst_165 {dimension_numbers = #tpu.dot_dimension_numbers<[1], [0], [0], [1], [0, 0, 1, 1], [], []>} : vector<16x16xbf16>, vector<16x64xbf16>, vector<16x64xf32> -> vector<16x64xf32>
    %507 = arith.truncf %506 : vector<16x64xf32> to vector<16x64xbf16>
    %c1_166 = arith.constant 1 : index
    %c0_167 = arith.constant 0 : index
    %c0_168 = arith.constant 0 : index
    %508 = vector.load %arg10[%c1_166, %c0_167, %c0_168] : memref<2x128x128xbf16, #tpu.memory_space<vmem>>, vector<1x64x128xbf16>
    %509 = vector.shape_cast %508 : vector<1x64x128xbf16> to vector<64x128xbf16>
    %cst_169 = arith.constant dense<0.000000e+00> : vector<16x128xf32>
    %510 = tpu.matmul %507, %509, %cst_169 {dimension_numbers = #tpu.dot_dimension_numbers<[1], [0], [0], [1], [0, 0, 1, 1], [], []>} : vector<16x64xbf16>, vector<64x128xbf16>, vector<16x128xf32> -> vector<16x128xf32>
    %511 = arith.addf %485, %510 : vector<16x128xf32>
    %512 = vector.extract_strided_slice %484 {offsets = [0, 64], sizes = [16, 64], strides = [1, 1]} : vector<32x384xf32> to vector<16x64xf32>
    %513 = arith.truncf %512 : vector<16x64xf32> to vector<16x64xbf16>
    %514 = vector.extract_strided_slice %484 {offsets = [0, 192], sizes = [16, 64], strides = [1, 1]} : vector<32x384xf32> to vector<16x64xf32>
    %515 = arith.truncf %514 : vector<16x64xf32> to vector<16x64xbf16>
    %516 = vector.extract_strided_slice %484 {offsets = [0, 320], sizes = [16, 64], strides = [1, 1]} : vector<32x384xf32> to vector<16x64xf32>
    %517 = arith.truncf %516 : vector<16x64xf32> to vector<16x64xbf16>
    %cst_170 = arith.constant dense<0.000000e+00> : vector<16x16xf32>
    %518 = tpu.matmul %513, %515, %cst_170 {dimension_numbers = #tpu.dot_dimension_numbers<[1], [1], [0], [0], [0, 0, 1, 0], [], []>} : vector<16x64xbf16>, vector<16x64xbf16>, vector<16x16xf32> -> vector<16x16xf32>
    %cst_171 = arith.constant 1.250000e-01 : f32
    %519 = vector.broadcast %cst_171 : f32 to vector<16x16xf32>
    %520 = arith.mulf %518, %519 : vector<16x16xf32>
    %521 = arith.addf %520, %271 : vector<16x16xf32>
    %cst_172 = arith.constant dense<0xFF800000> : vector<16xf32>
    %522 = vector.multi_reduction <maximumf>, %521, %cst_172 [1] : vector<16x16xf32> to vector<16xf32>
    %523 = vector.shape_cast %522 : vector<16xf32> to vector<16x1xf32>
    %524 = vector.broadcast %523 : vector<16x1xf32> to vector<16x16xf32>
    %525 = arith.subf %521, %524 : vector<16x16xf32>
    %526 = math.exp %525 : vector<16x16xf32>
    %cst_173 = arith.constant dense<0.000000e+00> : vector<16xf32>
    %527 = vector.multi_reduction <add>, %526, %cst_173 [1] : vector<16x16xf32> to vector<16xf32>
    %528 = vector.shape_cast %527 : vector<16xf32> to vector<16x1xf32>
    %529 = vector.broadcast %528 : vector<16x1xf32> to vector<16x16xf32>
    %530 = arith.divf %526, %529 : vector<16x16xf32>
    %531 = arith.truncf %530 : vector<16x16xf32> to vector<16x16xbf16>
    %cst_174 = arith.constant dense<0.000000e+00> : vector<16x64xf32>
    %532 = tpu.matmul %531, %517, %cst_174 {dimension_numbers = #tpu.dot_dimension_numbers<[1], [0], [0], [1], [0, 0, 1, 1], [], []>} : vector<16x16xbf16>, vector<16x64xbf16>, vector<16x64xf32> -> vector<16x64xf32>
    %533 = arith.truncf %532 : vector<16x64xf32> to vector<16x64xbf16>
    %c1_175 = arith.constant 1 : index
    %c64_176 = arith.constant 64 : index
    %c0_177 = arith.constant 0 : index
    %534 = vector.load %arg10[%c1_175, %c64_176, %c0_177] : memref<2x128x128xbf16, #tpu.memory_space<vmem>>, vector<1x64x128xbf16>
    %535 = vector.shape_cast %534 : vector<1x64x128xbf16> to vector<64x128xbf16>
    %cst_178 = arith.constant dense<0.000000e+00> : vector<16x128xf32>
    %536 = tpu.matmul %533, %535, %cst_178 {dimension_numbers = #tpu.dot_dimension_numbers<[1], [0], [0], [1], [0, 0, 1, 1], [], []>} : vector<16x64xbf16>, vector<64x128xbf16>, vector<16x128xf32> -> vector<16x128xf32>
    %537 = arith.addf %511, %536 : vector<16x128xf32>
    %cst_179 = arith.constant 0.000000e+00 : f32
    %538 = vector.broadcast %cst_179 : f32 to vector<16x128xf32>
    %539 = vector.extract_strided_slice %484 {offsets = [16, 0], sizes = [16, 64], strides = [1, 1]} : vector<32x384xf32> to vector<16x64xf32>
    %540 = arith.truncf %539 : vector<16x64xf32> to vector<16x64xbf16>
    %541 = vector.extract_strided_slice %484 {offsets = [16, 128], sizes = [16, 64], strides = [1, 1]} : vector<32x384xf32> to vector<16x64xf32>
    %542 = arith.truncf %541 : vector<16x64xf32> to vector<16x64xbf16>
    %543 = vector.extract_strided_slice %484 {offsets = [16, 256], sizes = [16, 64], strides = [1, 1]} : vector<32x384xf32> to vector<16x64xf32>
    %544 = arith.truncf %543 : vector<16x64xf32> to vector<16x64xbf16>
    %cst_180 = arith.constant dense<0.000000e+00> : vector<16x16xf32>
    %545 = tpu.matmul %540, %542, %cst_180 {dimension_numbers = #tpu.dot_dimension_numbers<[1], [1], [0], [0], [0, 0, 1, 0], [], []>} : vector<16x64xbf16>, vector<16x64xbf16>, vector<16x16xf32> -> vector<16x16xf32>
    %cst_181 = arith.constant 1.250000e-01 : f32
    %546 = vector.broadcast %cst_181 : f32 to vector<16x16xf32>
    %547 = arith.mulf %545, %546 : vector<16x16xf32>
    %548 = arith.addf %547, %274 : vector<16x16xf32>
    %cst_182 = arith.constant dense<0xFF800000> : vector<16xf32>
    %549 = vector.multi_reduction <maximumf>, %548, %cst_182 [1] : vector<16x16xf32> to vector<16xf32>
    %550 = vector.shape_cast %549 : vector<16xf32> to vector<16x1xf32>
    %551 = vector.broadcast %550 : vector<16x1xf32> to vector<16x16xf32>
    %552 = arith.subf %548, %551 : vector<16x16xf32>
    %553 = math.exp %552 : vector<16x16xf32>
    %cst_183 = arith.constant dense<0.000000e+00> : vector<16xf32>
    %554 = vector.multi_reduction <add>, %553, %cst_183 [1] : vector<16x16xf32> to vector<16xf32>
    %555 = vector.shape_cast %554 : vector<16xf32> to vector<16x1xf32>
    %556 = vector.broadcast %555 : vector<16x1xf32> to vector<16x16xf32>
    %557 = arith.divf %553, %556 : vector<16x16xf32>
    %558 = arith.truncf %557 : vector<16x16xf32> to vector<16x16xbf16>
    %cst_184 = arith.constant dense<0.000000e+00> : vector<16x64xf32>
    %559 = tpu.matmul %558, %544, %cst_184 {dimension_numbers = #tpu.dot_dimension_numbers<[1], [0], [0], [1], [0, 0, 1, 1], [], []>} : vector<16x16xbf16>, vector<16x64xbf16>, vector<16x64xf32> -> vector<16x64xf32>
    %560 = arith.truncf %559 : vector<16x64xf32> to vector<16x64xbf16>
    %c1_185 = arith.constant 1 : index
    %c0_186 = arith.constant 0 : index
    %c0_187 = arith.constant 0 : index
    %561 = vector.load %arg10[%c1_185, %c0_186, %c0_187] : memref<2x128x128xbf16, #tpu.memory_space<vmem>>, vector<1x64x128xbf16>
    %562 = vector.shape_cast %561 : vector<1x64x128xbf16> to vector<64x128xbf16>
    %cst_188 = arith.constant dense<0.000000e+00> : vector<16x128xf32>
    %563 = tpu.matmul %560, %562, %cst_188 {dimension_numbers = #tpu.dot_dimension_numbers<[1], [0], [0], [1], [0, 0, 1, 1], [], []>} : vector<16x64xbf16>, vector<64x128xbf16>, vector<16x128xf32> -> vector<16x128xf32>
    %564 = arith.addf %538, %563 : vector<16x128xf32>
    %565 = vector.extract_strided_slice %484 {offsets = [16, 64], sizes = [16, 64], strides = [1, 1]} : vector<32x384xf32> to vector<16x64xf32>
    %566 = arith.truncf %565 : vector<16x64xf32> to vector<16x64xbf16>
    %567 = vector.extract_strided_slice %484 {offsets = [16, 192], sizes = [16, 64], strides = [1, 1]} : vector<32x384xf32> to vector<16x64xf32>
    %568 = arith.truncf %567 : vector<16x64xf32> to vector<16x64xbf16>
    %569 = vector.extract_strided_slice %484 {offsets = [16, 320], sizes = [16, 64], strides = [1, 1]} : vector<32x384xf32> to vector<16x64xf32>
    %570 = arith.truncf %569 : vector<16x64xf32> to vector<16x64xbf16>
    %cst_189 = arith.constant dense<0.000000e+00> : vector<16x16xf32>
    %571 = tpu.matmul %566, %568, %cst_189 {dimension_numbers = #tpu.dot_dimension_numbers<[1], [1], [0], [0], [0, 0, 1, 0], [], []>} : vector<16x64xbf16>, vector<16x64xbf16>, vector<16x16xf32> -> vector<16x16xf32>
    %cst_190 = arith.constant 1.250000e-01 : f32
    %572 = vector.broadcast %cst_190 : f32 to vector<16x16xf32>
    %573 = arith.mulf %571, %572 : vector<16x16xf32>
    %574 = arith.addf %573, %274 : vector<16x16xf32>
    %cst_191 = arith.constant dense<0xFF800000> : vector<16xf32>
    %575 = vector.multi_reduction <maximumf>, %574, %cst_191 [1] : vector<16x16xf32> to vector<16xf32>
    %576 = vector.shape_cast %575 : vector<16xf32> to vector<16x1xf32>
    %577 = vector.broadcast %576 : vector<16x1xf32> to vector<16x16xf32>
    %578 = arith.subf %574, %577 : vector<16x16xf32>
    %579 = math.exp %578 : vector<16x16xf32>
    %cst_192 = arith.constant dense<0.000000e+00> : vector<16xf32>
    %580 = vector.multi_reduction <add>, %579, %cst_192 [1] : vector<16x16xf32> to vector<16xf32>
    %581 = vector.shape_cast %580 : vector<16xf32> to vector<16x1xf32>
    %582 = vector.broadcast %581 : vector<16x1xf32> to vector<16x16xf32>
    %583 = arith.divf %579, %582 : vector<16x16xf32>
    %584 = arith.truncf %583 : vector<16x16xf32> to vector<16x16xbf16>
    %cst_193 = arith.constant dense<0.000000e+00> : vector<16x64xf32>
    %585 = tpu.matmul %584, %570, %cst_193 {dimension_numbers = #tpu.dot_dimension_numbers<[1], [0], [0], [1], [0, 0, 1, 1], [], []>} : vector<16x16xbf16>, vector<16x64xbf16>, vector<16x64xf32> -> vector<16x64xf32>
    %586 = arith.truncf %585 : vector<16x64xf32> to vector<16x64xbf16>
    %c1_194 = arith.constant 1 : index
    %c64_195 = arith.constant 64 : index
    %c0_196 = arith.constant 0 : index
    %587 = vector.load %arg10[%c1_194, %c64_195, %c0_196] : memref<2x128x128xbf16, #tpu.memory_space<vmem>>, vector<1x64x128xbf16>
    %588 = vector.shape_cast %587 : vector<1x64x128xbf16> to vector<64x128xbf16>
    %cst_197 = arith.constant dense<0.000000e+00> : vector<16x128xf32>
    %589 = tpu.matmul %586, %588, %cst_197 {dimension_numbers = #tpu.dot_dimension_numbers<[1], [0], [0], [1], [0, 0, 1, 1], [], []>} : vector<16x64xbf16>, vector<64x128xbf16>, vector<16x128xf32> -> vector<16x128xf32>
    %590 = arith.addf %564, %589 : vector<16x128xf32>
    %591 = tpu.concatenate %537, %590 in 0 : vector<16x128xf32>, vector<16x128xf32> -> vector<32x128xf32>
    %c1_198 = arith.constant 1 : index
    %c0_199 = arith.constant 0 : index
    %c0_200 = arith.constant 0 : index
    %592 = vector.load %arg11[%c1_198, %c0_199, %c0_200] : memref<2x1x128xf32, #tpu.memory_space<vmem>>, vector<1x1x128xf32>
    %593 = vector.shape_cast %592 : vector<1x1x128xf32> to vector<1x128xf32>
    %594 = vector.broadcast %593 : vector<1x128xf32> to vector<32x128xf32>
    %595 = arith.addf %591, %594 : vector<32x128xf32>
    %596 = arith.addf %595, %476 : vector<32x128xf32>
    %c1_201 = arith.constant 1 : index
    %c0_202 = arith.constant 0 : index
    %c0_203 = arith.constant 0 : index
    %597 = vector.load %arg12[%c1_201, %c0_202, %c0_203] : memref<2x1x128xf32, #tpu.memory_space<vmem>>, vector<1x1x128xf32>
    %598 = vector.shape_cast %597 : vector<1x1x128xf32> to vector<1x128xf32>
    %c1_204 = arith.constant 1 : index
    %c0_205 = arith.constant 0 : index
    %c0_206 = arith.constant 0 : index
    %599 = vector.load %arg13[%c1_204, %c0_205, %c0_206] : memref<2x1x128xf32, #tpu.memory_space<vmem>>, vector<1x1x128xf32>
    %600 = vector.shape_cast %599 : vector<1x1x128xf32> to vector<1x128xf32>
    %cst_207 = arith.constant dense<0.000000e+00> : vector<32xf32>
    %601 = vector.multi_reduction <add>, %596, %cst_207 [1] : vector<32x128xf32> to vector<32xf32>
    %602 = vector.shape_cast %601 : vector<32xf32> to vector<32x1xf32>
    %cst_208 = arith.constant 1.280000e+02 : f32
    %603 = vector.broadcast %cst_208 : f32 to vector<32x1xf32>
    %604 = arith.divf %602, %603 : vector<32x1xf32>
    %605 = vector.broadcast %604 : vector<32x1xf32> to vector<32x128xf32>
    %606 = arith.subf %596, %605 : vector<32x128xf32>
    %607 = arith.mulf %606, %606 : vector<32x128xf32>
    %cst_209 = arith.constant dense<0.000000e+00> : vector<32xf32>
    %608 = vector.multi_reduction <add>, %607, %cst_209 [1] : vector<32x128xf32> to vector<32xf32>
    %609 = vector.shape_cast %608 : vector<32xf32> to vector<32x1xf32>
    %cst_210 = arith.constant 1.280000e+02 : f32
    %610 = vector.broadcast %cst_210 : f32 to vector<32x1xf32>
    %611 = arith.divf %609, %610 : vector<32x1xf32>
    %612 = vector.broadcast %604 : vector<32x1xf32> to vector<32x128xf32>
    %613 = arith.subf %596, %612 : vector<32x128xf32>
    %cst_211 = arith.constant 9.99999996E-13 : f32
    %614 = vector.broadcast %cst_211 : f32 to vector<32x1xf32>
    %615 = arith.addf %611, %614 : vector<32x1xf32>
    %616 = math.rsqrt %615 : vector<32x1xf32>
    %617 = vector.broadcast %616 : vector<32x1xf32> to vector<32x128xf32>
    %618 = arith.mulf %613, %617 : vector<32x128xf32>
    %619 = vector.broadcast %598 : vector<1x128xf32> to vector<32x128xf32>
    %620 = arith.mulf %618, %619 : vector<32x128xf32>
    %621 = vector.broadcast %600 : vector<1x128xf32> to vector<32x128xf32>
    %622 = arith.addf %620, %621 : vector<32x128xf32>
    %623 = arith.truncf %622 : vector<32x128xf32> to vector<32x128xbf16>
    %c1_212 = arith.constant 1 : index
    %c0_213 = arith.constant 0 : index
    %c0_214 = arith.constant 0 : index
    %624 = vector.load %arg14[%c1_212, %c0_213, %c0_214] : memref<2x128x256xbf16, #tpu.memory_space<vmem>>, vector<1x128x256xbf16>
    %625 = vector.shape_cast %624 : vector<1x128x256xbf16> to vector<128x256xbf16>
    %cst_215 = arith.constant dense<0.000000e+00> : vector<32x256xf32>
    %626 = tpu.matmul %623, %625, %cst_215 {dimension_numbers = #tpu.dot_dimension_numbers<[1], [0], [0], [1], [0, 0, 1, 1], [], []>} : vector<32x128xbf16>, vector<128x256xbf16>, vector<32x256xf32> -> vector<32x256xf32>
    %c1_216 = arith.constant 1 : index
    %c0_217 = arith.constant 0 : index
    %c0_218 = arith.constant 0 : index
    %627 = vector.load %arg15[%c1_216, %c0_217, %c0_218] : memref<2x1x256xf32, #tpu.memory_space<vmem>>, vector<1x1x256xf32>
    %628 = vector.shape_cast %627 : vector<1x1x256xf32> to vector<1x256xf32>
    %629 = vector.broadcast %628 : vector<1x256xf32> to vector<32x256xf32>
    %630 = arith.addf %626, %629 : vector<32x256xf32>
    %cst_219 = arith.constant 5.000000e-01 : f32
    %631 = vector.broadcast %cst_219 : f32 to vector<32x256xf32>
    %632 = arith.mulf %631, %630 : vector<32x256xf32>
    %cst_220 = arith.constant 4.471500e-02 : f32
    %633 = vector.broadcast %cst_220 : f32 to vector<32x256xf32>
    %634 = arith.mulf %633, %630 : vector<32x256xf32>
    %635 = arith.mulf %634, %630 : vector<32x256xf32>
    %636 = arith.mulf %635, %630 : vector<32x256xf32>
    %637 = arith.addf %630, %636 : vector<32x256xf32>
    %cst_221 = arith.constant 0.797884583 : f32
    %638 = vector.broadcast %cst_221 : f32 to vector<32x256xf32>
    %639 = arith.mulf %638, %637 : vector<32x256xf32>
    %640 = math.tanh %639 : vector<32x256xf32>
    %cst_222 = arith.constant 1.000000e+00 : f32
    %641 = vector.broadcast %cst_222 : f32 to vector<32x256xf32>
    %642 = arith.addf %641, %640 : vector<32x256xf32>
    %643 = arith.mulf %632, %642 : vector<32x256xf32>
    %644 = arith.truncf %643 : vector<32x256xf32> to vector<32x256xbf16>
    %c1_223 = arith.constant 1 : index
    %c0_224 = arith.constant 0 : index
    %c0_225 = arith.constant 0 : index
    %645 = vector.load %arg16[%c1_223, %c0_224, %c0_225] : memref<2x256x128xbf16, #tpu.memory_space<vmem>>, vector<1x256x128xbf16>
    %646 = vector.shape_cast %645 : vector<1x256x128xbf16> to vector<256x128xbf16>
    %cst_226 = arith.constant dense<0.000000e+00> : vector<32x128xf32>
    %647 = tpu.matmul %644, %646, %cst_226 {dimension_numbers = #tpu.dot_dimension_numbers<[1], [0], [0], [1], [0, 0, 1, 1], [], []>} : vector<32x256xbf16>, vector<256x128xbf16>, vector<32x128xf32> -> vector<32x128xf32>
    %c1_227 = arith.constant 1 : index
    %c0_228 = arith.constant 0 : index
    %c0_229 = arith.constant 0 : index
    %648 = vector.load %arg17[%c1_227, %c0_228, %c0_229] : memref<2x1x128xf32, #tpu.memory_space<vmem>>, vector<1x1x128xf32>
    %649 = vector.shape_cast %648 : vector<1x1x128xf32> to vector<1x128xf32>
    %650 = vector.broadcast %649 : vector<1x128xf32> to vector<32x128xf32>
    %651 = arith.addf %647, %650 : vector<32x128xf32>
    %652 = arith.addf %651, %622 : vector<32x128xf32>
    %c1_230 = arith.constant 1 : index
    %c0_231 = arith.constant 0 : index
    %c0_232 = arith.constant 0 : index
    %653 = vector.load %arg18[%c1_230, %c0_231, %c0_232] : memref<2x1x128xf32, #tpu.memory_space<vmem>>, vector<1x1x128xf32>
    %654 = vector.shape_cast %653 : vector<1x1x128xf32> to vector<1x128xf32>
    %c1_233 = arith.constant 1 : index
    %c0_234 = arith.constant 0 : index
    %c0_235 = arith.constant 0 : index
    %655 = vector.load %arg19[%c1_233, %c0_234, %c0_235] : memref<2x1x128xf32, #tpu.memory_space<vmem>>, vector<1x1x128xf32>
    %656 = vector.shape_cast %655 : vector<1x1x128xf32> to vector<1x128xf32>
    %cst_236 = arith.constant dense<0.000000e+00> : vector<32xf32>
    %657 = vector.multi_reduction <add>, %652, %cst_236 [1] : vector<32x128xf32> to vector<32xf32>
    %658 = vector.shape_cast %657 : vector<32xf32> to vector<32x1xf32>
    %cst_237 = arith.constant 1.280000e+02 : f32
    %659 = vector.broadcast %cst_237 : f32 to vector<32x1xf32>
    %660 = arith.divf %658, %659 : vector<32x1xf32>
    %661 = vector.broadcast %660 : vector<32x1xf32> to vector<32x128xf32>
    %662 = arith.subf %652, %661 : vector<32x128xf32>
    %663 = arith.mulf %662, %662 : vector<32x128xf32>
    %cst_238 = arith.constant dense<0.000000e+00> : vector<32xf32>
    %664 = vector.multi_reduction <add>, %663, %cst_238 [1] : vector<32x128xf32> to vector<32xf32>
    %665 = vector.shape_cast %664 : vector<32xf32> to vector<32x1xf32>
    %cst_239 = arith.constant 1.280000e+02 : f32
    %666 = vector.broadcast %cst_239 : f32 to vector<32x1xf32>
    %667 = arith.divf %665, %666 : vector<32x1xf32>
    %668 = vector.broadcast %660 : vector<32x1xf32> to vector<32x128xf32>
    %669 = arith.subf %652, %668 : vector<32x128xf32>
    %cst_240 = arith.constant 9.99999996E-13 : f32
    %670 = vector.broadcast %cst_240 : f32 to vector<32x1xf32>
    %671 = arith.addf %667, %670 : vector<32x1xf32>
    %672 = math.rsqrt %671 : vector<32x1xf32>
    %673 = vector.broadcast %672 : vector<32x1xf32> to vector<32x128xf32>
    %674 = arith.mulf %669, %673 : vector<32x128xf32>
    %675 = vector.broadcast %654 : vector<1x128xf32> to vector<32x128xf32>
    %676 = arith.mulf %674, %675 : vector<32x128xf32>
    %677 = vector.broadcast %656 : vector<1x128xf32> to vector<32x128xf32>
    %678 = arith.addf %676, %677 : vector<32x128xf32>
    %679 = vector.extract_strided_slice %678 {offsets = [0, 0], sizes = [1, 128], strides = [1, 1]} : vector<32x128xf32> to vector<1x128xf32>
    %680 = vector.extract_strided_slice %678 {offsets = [16, 0], sizes = [1, 128], strides = [1, 1]} : vector<32x128xf32> to vector<1x128xf32>
    %681 = tpu.concatenate %679, %680 in 0 : vector<1x128xf32>, vector<1x128xf32> -> vector<2x128xf32>
    %682 = arith.truncf %681 : vector<2x128xf32> to vector<2x128xbf16>
    %c0_241 = arith.constant 0 : index
    %c0_242 = arith.constant 0 : index
    %683 = vector.load %arg20[%c0_241, %c0_242] : memref<128x128xbf16, #tpu.memory_space<vmem>>, vector<128x128xbf16>
    %cst_243 = arith.constant dense<0.000000e+00> : vector<2x128xf32>
    %684 = tpu.matmul %682, %683, %cst_243 {dimension_numbers = #tpu.dot_dimension_numbers<[1], [0], [0], [1], [0, 0, 1, 1], [], []>} : vector<2x128xbf16>, vector<128x128xbf16>, vector<2x128xf32> -> vector<2x128xf32>
    %c0_244 = arith.constant 0 : index
    %c0_245 = arith.constant 0 : index
    %685 = vector.load %arg21[%c0_244, %c0_245] : memref<1x128xf32, #tpu.memory_space<vmem>>, vector<1x128xf32>
    %686 = vector.broadcast %685 : vector<1x128xf32> to vector<2x128xf32>
    %687 = arith.addf %684, %686 : vector<2x128xf32>
    %688 = math.tanh %687 : vector<2x128xf32>
    %689 = arith.truncf %688 : vector<2x128xf32> to vector<2x128xbf16>
    %c0_246 = arith.constant 0 : index
    %c0_247 = arith.constant 0 : index
    %690 = vector.load %arg22[%c0_246, %c0_247] : memref<128x128xbf16, #tpu.memory_space<vmem>>, vector<128x128xbf16>
    %cst_248 = arith.constant dense<0.000000e+00> : vector<2x128xf32>
    %691 = tpu.matmul %689, %690, %cst_248 {dimension_numbers = #tpu.dot_dimension_numbers<[1], [0], [0], [1], [0, 0, 1, 1], [], []>} : vector<2x128xbf16>, vector<128x128xbf16>, vector<2x128xf32> -> vector<2x128xf32>
    %c0_249 = arith.constant 0 : index
    %c0_250 = arith.constant 0 : index
    %692 = vector.load %arg23[%c0_249, %c0_250] : memref<1x128xf32, #tpu.memory_space<vmem>>, vector<1x128xf32>
    %693 = vector.broadcast %692 : vector<1x128xf32> to vector<2x128xf32>
    %694 = arith.addf %691, %693 : vector<2x128xf32>
    %c0_251 = arith.constant 0 : index
    %c0_252 = arith.constant 0 : index
    %695 = vector.load %arg24[%c0_251, %c0_252] : memref<2x128xf32, #tpu.memory_space<vmem>>, vector<2x128xf32>
    tpu.vector_store %arg24[%c0_251, %c0_252], %694 {strides = array<i32>} : memref<2x128xf32, #tpu.memory_space<vmem>>, vector<2x128xf32>,
    return
  }
  func.func @transform_0(%arg0: i32, %arg1: memref<2x16xi32, #tpu.memory_space<smem>>) -> (i32, i32) {
    %c0_i32 = arith.constant 0 : i32
    %c0_i32_0 = arith.constant 0 : i32
    return %arg0, %c0_i32 : i32, i32
  }
  func.func @transform_1(%arg0: i32, %arg1: memref<2x16xi32, #tpu.memory_space<smem>>) -> (i32, i32) {
    %c0_i32 = arith.constant 0 : i32
    %c0_i32_0 = arith.constant 0 : i32
    %c0_i32_1 = arith.constant 0 : i32
    return %c0_i32, %c0_i32_0 : i32, i32
  }
  func.func @transform_2(%arg0: i32, %arg1: memref<2x16xi32, #tpu.memory_space<smem>>) -> (i32, i32) {
    %c0_i32 = arith.constant 0 : i32
    %c0_i32_0 = arith.constant 0 : i32
    %c0_i32_1 = arith.constant 0 : i32
    return %c0_i32, %c0_i32_0 : i32, i32
  }
  func.func @transform_3(%arg0: i32, %arg1: memref<2x16xi32, #tpu.memory_space<smem>>) -> (i32, i32) {
    %c0_i32 = arith.constant 0 : i32
    %c0_i32_0 = arith.constant 0 : i32
    %c0_i32_1 = arith.constant 0 : i32
    return %c0_i32, %c0_i32_0 : i32, i32
  }
  func.func @transform_4(%arg0: i32, %arg1: memref<2x16xi32, #tpu.memory_space<smem>>) -> (i32, i32) {
    %c0_i32 = arith.constant 0 : i32
    %c0_i32_0 = arith.constant 0 : i32
    %c0_i32_1 = arith.constant 0 : i32
    return %c0_i32, %c0_i32_0 : i32, i32
  }
  func.func @transform_5(%arg0: i32, %arg1: memref<2x16xi32, #tpu.memory_space<smem>>) -> (i32, i32) {
    %c0_i32 = arith.constant 0 : i32
    %c0_i32_0 = arith.constant 0 : i32
    %c0_i32_1 = arith.constant 0 : i32
    return %c0_i32, %c0_i32_0 : i32, i32
  }
  func.func @transform_6(%arg0: i32, %arg1: memref<2x16xi32, #tpu.memory_space<smem>>) -> (i32, i32, i32) {
    %c0_i32 = arith.constant 0 : i32
    %c0_i32_0 = arith.constant 0 : i32
    %c0_i32_1 = arith.constant 0 : i32
    %c0_i32_2 = arith.constant 0 : i32
    return %c0_i32, %c0_i32_0, %c0_i32_1 : i32, i32, i32
  }
  func.func @transform_7(%arg0: i32, %arg1: memref<2x16xi32, #tpu.memory_space<smem>>) -> (i32, i32, i32) {
    %c0_i32 = arith.constant 0 : i32
    %c0_i32_0 = arith.constant 0 : i32
    %c0_i32_1 = arith.constant 0 : i32
    %c0_i32_2 = arith.constant 0 : i32
    return %c0_i32, %c0_i32_0, %c0_i32_1 : i32, i32, i32
  }
  func.func @transform_8(%arg0: i32, %arg1: memref<2x16xi32, #tpu.memory_space<smem>>) -> (i32, i32, i32) {
    %c0_i32 = arith.constant 0 : i32
    %c0_i32_0 = arith.constant 0 : i32
    %c0_i32_1 = arith.constant 0 : i32
    %c0_i32_2 = arith.constant 0 : i32
    return %c0_i32, %c0_i32_0, %c0_i32_1 : i32, i32, i32
  }
  func.func @transform_9(%arg0: i32, %arg1: memref<2x16xi32, #tpu.memory_space<smem>>) -> (i32, i32, i32) {
    %c0_i32 = arith.constant 0 : i32
    %c0_i32_0 = arith.constant 0 : i32
    %c0_i32_1 = arith.constant 0 : i32
    %c0_i32_2 = arith.constant 0 : i32
    return %c0_i32, %c0_i32_0, %c0_i32_1 : i32, i32, i32
  }
  func.func @transform_10(%arg0: i32, %arg1: memref<2x16xi32, #tpu.memory_space<smem>>) -> (i32, i32, i32) {
    %c0_i32 = arith.constant 0 : i32
    %c0_i32_0 = arith.constant 0 : i32
    %c0_i32_1 = arith.constant 0 : i32
    %c0_i32_2 = arith.constant 0 : i32
    return %c0_i32, %c0_i32_0, %c0_i32_1 : i32, i32, i32
  }
  func.func @transform_11(%arg0: i32, %arg1: memref<2x16xi32, #tpu.memory_space<smem>>) -> (i32, i32, i32) {
    %c0_i32 = arith.constant 0 : i32
    %c0_i32_0 = arith.constant 0 : i32
    %c0_i32_1 = arith.constant 0 : i32
    %c0_i32_2 = arith.constant 0 : i32
    return %c0_i32, %c0_i32_0, %c0_i32_1 : i32, i32, i32
  }
  func.func @transform_12(%arg0: i32, %arg1: memref<2x16xi32, #tpu.memory_space<smem>>) -> (i32, i32, i32) {
    %c0_i32 = arith.constant 0 : i32
    %c0_i32_0 = arith.constant 0 : i32
    %c0_i32_1 = arith.constant 0 : i32
    %c0_i32_2 = arith.constant 0 : i32
    return %c0_i32, %c0_i32_0, %c0_i32_1 : i32, i32, i32
  }
  func.func @transform_13(%arg0: i32, %arg1: memref<2x16xi32, #tpu.memory_space<smem>>) -> (i32, i32, i32) {
    %c0_i32 = arith.constant 0 : i32
    %c0_i32_0 = arith.constant 0 : i32
    %c0_i32_1 = arith.constant 0 : i32
    %c0_i32_2 = arith.constant 0 : i32
    return %c0_i32, %c0_i32_0, %c0_i32_1 : i32, i32, i32
  }
  func.func @transform_14(%arg0: i32, %arg1: memref<2x16xi32, #tpu.memory_space<smem>>) -> (i32, i32, i32) {
    %c0_i32 = arith.constant 0 : i32
    %c0_i32_0 = arith.constant 0 : i32
    %c0_i32_1 = arith.constant 0 : i32
    %c0_i32_2 = arith.constant 0 : i32
    return %c0_i32, %c0_i32_0, %c0_i32_1 : i32, i32, i32
  }
  func.func @transform_15(%arg0: i32, %arg1: memref<2x16xi32, #tpu.memory_space<smem>>) -> (i32, i32, i32) {
    %c0_i32 = arith.constant 0 : i32
    %c0_i32_0 = arith.constant 0 : i32
    %c0_i32_1 = arith.constant 0 : i32
    %c0_i32_2 = arith.constant 0 : i32
    return %c0_i32, %c0_i32_0, %c0_i32_1 : i32, i32, i32
  }
  func.func @transform_16(%arg0: i32, %arg1: memref<2x16xi32, #tpu.memory_space<smem>>) -> (i32, i32, i32) {
    %c0_i32 = arith.constant 0 : i32
    %c0_i32_0 = arith.constant 0 : i32
    %c0_i32_1 = arith.constant 0 : i32
    %c0_i32_2 = arith.constant 0 : i32
    return %c0_i32, %c0_i32_0, %c0_i32_1 : i32, i32, i32
  }
  func.func @transform_17(%arg0: i32, %arg1: memref<2x16xi32, #tpu.memory_space<smem>>) -> (i32, i32, i32) {
    %c0_i32 = arith.constant 0 : i32
    %c0_i32_0 = arith.constant 0 : i32
    %c0_i32_1 = arith.constant 0 : i32
    %c0_i32_2 = arith.constant 0 : i32
    return %c0_i32, %c0_i32_0, %c0_i32_1 : i32, i32, i32
  }
  func.func @transform_18(%arg0: i32, %arg1: memref<2x16xi32, #tpu.memory_space<smem>>) -> (i32, i32) {
    %c0_i32 = arith.constant 0 : i32
    %c0_i32_0 = arith.constant 0 : i32
    %c0_i32_1 = arith.constant 0 : i32
    return %c0_i32, %c0_i32_0 : i32, i32
  }
  func.func @transform_19(%arg0: i32, %arg1: memref<2x16xi32, #tpu.memory_space<smem>>) -> (i32, i32) {
    %c0_i32 = arith.constant 0 : i32
    %c0_i32_0 = arith.constant 0 : i32
    %c0_i32_1 = arith.constant 0 : i32
    return %c0_i32, %c0_i32_0 : i32, i32
  }
  func.func @transform_20(%arg0: i32, %arg1: memref<2x16xi32, #tpu.memory_space<smem>>) -> (i32, i32) {
    %c0_i32 = arith.constant 0 : i32
    %c0_i32_0 = arith.constant 0 : i32
    %c0_i32_1 = arith.constant 0 : i32
    return %c0_i32, %c0_i32_0 : i32, i32
  }
  func.func @transform_21(%arg0: i32, %arg1: memref<2x16xi32, #tpu.memory_space<smem>>) -> (i32, i32) {
    %c0_i32 = arith.constant 0 : i32
    %c0_i32_0 = arith.constant 0 : i32
    %c0_i32_1 = arith.constant 0 : i32
    return %c0_i32, %c0_i32_0 : i32, i32
  }
  func.func @transform_22(%arg0: i32, %arg1: memref<2x16xi32, #tpu.memory_space<smem>>) -> (i32, i32) {
    %c0_i32 = arith.constant 0 : i32
    %c0_i32_0 = arith.constant 0 : i32
    return %arg0, %c0_i32 : i32, i32
  }
}

</mosaic_0001>

<bundles_post_ra>
// kernel: tpu_custom_call.1
= control target key start
LH: loop header
LB: loop body
LE: loop exit
PB: predicated region body
PF: predicated region fallthrough
CT: control target
= control target key end

     0   :  { %s5629_s25 = smov [#allocation3]   ;;  %s7496_s0 = inlined_call_operand.hbm [shape: s32[2,16], index: 0, kind: input, shape index: {}]   ;;  %s7497_s1 = inlined_call_operand.hbm [shape: f32[2,16], index: 1, kind: input, shape index: {}]   ;;  %s7498_s2 = inlined_call_operand.hbm [shape: f32[512,128], index: 2, kind: input, shape index: {}]   ;;  %s7499_s3 = inlined_call_operand.hbm [shape: f32[64,128], index: 3, kind: input, shape index: {}]   ;;  %s7500_s4 = inlined_call_operand.hbm [shape: f32[2,128], index: 4, kind: input, shape index: {}]   ;;  %s7501_s5 = inlined_call_operand.hbm [shape: f32[1,128], index: 5, kind: input, shape index: {}]   ;;  %s7502_s6 = inlined_call_operand.hbm [shape: f32[1,128], index: 6, kind: input, shape index: {}]   ;;  %s7503_s7 = inlined_call_operand.hbm [shape: bf16[2,128,384], index: 7, kind: input, shape index: {}]   ;;  %s7504_s8 = inlined_call_operand.vmem [shape: f32[2,1,384], index: 8, kind: input, shape index: {}]   ;;  %s7505_s9 = inlined_call_operand.hbm [shape: bf16[2,128,128], index: 9, kind: input, shape index: {}]   ;;  %s7506_s10 = inlined_call_operand.hbm [shape: f32[2,1,128], index: 10, kind: input, shape index: {}]   ;;  %s7507_s11 = inlined_call_operand.hbm [shape: f32[2,1,128], index: 11, kind: input, shape index: {}]   ;;  %s7508_s12 = inlined_call_operand.hbm [shape: f32[2,1,128], index: 12, kind: input, shape index: {}]   ;;  %s7509_s13 = inlined_call_operand.hbm [shape: bf16[2,128,256], index: 13, kind: input, shape index: {}]   ;;  %s7510_s14 = inlined_call_operand.vmem [shape: f32[2,1,256], index: 14, kind: input, shape index: {}]   ;;  %s7511_s15 = inlined_call_operand.hbm [shape: bf16[2,256,128], index: 15, kind: input, shape index: {}]   ;;  %s7512_s16 = inlined_call_operand.vmem [shape: f32[2,1,128], index: 16, kind: input, shape index: {}]   ;;  %s7513_s17 = inlined_call_operand.vmem [shape: f32[2,1,128], index: 17, kind: input, shape index: {}]   ;;  %s7514_s18 = inlined_call_operand.vmem [shape: f32[2,1,128], index: 18, kind: input, shape index: {}]   ;;  %s7515_s19 = inlined_call_operand.hbm [shape: bf16[128,128], index: 19, kind: input, shape index: {}]   ;;  %s7516_s20 = inlined_call_operand.vmem [shape: f32[1,128], index: 20, kind: input, shape index: {}]   ;;  %s7517_s21 = inlined_call_operand.hbm [shape: bf16[128,128], index: 21, kind: input, shape index: {}]   ;;  %s7518_s22 = inlined_call_operand.vmem [shape: f32[1,128], index: 22, kind: input, shape index: {}]   ;;  %s7519_s23 = inlined_call_operand.hbm [shape: f32[2,128], index: 23, kind: output, shape index: {}]  }
   0x1   :  { %7560 = sst [smem:[#allocation67_spill]] %s7496_s0 }
   0x2   :  { %7561 = sst [smem:[#allocation68_spill]] %s7497_s1 }
   0x3   :  { %7562 = sst [smem:[#allocation69_spill]] %s7498_s2 }
   0x4   :  { %7563 = sst [smem:[#allocation70_spill]] %s7499_s3 }
   0x5   :  { %7564 = sst [smem:[#allocation71_spill]] %s7500_s4 }
   0x6   :  { %7565 = sst [smem:[#allocation72_spill]] %s7501_s5 }
   0x7   :  { %7566 = sst [smem:[#allocation73_spill]] %s7502_s6 }
   0x8   :  { %7567 = sst [smem:[#allocation74_spill]] %s7503_s7 }
   0x9   :  { %7568 = sst [smem:[#allocation75_spill]] %s7513_s17 }
   0xa   :  { %s7569_s24 = sld [smem:[#allocation67_spill]] }
  0x10   :  { %s29_s17 = sshll.u32 %s7569_s24, 4  ;;  %s30_s17 = int_to_ptr.hbm [resolvable:$true] %s29_s17 }
  0x11   :  { %32 = dma.hbm_to_smem %s30_s17, 32, %s5629_s25, [#allocation2] }
  0x12   :  { %5609 = dma.done.wait [#allocation2], 32 }
  0x13   :  { %5610 = vsyncadd [#allocation2], 4294967264 }
  0x14   :  { %35 = sfence }
  0x15   :  { %36 = vsyncpa [#allocation5], 0 }
  0x16   :  { %37 = vsyncpa [#allocation8], 0 }
  0x17   :  { %38 = vsyncpa [#allocation11], 0 }
  0x18   :  { %39 = vsyncpa [#allocation14], 0 }
  0x19   :  { %40 = vsyncpa [#allocation17], 0 }
  0x1a   :  { %41 = vsyncpa [#allocation20], 0 }
  0x1b   :  { %42 = vsyncpa [#allocation23], 0 }
  0x1c   :  { %43 = vsyncpa [#allocation26], 0  ;;  %s7570_s26 = sld [smem:[#allocation69_spill]] }
  0x22   :  { %s60_s2 = sshll.u32 %s7570_s26, 4  ;;  %s61_s2 = int_to_ptr.hbm [resolvable:$true] %s60_s2 }
  0x23   :  { %44 = vsyncpa [#allocation6], 0  ;;  %s5630_s6 = smov [#allocation7]   ;;  %s7571_s28 = sld [smem:[#allocation71_spill]] }
  0x24   :  { %s62_s27 = sshll.u32 %s5630_s6, 4  ;;  %s7521_s3 = smov 128   ;;  %s63_s27 = int_to_ptr.vmem [resolvable:$true] %s62_s27 }
  0x25   :  { %s5632_s0 = smov 8   ;;  %s5633_s4 = smov [#allocation10]  }
  0x26   :  { %68 = dma.hbm_to_vmem [thread:$0]  %s61_s2, 8192, %s63_s27, [#allocation8], %s7521_s3, %s7521_s3, %s5632_s0  }
  0x27   :  { %s89_s30 = sshll.u32 %s5633_s4, 4  ;;  %s7572_s5 = sld [smem:[#allocation73_spill]]  ;;  %s90_s30 = int_to_ptr.vmem [resolvable:$true] %s89_s30 }
  0x28   :  { %s134_s17 = sshll.u32 %s7505_s9, 4  ;;  %s5634_s7 = smov [#allocation13]   ;;  %s135_s17 = int_to_ptr.hbm [resolvable:$true] %s134_s17 }
  0x29   :  { %s87_s29 = sshll.u32 %s7571_s28, 4  ;;  %s111_s28 = sshll.u32 %s5634_s7, 4  ;;  %s88_s29 = int_to_ptr.hbm [resolvable:$true] %s87_s29  ;;  %s112_s28 = int_to_ptr.vmem [resolvable:$true] %s111_s28 }
  0x2a   :  { %92 = dma.hbm_to_vmem [thread:$0]  %s88_s29, 32, %s90_s30, [#allocation11]  }
  0x2b   :  { %s5635_s2 = smov [#allocation16]   ;;  %s7523_s4 = smov 64  }
  0x2c   :  { %s136_s27 = sshll.u32 %s5635_s2, 4  ;;  %s7527_s3 = smov 4   ;;  %s137_s27 = int_to_ptr.vmem [resolvable:$true] %s136_s27 }
  0x2d   :  { %s109_s1 = sshll.u32 %s7572_s5, 4  ;;  %s160_s30 = sshll.u32 %s7507_s11, 4  ;;  %s110_s1 = int_to_ptr.hbm [resolvable:$true] %s109_s1  ;;  %s161_s30 = int_to_ptr.hbm [resolvable:$true] %s160_s30 }
  0x2e   :  { %114 = dma.hbm_to_vmem [thread:$0]  %s110_s1, 16, %s112_s28, [#allocation14]  }
  0x2f   :  { %142 = dma.hbm_to_vmem [thread:$0]  %s135_s17, 2048, %s137_s27, [#allocation17], %s7523_s4, %s7523_s4, %s7527_s3  }
  0x30   :  { %s5638_s9 = smov [#allocation19]   ;;  %s186_s1 = sshll.u32 %s7509_s13, 4  ;;  %s187_s1 = int_to_ptr.hbm [resolvable:$true] %s186_s1 }
  0x31   :  { %s162_s25 = sshll.u32 %s5638_s9, 4  ;;  %s7525_s6 = smov 16   ;;  %s163_s25 = int_to_ptr.vmem [resolvable:$true] %s162_s25 }
  0x32   :  { %s5640_s7 = smov 1   ;;  %s5641_s17 = smov [#allocation22]  }
  0x33   :  { %168 = dma.hbm_to_vmem [thread:$0]  %s161_s30, 32, %s163_s25, [#allocation20], %s7525_s6, %s7525_s6, %s5640_s7  }
  0x34   :  { %s188_s28 = sshll.u32 %s5641_s17, 4  ;;  %s220_s11 = sshll.u32 %s7515_s19, 4  ;;  %s189_s28 = int_to_ptr.vmem [resolvable:$true] %s188_s28  ;;  %s221_s11 = int_to_ptr.hbm [resolvable:$true] %s220_s11 }
  0x35   :  { %s7573_s24 = smov 128   ;;  %s7574_s9 = sld [smem:[#allocation68_spill]] }
  0x36   :  { %194 = dma.hbm_to_vmem [thread:$0]  %s187_s1, 4096, %s189_s28, [#allocation23], %s7573_s24, %s7573_s24, %s5632_s0  }
  0x37   :  { %s5642_s26 = smov [#allocation25]   ;;  %s7575_s30 = smov 64  }
  0x38   :  { %s222_s4 = sshll.u32 %s5642_s26, 4  ;;  %s5643_s25 = smov [#allocation4]   ;;  %s223_s4 = int_to_ptr.vmem [resolvable:$true] %s222_s4 }
  0x39   :  { %228 = dma.hbm_to_vmem [thread:$0]  %s221_s11, 1024, %s223_s4, [#allocation26], %s7575_s30, %s7575_s30, %s7527_s3  }
  0x3a   :  { %s52_s19 = sshll.u32 %s5643_s25, 4  ;;  %s7576_s27 = sld [smem:[#allocation70_spill]]  ;;  %s53_s19 = int_to_ptr.vmem [resolvable:$true] %s52_s19 }
  0x3b   :  { %s50_s5 = sshll.u32 %s7574_s9, 4  ;;  %s7577_s13 = sld [smem:[#allocation72_spill]]  ;;  %s51_s5 = int_to_ptr.hbm [resolvable:$true] %s50_s5 }
  0x3c   :  { %55 = dma.hbm_to_vmem [thread:$0]  %s51_s5, 32, %s53_s19, [#allocation5]  }
  0x3d   :  { %s5644_s9 = smov [#allocation9]   ;;  %s5645_s4 = smov [#allocation12]  }
  0x3e   :  { %s75_s26 = sshll.u32 %s5644_s9, 4  ;;  %s100_s11 = sshll.u32 %s5645_s4, 4  ;;  %s76_s26 = int_to_ptr.vmem [resolvable:$true] %s75_s26  ;;  %s101_s11 = int_to_ptr.vmem [resolvable:$true] %s100_s11 }
  0x3f   :  { %s7578_s2 = sld [smem:[#allocation74_spill]]  ;;  %s5646_s5 = smov [#allocation15]  }
  0x40   :  { %s73_s6 = sshll.u32 %s7576_s27, 4  ;;  %s121_s19 = sshll.u32 %s5646_s5, 4  ;;  %s74_s6 = int_to_ptr.hbm [resolvable:$true] %s73_s6  ;;  %s122_s19 = int_to_ptr.vmem [resolvable:$true] %s121_s19 }
  0x41   :  { %s98_s29 = sshll.u32 %s7577_s13, 4  ;;  %s147_s13 = sshll.u32 %s7506_s10, 4  ;;  %s99_s29 = int_to_ptr.hbm [resolvable:$true] %s98_s29  ;;  %s148_s13 = int_to_ptr.hbm [resolvable:$true] %s147_s13 }
  0x42   :  { %81 = dma.hbm_to_vmem [thread:$0]  %s74_s6, 1024, %s76_s26, [#allocation8], %s7573_s24, %s7573_s24, %s5632_s0  }
  0x43   :  { %103 = dma.hbm_to_vmem [thread:$0]  %s99_s29, 16, %s101_s11, [#allocation11]  }
  0x44   :  { %s5647_s9 = smov 192   ;;  %s5648_s3 = smov 12  }
  0x45   :  { %s119_s27 = sshll.u32 %s7578_s2, 4  ;;  %s5649_s0 = smov [#allocation18]   ;;  %s120_s27 = int_to_ptr.hbm [resolvable:$true] %s119_s27 }
  0x46   :  { %127 = dma.hbm_to_vmem [thread:$0]  %s120_s27, 6144, %s122_s19, [#allocation14], %s5647_s9, %s5647_s9, %s5648_s3  }
  0x47   :  { %s149_s6 = sshll.u32 %s5649_s0, 4  ;;  %s173_s4 = sshll.u32 %s7508_s12, 4  ;;  %s150_s6 = int_to_ptr.vmem [resolvable:$true] %s149_s6  ;;  %s174_s4 = int_to_ptr.hbm [resolvable:$true] %s173_s4 }
  0x48   :  { %s7579_s29 = smov 16   ;;  %s201_s10 = sshll.u32 %s7511_s15, 4  ;;  %s202_s10 = int_to_ptr.hbm [resolvable:$true] %s201_s10 }
  0x49   :  { %155 = dma.hbm_to_vmem [thread:$0]  %s148_s13, 32, %s150_s6, [#allocation17], %s7579_s29, %s7579_s29, %s5640_s7  }
  0x4a   :  { %s5650_s17 = smov [#allocation21]   ;;  %s5651_s3 = smov [#allocation24]  }
  0x4b   :  { %s175_s2 = sshll.u32 %s5650_s17, 4  ;;  %s203_s12 = sshll.u32 %s5651_s3, 4  ;;  %s176_s2 = int_to_ptr.vmem [resolvable:$true] %s175_s2  ;;  %s204_s12 = int_to_ptr.vmem [resolvable:$true] %s203_s12 }
  0x4c   :  { %181 = dma.hbm_to_vmem [thread:$0]  %s174_s4, 32, %s176_s2, [#allocation20], %s7579_s29, %s7579_s29, %s5640_s7  }
  0x4d   :  { %s235_s19 = sshll.u32 %s7517_s21, 4  ;;  %s7580_s1 = smov 4   ;;  %s236_s19 = int_to_ptr.hbm [resolvable:$true] %s235_s19 }
  0x4e   :  { %209 = dma.hbm_to_vmem [thread:$0]  %s202_s10, 4096, %s204_s12, [#allocation23], %s7575_s30, %s7575_s30, %s7580_s1  }
  0x4f   :  { %s5652_s15 = smov [#allocation27]  }
  0x50   :  { %s237_s28 = sshll.u32 %s5652_s15, 4  ;;  %s238_s28 = int_to_ptr.vmem [resolvable:$true] %s237_s28 }
  0x51   :  { %243 = dma.hbm_to_vmem [thread:$0]  %s236_s19, 1024, %s238_s28, [#allocation26], %s7575_s30, %s7575_s30, %s7580_s1  }
  0x52   :  { %5611 = dma.done.wait [#allocation5], 32  }
  0x53   :  { %5612 = vsyncadd [#allocation5], 4294967264 }
  0x54   :  { %5613 = dma.done.wait [#allocation8], 9216  }
  0x55   :  { %5614 = vsyncadd [#allocation8], 4294958080 }
  0x56   :  { %5615 = dma.done.wait [#allocation11], 48  }
  0x57   :  { %5616 = vsyncadd [#allocation11], 4294967248 }
  0x58   :  { %5617 = dma.done.wait [#allocation14], 6160  }
  0x59   :  { %5618 = vsyncadd [#allocation14], 4294961136 }
  0x5a   :  { %5619 = dma.done.wait [#allocation17], 2080  }
  0x5b   :  { %5620 = vsyncadd [#allocation17], 4294965216 }
  0x5c   :  { %5621 = dma.done.wait [#allocation20], 64  }
  0x5d   :  { %5622 = vsyncadd [#allocation20], 4294967232 }
  0x5e   :  { %5623 = dma.done.wait [#allocation23], 8192  }
  0x5f   :  { %5624 = vsyncadd [#allocation23], 4294959104 }
  0x60   :  { %5625 = dma.done.wait [#allocation26], 2048  }
  0x61   :  { %5626 = vsyncadd [#allocation26], 4294965248  ;;  %v308_v0 = vlaneseq  ;;  %s381_s21 = sld [smem:[#allocation3]]  ;;  %vm620_vm0 = vcmask 1040384   ;;  %vm625_vm1 = vcmask 1041408   ;;  %vm630_vm2 = vcmask 1042432  }
  0x62   :  { %s4129_s7 = sld [smem:[#allocation3 + $0x1]]  ;;  %vm635_vm3 = vcmask 1043456   ;;  %vm640_vm4 = vcmask 1044480   ;;  %vm645_vm5 = vcmask 1045504   ;;  %v5867_v3 = vld [vmem:[#allocation7 + $0x178] sm:$0xff]  ;;  %v5871_v5 = vld [vmem:[#allocation7 + $0x170] sm:$0xff] }
  0x63   :  { %v5854_v1 = vand.u32 127, %v308_v0  ;;  %s5856_s13 = sld [smem:[#allocation3 + $0x2]]  ;;  %v5869_v4 = vld [vmem:[#allocation7 + $0x78] sm:$0xff]  ;;  %729 = vmatpush.msra.mxu2 %v5867_v3  ;;  %v5884_v9 = vld [vmem:[#allocation7 + $0x70] sm:$0xff]  ;;  %vm650_vm7 = vcmask 1046528   ;;  %v5898_v12 = vld [vmem:[#allocation7 + $0x168] sm:$0xff] }
  0x64   :  { %s5861_s9 = sld [smem:[#allocation3 + $0x3]]  ;;  %683 = vmatpush.msra.mxu0 %v5869_v4  ;;  %v5882_v8 = vld [vmem:[#allocation7 + $0x1f8] sm:$0xff]  ;;  %v5900_v13 = vld [vmem:[#allocation7 + $0x1f0] sm:$0xff]  ;;  %v5902_v14 = vld [vmem:[#allocation7 + $0x68] sm:$0xff]  ;;  %v7537_v15 = vmov 0.0  }
  0x65   :  { %v5859_v2 = vadd.s32 256, %v5854_v1  ;;  %s5863_s0 = sld [smem:[#allocation3 + $0x4]]  ;;  %v5878_v7 = vadd.s32 384, %v5854_v1  ;;  %v5886_v10 = vld [vmem:[#allocation7 + $0xf8] sm:$0xff]  ;;  %752 = vmatpush.msra.mxu3 %v5882_v8  ;;  %730 = vmatpush.msra.mxu2 %v5871_v5  ;;  %v5915_v19 = vld [vmem:[#allocation7 + $0xf0] sm:$0xff]  ;;  %v5917_v20 = vld [vmem:[#allocation7 + $0x1e8] sm:$0xff] }
  0x66   :  { %s5865_s6 = sld [smem:[#allocation3 + $0x5]]  ;;  %706 = vmatpush.msra.mxu1 %v5886_v10  ;;  %684 = vmatpush.msra.mxu0 %v5884_v9  ;;  %v5929_v23 = vld [vmem:[#allocation7 + $0x160] sm:$0xff]  ;;  %v5933_v25 = vld [vmem:[#allocation7 + $0xe8] sm:$0xff]  ;;  %v5957_v34 = vld [vmem:[#allocation7 + $0x158] sm:$0xff]  ;;  %v6019_v56 = vadd.s32 128, %v5854_v1 }
  0x67   :  { %7581 = vst [vmem:[#allocation39_spill] sm:$0xff] %v5859_v2  ;;  %v5873_v6 = vstv %s381_s21  ;;  %s5875_s24 = sld [smem:[#allocation3 + $0x6]]  ;;  %753 = vmatpush.msra.mxu3 %v5900_v13  ;;  %v5931_v24 = vld [vmem:[#allocation7 + $0x60] sm:$0xff]  ;;  %731 = vmatpush.msra.mxu2 %v5898_v12  ;;  %v5959_v35 = vld [vmem:[#allocation7 + $0x58] sm:$0xff]  ;;  %v5983_v44 = vld [vmem:[#allocation7 + $0x150] sm:$0xff] }
  0x68   :  { %vm385_vm6 = vcmp.eq.s32.totalorder %v5859_v2, %v5873_v6  ;;  %v5890_v11 = vstv %s4129_s7  ;;  %s5892_s26 = sld [smem:[#allocation3 + $0x7]]  ;;  %vm383_vm8 = vcmp.eq.s32.totalorder %v5854_v1, %v5873_v6  ;;  %707 = vmatpush.msra.mxu1 %v5915_v19  ;;  %685 = vmatpush.msra.mxu0 %v5902_v14  ;;  %v5944_v29 = vld [vmem:[#allocation7 + $0x1e0] sm:$0xff]  ;;  %v5970_v39 = vld [vmem:[#allocation7 + $0x1d8] sm:$0xff]  ;;  %v5985_v45 = vld [vmem:[#allocation7 + $0x50] sm:$0xff] }
  0x69   :  { %v4127_v16 = vsel %vm385_vm6, 1.0, %v7537_v15  ;;  %vm400_vm9 = vcmp.eq.s32.totalorder %v5859_v2, %v5890_v11  ;;  %v5908_v17 = vstv %s5856_s13  ;;  %v5911_v18 = vsel %vm383_vm8, 1.0, %v7537_v15  ;;  %v5946_v30 = vld [vmem:[#allocation7 + $0xe0] sm:$0xff]  ;;  %754 = vmatpush.msra.mxu3 %v5917_v20  ;;  %732 = vmatpush.msra.mxu2 %v5929_v23  ;;  %v5972_v40 = vld [vmem:[#allocation7 + $0xd8] sm:$0xff]  ;;  %v5997_v49 = vld [vmem:[#allocation7 + $0x1d0] sm:$0xff]  ;;  %s6047_s4 = sld [smem:[#allocation3 + $0x8]] }
  0x6a   :  { %v4132_v21 = vsel %vm400_vm9, 1.0, %v7537_v15  ;;  %vm415_vm10 = vcmp.eq.s32.totalorder %v5859_v2, %v5908_v17  ;;  %v5923_v22 = vstv %s5861_s9  ;;  %vm398_vm11 = vcmp.eq.s32.totalorder %v5854_v1, %v5890_v11  ;;  %708 = vmatpush.msra.mxu1 %v5933_v25  ;;  %686 = vmatpush.msra.mxu0 %v5931_v24  ;;  %7582 = vst [vmem:[#allocation40_spill] sm:$0xff] %v5997_v49  ;;  %v5999_v50 = vld [vmem:[#allocation7 + $0xd0] sm:$0xff]  ;;  %v6009_v53 = vld [vmem:[#allocation7 + $0x148] sm:$0xff]  ;;  %v6037_v61 = vld [vmem:[#allocation7 + $0x140] sm:$0xff]  ;;  %s6061_s29 = sld [smem:[#allocation3 + $0x9]] }
  0x6b   :  { %v4137_v26 = vsel %vm415_vm10, 1.0, %v7537_v15  ;;  %vm430_vm12 = vcmp.eq.s32.totalorder %v5859_v2, %v5923_v22  ;;  %v5939_v27 = vstv %s5863_s0  ;;  %v623_v28 = vsel %vm620_vm0, %v4127_v16, %v4132_v21  ;;  %755 = vmatpush.msra.mxu3 %v5944_v29  ;;  %733 = vmatpush.msra.mxu2 %v5957_v34  ;;  %v6011_v54 = vld [vmem:[#allocation7 + $0x48] sm:$0xff]  ;;  %v6039_v62 = vld [vmem:[#allocation7 + $0x40] sm:$0xff]  ;;  %s6077_s11 = sld [smem:[#allocation3 + $0xa]] }
  0x6c   :  { %v4142_v31 = vsel %vm430_vm12, 1.0, %v7537_v15  ;;  %vm445_vm13 = vcmp.eq.s32.totalorder %v5859_v2, %v5939_v27  ;;  %v5952_v32 = vstv %s5865_s6  ;;  %v628_v33 = vsel %vm625_vm1, %v623_v28, %v4137_v26  ;;  %709 = vmatpush.msra.mxu1 %v5946_v30  ;;  %687 = vmatpush.msra.mxu0 %v5959_v35  ;;  %v6023_v57 = vld [vmem:[#allocation7 + $0x1c8] sm:$0xff]  ;;  %v6051_v21 = vld [vmem:[#allocation7 + $0x1c0] sm:$0xff]  ;;  %s6094_s25 = sld [smem:[#allocation3 + $0xb]] }
  0x6d   :  { %v4147_v36 = vsel %vm445_vm13, 1.0, %v7537_v15  ;;  %vm460_vm14 = vcmp.eq.s32.totalorder %v5859_v2, %v5952_v32  ;;  %v5965_v37 = vstv %s5875_s24  ;;  %v633_v38 = vsel %vm630_vm2, %v628_v33, %v4142_v31  ;;  %756 = vmatpush.msra.mxu3 %v5970_v39  ;;  %734 = vmatpush.msra.mxu2 %v5983_v44  ;;  %7583 = vst [vmem:[#allocation41_spill] sm:$0xff] %v6023_v57  ;;  %v6025_v58 = vld [vmem:[#allocation7 + $0xc8] sm:$0xff]  ;;  %v6053_v26 = vld [vmem:[#allocation7 + $0xc0] sm:$0xff]  ;;  %v6067_v33 = vld [vmem:[#allocation7 + $0x38] sm:$0xff]  ;;  %s6113_s10 = sld [smem:[#allocation3 + $0xc]] }
  0x6e   :  { %v4152_v41 = vsel %vm460_vm14, 1.0, %v7537_v15  ;;  %vm475_vm15 = vcmp.eq.s32.totalorder %v5859_v2, %v5965_v37  ;;  %v5978_v42 = vstv %s5892_s26  ;;  %v638_v43 = vsel %vm635_vm3, %v633_v38, %v4147_v36  ;;  %710 = vmatpush.msra.mxu1 %v5972_v40  ;;  %688 = vmatpush.msra.mxu0 %v5985_v45  ;;  %7584 = vst [vmem:[#allocation42_spill] sm:$0xff] %v6051_v21  ;;  %s6132_s17 = sld [smem:[#allocation3 + $0xd]] }
  0x6f   :  { %v4157_v46 = vsel %vm475_vm15, 1.0, %v7537_v15  ;;  %vm490_vm6 = vcmp.eq.s32.totalorder %v5859_v2, %v5978_v42  ;;  %v643_v47 = vsel %vm640_vm4, %v638_v43, %v4152_v41  ;;  %v4130_v48 = vsel %vm398_vm11, 1.0, %v7537_v15  ;;  %757 = vmatpush.msra.mxu3 %v5997_v49  ;;  %735 = vmatpush.msra.mxu2 %v6009_v53  ;;  %7586 = vst [vmem:[#allocation44_spill] sm:$0xff] %v6067_v33  ;;  %v6081_v43 = vld [vmem:[#allocation7 + $0x1b8] sm:$0xff]  ;;  %v6140_v49 = vld [vmem:[#allocation7 + $0x120] sm:$0xff]  ;;  %s6150_s2 = sld [smem:[#allocation3 + $0xe]] }
  0x70   :  { %v4162_v51 = vsel %vm490_vm6, 1.0, %v7537_v15  ;;  %v648_v52 = vsel %vm645_vm5, %v643_v47, %v4157_v46  ;;  %vm413_vm8 = vcmp.eq.s32.totalorder %v5854_v1, %v5908_v17  ;;  %vm428_vm9 = vcmp.eq.s32.totalorder %v5854_v1, %v5923_v22  ;;  %711 = vmatpush.msra.mxu1 %v5999_v50  ;;  %689 = vmatpush.msra.mxu0 %v6011_v54  ;;  %v6083_v46 = vld [vmem:[#allocation7 + $0xb8] sm:$0xff]  ;;  %s6169_s3 = sld [smem:[#allocation3 + $0xf]] }
  0x71   :  { %v4135_v55 = vsel %vm413_vm8, 1.0, %v7537_v15  ;;  %vm443_vm10 = vcmp.eq.s32.totalorder %v5854_v1, %v5939_v27  ;;  %vm386_vm11 = vcmp.eq.s32.totalorder %v5878_v7, %v5873_v6  ;;  %v6028_v59 = vsel %vm650_vm7, %v648_v52, %v4162_v51  ;;  %758 = vmatpush.msra.mxu3 %v6023_v57  ;;  %736 = vmatpush.msra.mxu2 %v6037_v61  ;;  %v6098_v51 = vld [vmem:[#allocation7 + $0x130] sm:$0xff]  ;;  %v6138_v57 = vld [vmem:[#allocation7 + $0x28] sm:$0xff]  ;;  %s4204_s12 = sld [smem:[#allocation3 + $0x80]] }
  0x72   :  { %v4140_v60 = vsel %vm428_vm9, 1.0, %v7537_v15  ;;  %vm458_vm12 = vcmp.eq.s32.totalorder %v5854_v1, %v5952_v32  ;;  %vm473_vm13 = vcmp.eq.s32.totalorder %v5854_v1, %v5965_v37  ;;  %v4145_v63 = vsel %vm443_vm10, 1.0, %v7537_v15  ;;  %712 = vmatpush.msra.mxu1 %v6025_v58  ;;  %690 = vmatpush.msra.mxu0 %v6039_v62  ;;  %7587 = vst [vmem:[#allocation45_spill] sm:$0xff] %v6081_v43  ;;  %v6100_v52 = vld [vmem:[#allocation7 + $0x30] sm:$0xff]  ;;  %s4209_s27 = sld [smem:[#allocation3 + $0x81]] }
  0x73   :  { %v4150_v0 = vsel %vm458_vm12, 1.0, %v7537_v15  ;;  %vm488_vm14 = vcmp.eq.s32.totalorder %v5854_v1, %v5978_v42  ;;  %v621_v16 = vsel %vm620_vm0, %v5911_v18, %v4130_v48  ;;  %v4155_v28 = vsel %vm473_vm13, 1.0, %v7537_v15  ;;  %v6065_v18 = vld [vmem:[#allocation7 + $0x138] sm:$0xff]  ;;  %7588 = vst [vmem:[#allocation46_spill] sm:$0xff] %v6083_v46  ;;  %759 = vmatpush.msra.mxu3 %v6051_v21  ;;  %v6136_v21 = vld [vmem:[#allocation7 + $0x128] sm:$0xff]  ;;  %s4214_s5 = sld [smem:[#allocation3 + $0x82]] }
  0x74   :  { %v626_v31 = vsel %vm625_vm1, %v621_v16, %v4135_v55  ;;  %vm401_vm15 = vcmp.eq.s32.totalorder %v5878_v7, %v5890_v11  ;;  %vm416_vm6 = vcmp.eq.s32.totalorder %v5878_v7, %v5908_v17  ;;  %7585 = vst [vmem:[#allocation43_spill] sm:$0xff] %v6065_v18  ;;  %v4128_v38 = vsel %vm386_vm11, 1.0, %v7537_v15  ;;  %713 = vmatpush.msra.mxu1 %v6053_v26  ;;  %v6117_v16 = vld [vmem:[#allocation7 + $0x1b0] sm:$0xff]  ;;  %s6513_s19 = sld [smem:[#allocation3 + $0x83]] }
  0x75   :  { %v631_v36 = vsel %vm630_vm2, %v626_v31, %v4140_v60  ;;  %v4133_v41 = vsel %vm401_vm15, 1.0, %v7537_v15  ;;  %vm431_vm8 = vcmp.eq.s32.totalorder %v5878_v7, %v5923_v22  ;;  %v4138_v48 = vsel %vm416_vm6, 1.0, %v7537_v15  ;;  %7589 = vst [vmem:[#allocation47_spill] sm:$0xff] %v6098_v51  ;;  %737 = vmatpush.msra.mxu2 %v6065_v18  ;;  %691 = vmatpush.msra.mxu0 %v6067_v33  ;;  %v6119_v31 = vld [vmem:[#allocation7 + $0xb0] sm:$0xff]  ;;  %s6515_s1 = sld [smem:[#allocation3 + $0x84]] }
  0x76   :  { %v636_v47 = vsel %vm635_vm3, %v631_v36, %v4145_v63  ;;  %vm446_vm9 = vcmp.eq.s32.totalorder %v5878_v7, %v5939_v27  ;;  %vm461_vm10 = vcmp.eq.s32.totalorder %v5878_v7, %v5952_v32  ;;  %7590 = vst [vmem:[#allocation48_spill] sm:$0xff] %v6100_v52  ;;  %v4160_v55 = vsel %vm488_vm14, 1.0, %v7537_v15  ;;  %760 = vmatpush.msra.mxu3 %v6081_v43  ;;  %v6156_v43 = vld [vmem:[#allocation7 + $0x20] sm:$0xff]  ;;  %s6517_s15 = sld [smem:[#allocation3 + $0x85]] }
  0x77   :  { %v641_v60 = vsel %vm640_vm4, %v636_v47, %v4150_v0  ;;  %v4143_v63 = vsel %vm431_vm8, 1.0, %v7537_v15  ;;  %vm476_vm11 = vcmp.eq.s32.totalorder %v5878_v7, %v5965_v37  ;;  %7591 = vst [vmem:[#allocation49_spill] sm:$0xff] %v6117_v16  ;;  %v4148_v0 = vsel %vm446_vm9, 1.0, %v7537_v15  ;;  %714 = vmatpush.msra.mxu1 %v6083_v46  ;;  %738 = vmatpush.msra.mxu2 %v6098_v51  ;;  %v6175_v51 = vld [vmem:[#allocation7 + $0x1a0] sm:$0xff]  ;;  %s6519_s28 = sld [smem:[#allocation3 + $0x86]] }
  0x78   :  { %7592 = vst [vmem:[#allocation50_spill] sm:$0xff] %v6119_v31  ;;  %v4153_v36 = vsel %vm461_vm10, 1.0, %v7537_v15  ;;  %vm491_vm12 = vcmp.eq.s32.totalorder %v5878_v7, %v5978_v42  ;;  %v624_v47 = vsel %vm620_vm0, %v4128_v38, %v4133_v41  ;;  %v646_v18 = vsel %vm645_vm5, %v641_v60, %v4155_v28  ;;  %692 = vmatpush.msra.mxu0 %v6100_v52  ;;  %v6154_v41 = vld [vmem:[#allocation7 + $0x1a8] sm:$0xff]  ;;  %v6177_v52 = vld [vmem:[#allocation7 + $0x18] sm:$0xff]  ;;  %s6521_s21 = sld [smem:[#allocation3 + $0x87]] }
  0x79   :  { %7593 = vst [vmem:[#allocation51_spill] sm:$0xff] %v6140_v49  ;;  %v4158_v33 = vsel %vm476_vm11, 1.0, %v7537_v15  ;;  %v629_v38 = vsel %vm625_vm1, %v624_v47, %v4138_v48  ;;  %vm384_vm13 = vcmp.eq.s32.totalorder %v6019_v56, %v5873_v6  ;;  %v6158_v28 = vld [vmem:[#allocation7 + $0xa8] sm:$0xff]  ;;  %v4163_v48 = vsel %vm491_vm12, 1.0, %v7537_v15  ;;  %761 = vmatpush.msra.mxu3 %v6117_v16  ;;  %715 = vmatpush.msra.mxu1 %v6119_v31  ;;  %v6173_v47 = vld [vmem:[#allocation7 + $0x118] sm:$0xff]  ;;  %v6179_v15 = vld [vmem:[#allocation7 + $0xa0] sm:$0xff] }
  0x7a   :  { %7594 = vst [vmem:[#allocation52_spill] sm:$0xff] %v6154_v41  ;;  %v634_v60 = vsel %vm630_vm2, %v629_v38, %v4143_v63  ;;  %vm399_vm14 = vcmp.eq.s32.totalorder %v6019_v56, %v5890_v11  ;;  %vm414_vm15 = vcmp.eq.s32.totalorder %v6019_v56, %v5908_v17  ;;  %v7599_v11 = vmov 0.0   ;;  %739 = vmatpush.msra.mxu2 %v6136_v21  ;;  %v6191_v16 = vld [vmem:[#allocation7 + $0x198] sm:$0xff]  ;;  %v6204_v6 = vld [vmem:[#allocation7 + $0x110] sm:$0xff]  ;;  %s6635_s7 = sld [smem:[#allocation3 + $0x88]] }
  0x7b   :  { %7595 = vst [vmem:[#allocation53_spill] sm:$0xff] %v6156_v43  ;;  %v639_v63 = vsel %vm635_vm3, %v634_v60, %v4148_v0  ;;  %v4126_v38 = vsel %vm384_vm13, 1.0, %v7599_v11  ;;  %v4131_v46 = vsel %vm399_vm14, 1.0, %v7599_v11  ;;  %vm429_vm6 = vcmp.eq.s32.totalorder %v6019_v56, %v5923_v22  ;;  %693 = vmatpush.msra.mxu0 %v6138_v57  ;;  %762 = vmatpush.msra.mxu3 %v6154_v41  ;;  %v6206_v22 = vld [vmem:[#allocation7 + $0x10] sm:$0xff]  ;;  %s6642_s13 = sld [smem:[#allocation3 + $0x89]] }
  0x7c   :  { %7596 = vst [vmem:[#allocation54_spill] sm:$0xff] %v6173_v47  ;;  %v644_v31 = vsel %vm640_vm4, %v639_v63, %v4153_v36  ;;  %v4136_v0 = vsel %vm414_vm15, 1.0, %v7599_v11  ;;  %vm444_vm8 = vcmp.eq.s32.totalorder %v6019_v56, %v5939_v27  ;;  %vm459_vm9 = vcmp.eq.s32.totalorder %v6019_v56, %v5952_v32  ;;  %716 = vmatpush.msra.mxu1 %v6158_v28  ;;  %v6208_v36 = vld [vmem:[#allocation7 + $0x98] sm:$0xff]  ;;  %v6219_v32 = vld [vmem:[#allocation7 + $0x190] sm:$0xff]  ;;  %s6650_s9 = sld [smem:[#allocation3 + $0x8a]] }
  0x7d   :  { %7597 = vst [vmem:[#allocation55_spill] sm:$0xff] %v6175_v51  ;;  %v6211_v60 = vsel %vm650_vm7, %v646_v18, %v4160_v55  ;;  %v649_v17 = vsel %vm645_vm5, %v644_v31, %v4158_v33  ;;  %v4141_v27 = vsel %vm429_vm6, 1.0, %v7599_v11  ;;  %vm474_vm10 = vcmp.eq.s32.totalorder %v6019_v56, %v5965_v37  ;;  %740 = vmatpush.msra.mxu2 %v6140_v49  ;;  %v6229_v37 = vld [vmem:[#allocation7 + $0x108] sm:$0xff]  ;;  %v6233_v41 = vld [vmem:[#allocation7 + $0x90] sm:$0xff]  ;;  %s6657_s0 = sld [smem:[#allocation3 + $0x8b]] }
  0x7e   :  { %7598 = vst [vmem:[#allocation56_spill] sm:$0xff] %v6177_v52  ;;  %694 = vmatpush.msra.mxu0 %v6156_v43  ;;  %v6222_v63 = vsel %vm650_vm7, %v649_v17, %v4163_v48  ;;  %v4146_v18 = vsel %vm444_vm8, 1.0, %v7599_v11  ;;  %v4151_v33 = vsel %vm459_vm9, 1.0, %v7599_v11  ;;  %v622_v55 = vsel %vm620_vm0, %v4126_v38, %v4131_v46  ;;  %763 = vmatpush.msra.mxu3 %v6175_v51  ;;  %v6231_v31 = vld [vmem:[#allocation7 + $0x8] sm:$0xff]  ;;  %s6667_s6 = sld [smem:[#allocation3 + $0x8c]] }
  0x7f   :  { %7600 = vst [vmem:[#allocation57_spill] sm:$0xff] %v6191_v16  ;;  %717 = vmatpush.msra.mxu1 %v6179_v15  ;;  %v4156_v48 = vsel %vm474_vm10, 1.0, %v7599_v11  ;;  %v627_v17 = vsel %vm625_vm1, %v622_v55, %v4136_v0  ;;  %v6238_v49 = vstv %s6047_s4  ;;  %v6241_v43 = vstv %s6061_s29  ;;  %741 = vmatpush.msra.mxu2 %v6173_v47  ;;  %v6255_v0 = vld [vmem:[#allocation7 + $0x100] sm:$0xff]  ;;  %v6257_v55 = vld [vmem:[#allocation7 + $0x188] sm:$0xff]  ;;  %s6692_s24 = sld [smem:[#allocation3 + $0x8d]] }
  0x80   :  { %7601 = vst [vmem:[#allocation58_spill] sm:$0xff] %v6204_v6  ;;  %695 = vmatpush.msra.mxu0 %v6177_v52  ;;  %v632_v46 = vsel %vm630_vm2, %v627_v17, %v4141_v27  ;;  %vm505_vm11 = vcmp.eq.s32.totalorder %v5859_v2, %v6238_v49  ;;  %vm520_vm12 = vcmp.eq.s32.totalorder %v5859_v2, %v6241_v43  ;;  %v6251_v38 = vstv %s6077_s11  ;;  %s6699_s26 = sld [smem:[#allocation3 + $0x8e]]  ;;  %s4108_s11 = sshll.u32 %s7519_s23, 4  ;;  %s4109_s11 = int_to_ptr.hbm [resolvable:$true] %s4108_s11 }
  0x81   :  { %7602 = vst [vmem:[#allocation59_spill] sm:$0xff] %v6206_v22  ;;  %764 = vmatpush.msra.mxu3 %v6191_v16  ;;  %718 = vmatpush.msra.mxu1 %v6208_v36  ;;  %vm489_vm13 = vcmp.eq.s32.totalorder %v6019_v56, %v5978_v42  ;;  %v637_v27 = vsel %vm635_vm3, %v632_v46, %v4146_v18  ;;  %v4167_v17 = vsel %vm505_vm11, 1.0, %v7599_v11  ;;  %v6267_v16 = vld [vmem:[#allocation7 + $0x88] sm:$0xff]  ;;  %v4172_v47 = vsel %vm520_vm12, 1.0, %v7599_v11  ;;  %v6279_v18 = vld [vmem:[#allocation7] sm:$0xff]  ;;  %s6708_s4 = sld [smem:[#allocation3 + $0x8f]] }
  0x82   :  { %7603 = vst [vmem:[#allocation60_spill] sm:$0xff] %v6208_v36  ;;  %vm535_vm14 = vcmp.eq.s32.totalorder %v5859_v2, %v6251_v38  ;;  %742 = vmatpush.msra.mxu2 %v6204_v6  ;;  %696 = vmatpush.msra.mxu0 %v6206_v22  ;;  %v642_v51 = vsel %vm640_vm4, %v637_v27, %v4151_v33  ;;  %v6272_v36 = vstv %s6094_s25  ;;  %v6275_v52 = vstv %s6113_s10  ;;  %v6291_v27 = vld [vmem:[#allocation7 + $0x180] sm:$0xff] }
  0x83   :  { %7604 = vst [vmem:[#allocation61_spill] sm:$0xff] %v6219_v32  ;;  %765 = vmatpush.msra.mxu3 %v6219_v32  ;;  %719 = vmatpush.msra.mxu1 %v6233_v41  ;;  %v4177_v46 = vsel %vm535_vm14, 1.0, %v7599_v11  ;;  %vm550_vm15 = vcmp.eq.s32.totalorder %v5859_v2, %v6272_v36  ;;  %vm565_vm6 = vcmp.eq.s32.totalorder %v5859_v2, %v6275_v52  ;;  %v6287_v33 = vstv %s6132_s17 }
  0x84   :  { %7605 = vst [vmem:[#allocation62_spill] sm:$0xff] %v6229_v37  ;;  %743 = vmatpush.msra.mxu2 %v6229_v37  ;;  %697 = vmatpush.msra.mxu0 %v6231_v31  ;;  %v4161_v32 = vsel %vm489_vm13, 1.0, %v7599_v11  ;;  %v647_v6 = vsel %vm645_vm5, %v642_v51, %v4156_v48  ;;  %vm580_vm8 = vcmp.eq.s32.totalorder %v5859_v2, %v6287_v33  ;;  %v4187_v37 = vsel %vm565_vm6, 1.0, %v7599_v11  ;;  %v6313_v51 = vld [vmem:[#allocation7 + $0x80] sm:$0xff] }
  0x85   :  { %7606 = vst [vmem:[#allocation63_spill] sm:$0xff] %v6231_v31  ;;  %766 = vmatpush.msra.mxu3 %v6257_v55  ;;  %720 = vmatpush.msra.mxu1 %v6267_v16  ;;  %v6305_v31 = vstv %s6150_s2  ;;  %v6308_v22 = vstv %s6169_s3  ;;  %v657_v42 = vsel %vm620_vm0, %v4167_v17, %v4172_v47  ;;  %v4192_v48 = vsel %vm580_vm8, 1.0, %v7599_v11 }
  0x86   :  { %7607 = vst [vmem:[#allocation64_spill] sm:$0xff] %v6233_v41  ;;  %v4182_v41 = vsel %vm550_vm15, 1.0, %v7599_v11  ;;  %744 = vmatpush.msra.mxu2 %v6255_v0  ;;  %698 = vmatpush.msra.mxu0 %v6279_v18  ;;  %vm595_vm9 = vcmp.eq.s32.totalorder %v5859_v2, %v6305_v31  ;;  %vm610_vm10 = vcmp.eq.s32.totalorder %v5859_v2, %v6308_v22 }
  0x87   :  { %7608 = vst [vmem:[#allocation65_spill] sm:$0xff] %v6255_v0  ;;  %745 = vmatmul.f32.vlgmr.msra.gmra.mxu2 %v6028_v59  ;;  %767 = vmatpush.msra.mxu3 %v6291_v27  ;;  %v652_v47 = vsel %vm650_vm7, %v647_v6, %v4161_v32  ;;  %v4197_v17 = vsel %vm595_vm9, 1.0, %v7599_v11  ;;  %vm503_vm11 = vcmp.eq.s32.totalorder %v5854_v1, %v6238_v49  ;;  %v4202_v2 = vsel %vm610_vm10, 1.0, %v7599_v11 }
  0x88   :  { %7609 = vst [vmem:[#allocation66_spill] sm:$0xff] %v6257_v55  ;;  %v661_v55 = vsel %vm625_vm1, %v657_v42, %v4177_v46  ;;  %699 = vmatmul.f32.vlgmr.msra.gmra.mxu0 %v6211_v60  ;;  %768 = vmatmul.f32.vlgmr.msra.gmra.mxu3 %v6222_v63  ;;  %vm518_vm12 = vcmp.eq.s32.totalorder %v5854_v1, %v6241_v43 }
  0x89   :  { %v665_v0 = vsel %vm630_vm2, %v661_v55, %v4182_v41  ;;  %vm533_vm13 = vcmp.eq.s32.totalorder %v5854_v1, %v6251_v38  ;;  %721 = vmatpush.msra.mxu1 %v6313_v51  ;;  %v4165_v41 = vsel %vm503_vm11, 1.0, %v7599_v11  ;;  %v4170_v6 = vsel %vm518_vm12, 1.0, %v7599_v11  ;;  %1075 = vmatpush.msrb.mxu0 %v5869_v4 }
  0x8a   :  { %v669_v46 = vsel %vm635_vm3, %v665_v0, %v4187_v37  ;;  %vm548_vm14 = vcmp.eq.s32.totalorder %v5854_v1, %v6272_v36  ;;  %722 = vmatmul.f32.vlgmr.msra.gmra.mxu1 %v652_v47  ;;  %v4175_v32 = vsel %vm533_vm13, 1.0, %v7599_v11  ;;  %vm563_vm15 = vcmp.eq.s32.totalorder %v5854_v1, %v6275_v52  ;;  %1121 = vmatpush.msrb.mxu2 %v5867_v3 }
  0x8b   :  { %v673_v59 = vsel %vm640_vm4, %v669_v46, %v4192_v48  ;;  %vm578_vm6 = vcmp.eq.s32.totalorder %v5854_v1, %v6287_v33  ;;  %v4180_v37 = vsel %vm548_vm14, 1.0, %v7599_v11  ;;  %v4185_v0 = vsel %vm563_vm15, 1.0, %v7599_v11  ;;  %1098 = vmatpush.msrb.mxu1 %v5886_v10  ;;  %1076 = vmatpush.msrb.mxu0 %v5884_v9 }
  0x8c   :  { %v677_v60 = vsel %vm645_vm5, %v673_v59, %v4197_v17  ;;  %vm593_vm8 = vcmp.eq.s32.totalorder %v5854_v1, %v6305_v31  ;;  %v4190_v4 = vsel %vm578_vm6, 1.0, %v7599_v11  ;;  %vm608_vm9 = vcmp.eq.s32.totalorder %v5854_v1, %v6308_v22  ;;  %1122 = vmatpush.msrb.mxu2 %v5871_v5  ;;  %1144 = vmatpush.msrb.mxu3 %v5882_v8  ;;  %v7614_v59 = vld [vmem:[#allocation48_spill] sm:$0xff] }
  0x8d   :  { %v681_v63 = vsel %vm650_vm7, %v677_v60, %v4202_v2  ;;  %v655_v3 = vsel %vm620_vm0, %v4165_v41, %v4170_v6  ;;  %vm506_vm10 = vcmp.eq.s32.totalorder %v5878_v7, %v6238_v49  ;;  %v4195_v2 = vsel %vm593_vm8, 1.0, %v7599_v11  ;;  %1099 = vmatpush.msrb.mxu1 %v5915_v19  ;;  %1077 = vmatpush.msrb.mxu0 %v5902_v14  ;;  %v7615_v41 = vld [vmem:[#allocation47_spill] sm:$0xff]  ;;  %v7616_v6 = vld [vmem:[#allocation50_spill] sm:$0xff]  ;;  %v7617_v60 = vld [vmem:[#allocation41_spill] sm:$0xff] }
  0x8e   :  { %v4200_v10 = vsel %vm608_vm9, 1.0, %v7599_v11  ;;  %v659_v9 = vsel %vm625_vm1, %v655_v3, %v4175_v32  ;;  %vm521_vm11 = vcmp.eq.s32.totalorder %v5878_v7, %v6241_v43  ;;  %v4168_v42 = vsel %vm506_vm10, 1.0, %v7599_v11  ;;  %1123 = vmatpush.msrb.mxu2 %v5898_v12  ;;  %1145 = vmatpush.msrb.mxu3 %v5900_v13  ;;  %v7618_v32 = vld [vmem:[#allocation53_spill] sm:$0xff]  ;;  %v7623_v3 = vld [vmem:[#allocation60_spill] sm:$0xff] }
  0x8f   :  { %v663_v55 = vsel %vm630_vm2, %v659_v9, %v4180_v37  ;;  %vm536_vm12 = vcmp.eq.s32.totalorder %v5878_v7, %v6251_v38  ;;  %vm551_vm13 = vcmp.eq.s32.totalorder %v5878_v7, %v6272_v36  ;;  %748 = vmatmul.f32.gmra.mxu2 %v681_v63  ;;  %v4173_v8 = vsel %vm521_vm11, 1.0, %v7599_v11  ;;  %1100 = vmatpush.msrb.mxu1 %v5933_v25  ;;  %v7619_v63 = vld [vmem:[#allocation42_spill] sm:$0xff]  ;;  %v7620_v37 = vld [vmem:[#allocation51_spill] sm:$0xff] }
  0x90   :  { %v667_v5 = vsel %vm635_vm3, %v663_v55, %v4185_v0  ;;  %v4178_v14 = vsel %vm536_vm12, 1.0, %v7599_v11  ;;  %vm566_vm14 = vcmp.eq.s32.totalorder %v5878_v7, %v6275_v52  ;;  %v4183_v48 = vsel %vm551_vm13, 1.0, %v7599_v11  ;;  %1078 = vmatpush.msrb.mxu0 %v5931_v24  ;;  %1124 = vmatpush.msrb.mxu2 %v5929_v23  ;;  %v7621_v0 = vld [vmem:[#allocation56_spill] sm:$0xff]  ;;  %v7629_v9 = vld [vmem:[#allocation63_spill] sm:$0xff]  ;;  %v7631_v55 = vld [vmem:[#allocation62_spill] sm:$0xff] }
  0x91   :  { %v671_v19 = vsel %vm640_vm4, %v667_v5, %v4190_v4  ;;  %vm581_vm15 = vcmp.eq.s32.totalorder %v5878_v7, %v6287_v33  ;;  %vm596_vm6 = vcmp.eq.s32.totalorder %v5878_v7, %v6305_v31  ;;  %v4188_v13 = vsel %vm566_vm14, 1.0, %v7599_v11  ;;  %1101 = vmatpush.msrb.mxu1 %v5946_v30  ;;  %1146 = vmatpush.msrb.mxu3 %v5917_v20  ;;  %v7622_v4 = vld [vmem:[#allocation45_spill] sm:$0xff] }
  0x92   :  { %v675_v12 = vsel %vm645_vm5, %v671_v19, %v4195_v2  ;;  %v4193_v25 = vsel %vm581_vm15, 1.0, %v7599_v11  ;;  %vm611_vm8 = vcmp.eq.s32.totalorder %v5878_v7, %v6308_v22  ;;  %v4198_v17 = vsel %vm596_vm6, 1.0, %v7599_v11  ;;  %1079 = vmatpush.msrb.mxu0 %v5959_v35  ;;  %1125 = vmatpush.msrb.mxu2 %v5957_v34  ;;  %v7624_v2 = vld [vmem:[#allocation54_spill] sm:$0xff]  ;;  %v7633_v5 = vld [vmem:[#allocation65_spill] sm:$0xff] }
  0x93   :  { %v679_v47 = vsel %vm650_vm7, %v675_v12, %v4200_v10  ;;  %v658_v24 = vsel %vm620_vm0, %v4168_v42, %v4173_v8  ;;  %vm504_vm9 = vcmp.eq.s32.totalorder %v6019_v56, %v6238_v49  ;;  %v4203_v23 = vsel %vm611_vm8, 1.0, %v7599_v11  ;;  %1102 = vmatpush.msrb.mxu1 %v5972_v40  ;;  %1147 = vmatpush.msrb.mxu3 %v5944_v29  ;;  %v7628_v10 = vld [vmem:[#allocation58_spill] sm:$0xff]  ;;  %v7632_v42 = vld [vmem:[#allocation55_spill] sm:$0xff]  ;;  %v7634_v8 = vld [vmem:[#allocation57_spill] sm:$0xff] }
  0x94   :  { %702 = vmatmul.f32.gmra.mxu0 %v679_v47  ;;  %v662_v30 = vsel %vm625_vm1, %v658_v24, %v4178_v14  ;;  %vm519_vm10 = vcmp.eq.s32.totalorder %v6019_v56, %v6241_v43  ;;  %vm534_vm11 = vcmp.eq.s32.totalorder %v6019_v56, %v6251_v38  ;;  %v4166_v49 = vsel %vm504_vm9, 1.0, %v7599_v11  ;;  %1126 = vmatpush.msrb.mxu2 %v5983_v44  ;;  %v7611_v38 = vld [vmem:[#allocation43_spill] sm:$0xff]  ;;  %v7635_v14 = vld [vmem:[#allocation61_spill] sm:$0xff]  ;;  %v7636_v19 = vld [vmem:[#allocation66_spill] sm:$0xff] }
  0x95   :  { %v666_v20 = vsel %vm630_vm2, %v662_v30, %v4183_v48  ;;  %v4171_v35 = vsel %vm519_vm10, 1.0, %v7599_v11  ;;  %vm549_vm12 = vcmp.eq.s32.totalorder %v6019_v56, %v6272_v36  ;;  %1080 = vmatpush.msrb.mxu0 %v5985_v45  ;;  %v4176_v43 = vsel %vm534_vm11, 1.0, %v7599_v11  ;;  %1103 = vmatpush.msrb.mxu1 %v5999_v50  ;;  %v6491_v48 = vld [vmem:[#allocation9] sm:$0xff]  ;;  %v6497_v30 = vld [vmem:[#allocation9 + $0x8] sm:$0xff] }
  0x96   :  { %v670_v34 = vsel %vm635_vm3, %v666_v20, %v4188_v13  ;;  %vm564_vm13 = vcmp.eq.s32.totalorder %v6019_v56, %v6275_v52  ;;  %vm579_vm14 = vcmp.eq.s32.totalorder %v6019_v56, %v6287_v33  ;;  %v4181_v45 = vsel %vm549_vm12, 1.0, %v7599_v11  ;;  %1127 = vmatpush.msrb.mxu2 %v6009_v53  ;;  %1148 = vmatpush.msrb.mxu3 %v5970_v39 }
  0x97   :  { %v674_v40 = vsel %vm640_vm4, %v670_v34, %v4193_v25  ;;  %vm594_vm15 = vcmp.eq.s32.totalorder %v6019_v56, %v6305_v31  ;;  %1081 = vmatpush.msrb.mxu0 %v6011_v54  ;;  %v4186_v52 = vsel %vm564_vm13, 1.0, %v7599_v11  ;;  %vm609_vm6 = vcmp.eq.s32.totalorder %v6019_v56, %v6308_v22  ;;  %1104 = vmatpush.msrb.mxu1 %v6025_v58  ;;  %v7610_v31 = vld [vmem:[#allocation44_spill] sm:$0xff] }
  0x98   :  { %v678_v44 = vsel %vm645_vm5, %v674_v40, %v4198_v17  ;;  %v656_v29 = vsel %vm620_vm0, %v4166_v49, %v4171_v35  ;;  %v4191_v36 = vsel %vm579_vm14, 1.0, %v7599_v11  ;;  %1128 = vmatpush.msrb.mxu2 %v6037_v61  ;;  %v4196_v53 = vsel %vm594_vm15, 1.0, %v7599_v11  ;;  %v7613_v61 = vld [vmem:[#allocation40_spill] sm:$0xff]  ;;  %v6494_v17 = vld [vmem:[#allocation10] ss:$0 sm:$0xff] }
  0x99   :  { %v682_v50 = vsel %vm650_vm7, %v678_v44, %v4203_v23  ;;  %v660_v54 = vsel %vm625_vm1, %v656_v29, %v4176_v43  ;;  %1082 = vmatpush.msrb.mxu0 %v6039_v62  ;;  %1105 = vmatpush.msrb.mxu1 %v6053_v26  ;;  %v4201_v58 = vsel %vm609_vm6, 1.0, %v7599_v11  ;;  %v7612_v62 = vld [vmem:[#allocation46_spill] sm:$0xff] }
  0x9a   :  { %771 = vmatmul.f32.gmra.mxu3 %v682_v50  ;;  %v664_v22 = vsel %vm630_vm2, %v660_v54, %v4181_v45  ;;  %1129 = vmatpush.msrb.mxu2 %v7611_v38 }
  0x9b   :  { %v668_v39 = vsel %vm635_vm3, %v664_v22, %v4186_v52  ;;  %1083 = vmatpush.msrb.mxu0 %v7610_v31  ;;  %1106 = vmatpush.msrb.mxu1 %v7612_v62  ;;  %v5654_v52 = vmov 128.0  }
  0x9c   :  { %v672_v33 = vsel %vm640_vm4, %v668_v39, %v4191_v36  ;;  %1149 = vmatpush.msrb.mxu3 %v7613_v61  ;;  %1130 = vmatpush.msrb.mxu2 %v7615_v41  ;;  %5077 = vrcp.f32 %v5654_v52  ;;  %v4911_v41 = vld [vmem:[#allocation15 + $0xb0] sm:$0xf0] }
  0x9d   :  { %v676_v46 = vsel %vm645_vm5, %v672_v33, %v4196_v53  ;;  %1084 = vmatpush.msrb.mxu0 %v7614_v59  ;;  %1107 = vmatpush.msrb.mxu1 %v7616_v6  ;;  %v4370_v59 = vld [vmem:[#allocation15 + $0xa8] sm:$0xf] }
  0x9e   :  { %v680_v26 = vsel %vm650_vm7, %v676_v46, %v4201_v58  ;;  %1150 = vmatpush.msrb.mxu3 %v7617_v60  ;;  %1131 = vmatpush.msrb.mxu2 %v6136_v21  ;;  %v7627_v21 = vld [vmem:[#allocation64_spill] sm:$0xff]  ;;  %v4371_v6 = vor.u32 %v4911_v41, %v4370_v59  ;;  %v4372_v60 = vld [vmem:[#allocation15 + $0xb4] sm:$0xf0]  ;;  %v4342_v59 = vld [vmem:[#allocation15 + $0x68] sm:$0xf] }
  0x9f   :  { %725 = vmatmul.f32.gmra.mxu1 %v680_v26  ;;  %1085 = vmatpush.msrb.mxu0 %v6138_v57  ;;  %v7625_v57 = vld [vmem:[#allocation59_spill] sm:$0xff]  ;;  %v4903_v41 = vld [vmem:[#allocation15 + $0x70] sm:$0xf0] }
  0xa0   :  { %1108 = vmatpush.msrb.mxu1 %v6158_v28  ;;  %1151 = vmatpush.msrb.mxu3 %v7619_v63  ;;  %v7626_v28 = vld [vmem:[#allocation49_spill] sm:$0xff]  ;;  %v4910_v26 = vld [vmem:[#allocation15 + $0xac] sm:$0xf] }
  0xa1   :  { %1086 = vmatpush.msrb.mxu0 %v7618_v32  ;;  %1132 = vmatpush.msrb.mxu2 %v7620_v37  ;;  %v4378_v32 = vld [vmem:[#allocation15 + $0xb0] sm:$0xf]  ;;  %v4912_v63 = vld [vmem:[#allocation15 + $0xb8] sm:$0xf0]  ;;  %v4375_v37 = vor.u32 %v4910_v26, %v4372_v60 }
  0xa2   :  { %1109 = vmatpush.msrb.mxu1 %v6179_v15  ;;  %1152 = vmatpush.msrb.mxu3 %v7622_v4  ;;  %v7630_v15 = vld [vmem:[#allocation52_spill] sm:$0xff]  ;;  %v5078_v29 = vpop.eup %5077 }
  0xa3   :  { %1087 = vmatpush.msrb.mxu0 %v7621_v0  ;;  %1133 = vmatpush.msrb.mxu2 %v7624_v2  ;;  %v1180_v50 = vmul.f32 128.0, %v5078_v29  ;;  %vm1184_vm8 = vweird.f32 %v5078_v29  ;;  %v4379_v0 = vor.u32 %v4912_v63, %v4378_v32  ;;  %v4358_v4 = vld [vmem:[#allocation15 + $0x90] sm:$0xf]  ;;  %v4907_v2 = vld [vmem:[#allocation15 + $0x94] sm:$0xf] }
  0xa4   :  { %1110 = vmatpush.msrb.mxu1 %v7623_v3  ;;  %1153 = vmatpush.msrb.mxu3 %v7626_v28  ;;  %v4908_v3 = vld [vmem:[#allocation15 + $0x98] sm:$0xf0]  ;;  %v6525_v28 = vstv %s4209_s27  ;;  %s7650_s27 = sld [smem:[#allocation75_spill]] }
  0xa5   :  { %1088 = vmatpush.msrb.mxu0 %v7625_v57  ;;  %1134 = vmatpush.msrb.mxu2 %v7628_v10  ;;  %v1181_v36 = vsub.f32 1.0, %v1180_v50  ;;  %v6523_v57 = vstv %s4204_s12  ;;  %v4360_v10 = vld [vmem:[#allocation15 + $0x9c] sm:$0xf0] }
  0xa6   :  { %1111 = vmatpush.msrb.mxu1 %v7627_v21  ;;  %1154 = vmatpush.msrb.mxu3 %v7630_v15  ;;  %v4359_v21 = vor.u32 %v4908_v3, %v4358_v4  ;;  %v4909_v15 = vld [vmem:[#allocation15 + $0xa0] sm:$0xf0]  ;;  %vm782_vm6 = vcmp.eq.s32.totalorder %v5854_v1, %v6523_v57  ;;  %v4334_v50 = vld [vmem:[#allocation15 + $0x60] sm:$0xf] }
  0xa7   :  { %1089 = vmatpush.msrb.mxu0 %v7629_v9  ;;  %1135 = vmatpush.msrb.mxu2 %v7631_v55  ;;  %v1182_v54 = vmul.f32 %v5078_v29, %v1181_v36  ;;  %v4366_v9 = vld [vmem:[#allocation15 + $0x98] sm:$0xf]  ;;  %v7637_v55 = vld [vmem:[#allocation39_spill] sm:$0xff]  ;;  %v4205_v60 = vsel %vm782_vm6, 1.0, %v7599_v11  ;;  %vm785_vm6 = vcmp.eq.s32.totalorder %v5878_v7, %v6523_v57 }
  0xa8   :  { %1112 = vmatpush.msrb.mxu1 %v6267_v16  ;;  %1155 = vmatpush.msrb.mxu3 %v7632_v42  ;;  %vm784_vm9 = vcmp.eq.s32.totalorder %v7637_v55, %v6523_v57  ;;  %vm799_vm10 = vcmp.eq.s32.totalorder %v7637_v55, %v6525_v28  ;;  %v6531_v42 = vstv %s4214_s5  ;;  %v4902_v36 = vld [vmem:[#allocation15 + $0x68] sm:$0xf0] }
  0xa9   :  { %1090 = vmatpush.msrb.mxu0 %v6279_v18  ;;  %1136 = vmatpush.msrb.mxu2 %v7633_v5  ;;  %v1183_v53 = vadd.f32 %v5078_v29, %v1182_v54  ;;  %v4363_v5 = vor.u32 %v4907_v2, %v4360_v10  ;;  %vm814_vm11 = vcmp.eq.s32.totalorder %v7637_v55, %v6531_v42 }
  0xaa   :  { %1113 = vmatpush.msrb.mxu1 %v6313_v51  ;;  %1156 = vmatpush.msrb.mxu3 %v7634_v8  ;;  %v4367_v8 = vor.u32 %v4909_v15, %v4366_v9 }
  0xab   :  { %v6501_v22 = vsel %vm1184_vm8, %v5078_v29, %v1183_v53  ;;  %1447 = vmatpush.bf16.msra.mxu0 %v4371_v6  ;;  %1485 = vmatpush.bf16.msra.mxu2 %v4379_v0  ;;  %v4343_v6 = vor.u32 %v4903_v41, %v4342_v59 }
  0xac   :  { %1157 = vmatpush.msrb.mxu3 %v7635_v14  ;;  %1466 = vmatpush.bf16.msra.mxu1 %v4375_v37  ;;  %v4207_v14 = vsel %vm784_vm9, 1.0, %v7599_v11  ;;  %vm797_vm9 = vcmp.eq.s32.totalorder %v5854_v1, %v6525_v28 }
  0xad   :  { %v4210_v32 = vsel %vm797_vm9, 1.0, %v7599_v11  ;;  %vm815_vm9 = vcmp.eq.s32.totalorder %v5878_v7, %v6531_v42 }
  0xae   :  { %1158 = vmatpush.msrb.mxu3 %v7636_v19  ;;  %v4212_v19 = vsel %vm799_vm10, 1.0, %v7599_v11  ;;  %vm812_vm10 = vcmp.eq.s32.totalorder %v5854_v1, %v6531_v42  ;;  %v1019_v10 = vsel %vm620_vm0, %v4205_v60, %v4210_v32 }
  0xaf   :  { %1448 = vmatpush.bf16.msra.mxu0 %v4359_v21  ;;  %1486 = vmatpush.bf16.msra.mxu2 %v4367_v8  ;;  %v4215_v0 = vsel %vm812_vm10, 1.0, %v7599_v11 }
  0xb0   :  { %1159 = vmatpush.msrb.mxu3 %v6291_v27  ;;  %1467 = vmatpush.bf16.msra.mxu1 %v4363_v5  ;;  %v1023_v5 = vsel %vm625_vm1, %v1019_v10, %v4215_v0 }
 0x105   :  { %v700_v16 = vpop.f32.mrf.mxu0 }
 0x106   :  { %v701_v12 = vadd.f32 %v700_v16, %v6491_v48  ;;  %v6538_v16 = vstv %s6513_s19 }
 0x107   :  { %v723_v18 = vpop.f32.mrf.mxu1  ;;  %vm829_vm12 = vcmp.eq.s32.totalorder %v7637_v55, %v6538_v16  ;;  %vm830_vm10 = vcmp.eq.s32.totalorder %v5878_v7, %v6538_v16 }
 0x108   :  { %v724_v13 = vadd.f32 %v723_v18, %v701_v12  ;;  %v6541_v12 = vstv %s6515_s1  ;;  %v4346_v18 = vld [vmem:[#allocation15 + $0x78] sm:$0xf] }
 0x109   :  { %vm844_vm13 = vcmp.eq.s32.totalorder %v7637_v55, %v6541_v12 }
 0x10a   :  { %v746_v25 = vpop.f32.mrf.mxu2 }
 0x10b   :  { %v747_v47 = vadd.f32 %v746_v25, %v724_v13  ;;  %v769_v51 = vpop.f32.mrf.mxu3  ;;  %v4905_v13 = vld [vmem:[#allocation15 + $0x80] sm:$0xf0]  ;;  %v4904_v25 = vld [vmem:[#allocation15 + $0x7c] sm:$0xf] }
 0x10d   :  { %v770_v24 = vadd.f32 %v769_v51, %v747_v47  ;;  %v6548_v47 = vstv %s6517_s15  ;;  %v4347_v51 = vor.u32 %v4905_v13, %v4346_v18 }
 0x10e   :  { %vm859_vm14 = vcmp.eq.s32.totalorder %v7637_v55, %v6548_v47 }
 0x10f   :  { %v776_v23 = vadd.f32 %v6494_v17, %v770_v24  ;;  %v4348_v24 = vld [vmem:[#allocation15 + $0x84] sm:$0xf0]  ;;  %1449 = vmatpush.bf16.msra.mxu0 %v4347_v51  ;;  %v4232_v52 = vsel %vm859_vm14, 1.0, %v7599_v11 }
 0x111   :  { %1171 = vadd.xlane.f32.xlu0 %v776_v23  ;;  %v703_v20 = vpop.f32.mrf.mxu0 }
 0x112   :  { %v704_v27 = vadd.f32 %v703_v20, %v6497_v30  ;;  %v749_v35 = vpop.f32.mrf.mxu2  ;;  %v4906_v20 = vld [vmem:[#allocation15 + $0x88] sm:$0xf0] }
 0x11c   :  { %v726_v49 = vpop.f32.mrf.mxu1 }
 0x11d   :  { %v727_v34 = vadd.f32 %v726_v49, %v704_v27  ;;  %v772_v43 = vpop.f32.mrf.mxu3  ;;  %v6553_v27 = vstv %s6519_s28  ;;  %v1021_v49 = vsel %vm620_vm0, %v4207_v14, %v4212_v19 }
 0x11e   :  { %vm874_vm15 = vcmp.eq.s32.totalorder %v7637_v55, %v6553_v27  ;;  %vm872_vm14 = vcmp.eq.s32.totalorder %v5854_v1, %v6553_v27 }
 0x11f   :  { %v750_v40 = vadd.f32 %v749_v35, %v727_v34  ;;  %v4351_v35 = vor.u32 %v4904_v25, %v4348_v24  ;;  %v4237_v54 = vsel %vm874_vm15, 1.0, %v7599_v11  ;;  %v4235_v8 = vsel %vm872_vm14, 1.0, %v7599_v11 }
 0x120   :  { %v4208_v25 = vsel %vm785_vm6, 1.0, %v7599_v11  ;;  %vm798_vm6 = vcmp.eq.s32.totalorder %v6019_v56, %v6525_v28 }
 0x121   :  { %v773_v45 = vadd.f32 %v772_v43, %v750_v40  ;;  %v4217_v43 = vsel %vm814_vm11, 1.0, %v7599_v11  ;;  %v4222_v40 = vsel %vm829_vm12, 1.0, %v7599_v11  ;;  %1468 = vmatpush.bf16.msra.mxu1 %v4351_v35  ;;  %vm827_vm11 = vcmp.eq.s32.totalorder %v5854_v1, %v6538_v16 }
 0x122   :  { %v1025_v29 = vsel %vm625_vm1, %v1021_v49, %v4217_v43  ;;  %vm842_vm12 = vcmp.eq.s32.totalorder %v5854_v1, %v6541_v12  ;;  %v4220_v2 = vsel %vm827_vm11, 1.0, %v7599_v11  ;;  %vm845_vm11 = vcmp.eq.s32.totalorder %v5878_v7, %v6541_v12 }
 0x123   :  { %v777_v44 = vadd.f32 %v6494_v17, %v773_v45  ;;  %v4227_v45 = vsel %vm844_vm13, 1.0, %v7599_v11  ;;  %vm857_vm13 = vcmp.eq.s32.totalorder %v5854_v1, %v6548_v47  ;;  %v4225_v21 = vsel %vm842_vm12, 1.0, %v7599_v11 }
 0x124   :  { %v4230_v15 = vsel %vm857_vm13, 1.0, %v7599_v11  ;;  %v1027_v14 = vsel %vm630_vm2, %v1023_v5, %v4220_v2  ;;  %vm860_vm12 = vcmp.eq.s32.totalorder %v5878_v7, %v6548_v47  ;;  %vm875_vm13 = vcmp.eq.s32.totalorder %v5878_v7, %v6553_v27 }
 0x125   :  { %1173 = vadd.xlane.f32.xlu0 %v777_v44  ;;  %v1031_v18 = vsel %vm635_vm3, %v1027_v14, %v4225_v21  ;;  %v4223_v49 = vsel %vm830_vm10, 1.0, %v7599_v11  ;;  %v4228_v35 = vsel %vm845_vm11, 1.0, %v7599_v11  ;;  %vm843_vm10 = vcmp.eq.s32.totalorder %v6019_v56, %v6541_v12 }
 0x126   :  { %v1035_v13 = vsel %vm640_vm4, %v1031_v18, %v4230_v15  ;;  %v4226_v59 = vsel %vm843_vm10, 1.0, %v7599_v11  ;;  %v6703_v2 = vstv %s6635_s7  ;;  %v6706_v21 = vstv %s6642_s13 }
 0x127   :  { %v1039_v24 = vsel %vm645_vm5, %v1035_v13, %v4235_v8  ;;  %v6722_v14 = vstv %s6650_s9 }
 0x184   :  { %v1172_v58 = vpop.xlane.xlu0 %1171 }
 0x185   :  { %v1186_v39 = vmul.f32 %v6501_v22, %v1172_v58  ;;  %v1029_v58 = vsel %vm630_vm2, %v1025_v29, %v4222_v40  ;;  %v4238_v40 = vsel %vm875_vm13, 1.0, %v7599_v11  ;;  %vm873_vm13 = vcmp.eq.s32.totalorder %v6019_v56, %v6553_v27 }
 0x186   :  { %v4236_v12 = vsel %vm873_vm13, 1.0, %v7599_v11 }
 0x187   :  { %v6504_v31 = vsub.f32 %v776_v23, %v1186_v39  ;;  %v4354_v23 = vld [vmem:[#allocation15 + $0x80] sm:$0xf]  ;;  %v4335_v39 = vor.u32 %v4902_v36, %v4334_v50  ;;  %v4211_v36 = vsel %vm798_vm6, 1.0, %v7599_v11 }
 0x188   :  { %v4355_v34 = vor.u32 %v4906_v20, %v4354_v23  ;;  %v4218_v23 = vsel %vm815_vm9, 1.0, %v7599_v11  ;;  %vm828_vm9 = vcmp.eq.s32.totalorder %v6019_v56, %v6538_v16 }
 0x189   :  { %v1194_v38 = vmul.f32 %v6504_v31, %v6504_v31  ;;  %1450 = vmatpush.bf16.msra.mxu0 %v4335_v39  ;;  %v4221_v39 = vsel %vm828_vm9, 1.0, %v7599_v11  ;;  %vm934_vm9 = vcmp.eq.s32.totalorder %v7637_v55, %v6722_v14 }
 0x18a   :  { %1487 = vmatpush.bf16.msra.mxu2 %v4355_v34  ;;  %v4233_v34 = vsel %vm860_vm12, 1.0, %v7599_v11  ;;  %vm858_vm12 = vcmp.eq.s32.totalorder %v6019_v56, %v6548_v47 }
 0x18b   :  { %1198 = vadd.xlane.f32.xlu1 %v1194_v38  ;;  %v4901_v38 = vld [vmem:[#allocation15 + $0x64] sm:$0xf]  ;;  %v4231_v41 = vsel %vm858_vm12, 1.0, %v7599_v11 }
 0x18e   :  { %1488 = vmatpush.bf16.msra.mxu2 %v4343_v6  ;;  %v4900_v6 = vld [vmem:[#allocation15 + $0x58] sm:$0xf0] }
 0x198   :  { %v1174_v33 = vpop.xlane.xlu0 %1173 }
 0x199   :  { %v1187_v62 = vmul.f32 %v6501_v22, %v1174_v33  ;;  %v4336_v33 = vld [vmem:[#allocation15 + $0x6c] sm:$0xf0] }
 0x19b   :  { %v6509_v61 = vsub.f32 %v777_v44, %v1187_v62  ;;  %v6565_v44 = vstv %s6521_s21  ;;  %v1033_v62 = vsel %vm635_vm3, %v1029_v58, %v4227_v45  ;;  %v4899_v58 = vld [vmem:[#allocation15 + $0x50] sm:$0xf0] }
 0x19c   :  { %vm889_vm8 = vcmp.eq.s32.totalorder %v7637_v55, %v6565_v44  ;;  %v1037_v26 = vsel %vm640_vm4, %v1033_v62, %v4232_v52  ;;  %vm887_vm15 = vcmp.eq.s32.totalorder %v5854_v1, %v6565_v44  ;;  %vm890_vm14 = vcmp.eq.s32.totalorder %v5878_v7, %v6565_v44 }
 0x19d   :  { %v1195_v46 = vmul.f32 %v6509_v61, %v6509_v61  ;;  %v4242_v53 = vsel %vm889_vm8, 1.0, %v7599_v11  ;;  %v1041_v37 = vsel %vm645_vm5, %v1037_v26, %v4237_v54  ;;  %vm800_vm8 = vcmp.eq.s32.totalorder %v5878_v7, %v6525_v28  ;;  %v4330_v26 = vld [vmem:[#allocation15 + $0x50] sm:$0xf] }
 0x19e   :  { %v1045_v3 = vsel %vm650_vm7, %v1041_v37, %v4242_v53  ;;  %v4240_v19 = vsel %vm887_vm15, 1.0, %v7599_v11  ;;  %v4213_v51 = vsel %vm800_vm8, 1.0, %v7599_v11  ;;  %vm783_vm15 = vcmp.eq.s32.totalorder %v6019_v56, %v6523_v57  ;;  %v4322_v53 = vld [vmem:[#allocation15 + $0x48] sm:$0xf] }
 0x19f   :  { %1200 = vadd.xlane.f32.xlu1 %v1195_v46  ;;  %v4339_v46 = vor.u32 %v4901_v38, %v4336_v33  ;;  %1137 = vmatmul.f32.vlgmr.msrb.gmra.mxu2 %v1045_v3  ;;  %v1043_v20 = vsel %vm650_vm7, %v1039_v24, %v4240_v19  ;;  %v1022_v43 = vsel %vm620_vm0, %v4208_v25, %v4213_v51  ;;  %v4243_v45 = vsel %vm890_vm14, 1.0, %v7599_v11  ;;  %v4898_v38 = vld [vmem:[#allocation15 + $0x4c] sm:$0xf]  ;;  %v4324_v33 = vld [vmem:[#allocation15 + $0x54] sm:$0xf0] }
 0x1a0   :  { %1091 = vmatmul.f32.vlgmr.msrb.gmra.mxu0 %v1043_v20  ;;  %v1026_v52 = vsel %vm625_vm1, %v1022_v43, %v4218_v23  ;;  %vm813_vm8 = vcmp.eq.s32.totalorder %v6019_v56, %v6531_v42  ;;  %v4206_v50 = vsel %vm783_vm15, 1.0, %v7599_v11  ;;  %vm888_vm14 = vcmp.eq.s32.totalorder %v6019_v56, %v6565_v44  ;;  %v4310_v23 = vld [vmem:[#allocation15 + $0x30] sm:$0xf] }
 0x1a1   :  { %1469 = vmatpush.bf16.msra.mxu1 %v4339_v46  ;;  %v1030_v57 = vsel %vm630_vm2, %v1026_v52, %v4223_v49  ;;  %v4216_v54 = vsel %vm813_vm8, 1.0, %v7599_v11  ;;  %v1020_v60 = vsel %vm620_vm0, %v4206_v50, %v4211_v36  ;;  %v4323_v32 = vor.u32 %v4899_v58, %v4322_v53  ;;  %v4895_v52 = vld [vmem:[#allocation15 + $0x34] sm:$0xf]  ;;  %v4897_v36 = vld [vmem:[#allocation15 + $0x40] sm:$0xf0] }
 0x1a2   :  { %v1034_v42 = vsel %vm635_vm3, %v1030_v57, %v4228_v35  ;;  %v1024_v37 = vsel %vm625_vm1, %v1020_v60, %v4216_v54  ;;  %v4327_v0 = vor.u32 %v4898_v38, %v4324_v33  ;;  %v4331_v3 = vor.u32 %v4900_v6, %v4330_v26  ;;  %v4312_v57 = vld [vmem:[#allocation15 + $0x3c] sm:$0xf0] }
 0x1a3   :  { %v1038_v16 = vsel %vm640_vm4, %v1034_v42, %v4233_v34  ;;  %1451 = vmatpush.bf16.msra.mxu0 %v4323_v32  ;;  %v4241_v27 = vsel %vm888_vm14, 1.0, %v7599_v11  ;;  %vm904_vm15 = vcmp.eq.s32.totalorder %v7637_v55, %v6703_v2  ;;  %vm919_vm8 = vcmp.eq.s32.totalorder %v7637_v55, %v6706_v21  ;;  %v4896_v34 = vld [vmem:[#allocation15 + $0x38] sm:$0xf0]  ;;  %v4318_v42 = vld [vmem:[#allocation15 + $0x38] sm:$0xf] }
 0x1a4   :  { %v1042_v46 = vsel %vm645_vm5, %v1038_v16, %v4238_v40  ;;  %1489 = vmatpush.bf16.msra.mxu2 %v4331_v3  ;;  %v4247_v25 = vsel %vm904_vm15, 1.0, %v7599_v11  ;;  %v6732_v51 = vstv %s6657_s0  ;;  %v6735_v24 = vstv %s6667_s6 }
 0x1a5   :  { %v1046_v47 = vsel %vm650_vm7, %v1042_v46, %v4243_v45  ;;  %1470 = vmatpush.bf16.msra.mxu1 %v4327_v0  ;;  %v4252_v35 = vsel %vm919_vm8, 1.0, %v7599_v11  ;;  %vm949_vm12 = vcmp.eq.s32.totalorder %v7637_v55, %v6732_v51  ;;  %vm964_vm13 = vcmp.eq.s32.totalorder %v7637_v55, %v6735_v24 }
 0x1a6   :  { %1160 = vmatmul.f32.vlgmr.msrb.gmra.mxu3 %v1046_v47  ;;  %v4257_v43 = vsel %vm934_vm9, 1.0, %v7599_v11  ;;  %v4262_v40 = vsel %vm949_vm12, 1.0, %v7599_v11  ;;  %v6758_v45 = vstv %s6692_s24  ;;  %v4267_v50 = vsel %vm964_vm13, 1.0, %v7599_v11  ;;  %s5655_s24 = smov [#allocation28]  }
 0x1a7   :  { %v6771_v54 = vstv %s6708_s4  ;;  %v1049_v53 = vsel %vm620_vm0, %v4247_v25, %v4252_v35  ;;  %v4319_v46 = vor.u32 %v4897_v36, %v4318_v42  ;;  %vm917_vm8 = vcmp.eq.s32.totalorder %v5854_v1, %v6706_v21  ;;  %v6872_v36 = vld [vmem:[#allocation12] ss:$0 sm:$0xff] }
 0x1a8   :  { %vm1009_vm15 = vcmp.eq.s32.totalorder %v7637_v55, %v6771_v54  ;;  %v1053_v16 = vsel %vm625_vm1, %v1049_v53, %v4257_v43  ;;  %vm932_vm9 = vcmp.eq.s32.totalorder %v5854_v1, %v6722_v14  ;;  %v4250_v60 = vsel %vm917_vm8, 1.0, %v7599_v11 }
 0x1a9   :  { %v4282_v38 = vsel %vm1009_vm15, 1.0, %v7599_v11  ;;  %v1057_v33 = vsel %vm630_vm2, %v1053_v16, %v4262_v40  ;;  %1490 = vmatpush.bf16.msra.mxu2 %v4319_v46  ;;  %vm962_vm12 = vcmp.eq.s32.totalorder %v5854_v1, %v6735_v24  ;;  %vm977_vm13 = vcmp.eq.s32.totalorder %v5854_v1, %v6758_v45  ;;  %v4892_v16 = vld [vmem:[#allocation15 + $0x1c] sm:$0xf]  ;;  %v4894_v46 = vld [vmem:[#allocation15 + $0x28] sm:$0xf0] }
 0x1aa   :  { %v4265_v0 = vsel %vm962_vm12, 1.0, %v7599_v11  ;;  %v4270_v3 = vsel %vm977_vm13, 1.0, %v7599_v11  ;;  %vm905_vm8 = vcmp.eq.s32.totalorder %v5878_v7, %v6703_v2  ;;  %vm950_vm12 = vcmp.eq.s32.totalorder %v5878_v7, %v6732_v51 }
 0x1ab   :  { %vm965_vm13 = vcmp.eq.s32.totalorder %v5878_v7, %v6735_v24 }
 0x1ac   :  { %v4268_v43 = vsel %vm965_vm13, 1.0, %v7599_v11  ;;  %vm963_vm13 = vcmp.eq.s32.totalorder %v6019_v56, %v6735_v24 }
 0x1fe   :  { %v1199_v63 = vpop.xlane.xlu1 %1198 }
 0x1ff   :  { %v1206_v4 = vmul.f32 %v1199_v63, %v6501_v22 }
 0x201   :  { %v6607_v9 = vadd.f32 1e-12, %v1206_v4  ;;  %v1028_v4 = vsel %vm630_vm2, %v1024_v37, %v4221_v39  ;;  %v4311_v39 = vor.u32 %v4896_v34, %v4310_v23  ;;  %v4263_v34 = vsel %vm950_vm12, 1.0, %v7599_v11 }
 0x202   :  { %v1032_v15 = vsel %vm635_vm3, %v1028_v4, %v4226_v59  ;;  %v1061_v59 = vsel %vm635_vm3, %v1057_v33, %v4267_v50  ;;  %vm918_vm12 = vcmp.eq.s32.totalorder %v6019_v56, %v6706_v21 }
 0x203   :  { %5079 = vrsqrt.f32 %v6607_v9  ;;  %vm1220_vm11 = vweird.f32 %v6607_v9  ;;  %v1036_v8 = vsel %vm640_vm4, %v1032_v15, %v4231_v41  ;;  %1452 = vmatpush.bf16.msra.mxu0 %v4311_v39  ;;  %v4300_v39 = vld [vmem:[#allocation15 + $0x24] sm:$0xf0] }
 0x204   :  { %v1040_v18 = vsel %vm645_vm5, %v1036_v8, %v4236_v12 }
 0x205   :  { %v1044_v13 = vsel %vm650_vm7, %v1040_v18, %v4241_v27 }
 0x206   :  { %1114 = vmatmul.f32.vlgmr.msrb.gmra.mxu1 %v1044_v13 }
 0x209   :  { %v6659_v29 = vpop.eup %5079 }
 0x20a   :  { %v1215_v28 = vmul.f32 %v6659_v29, %v6607_v9  ;;  %vm1221_vm6 = vweird.f32 %v6659_v29 }
 0x20b   :  { %vm6741_vm10 = vmor %vm1220_vm11, %vm1221_vm6  ;;  %vm979_vm11 = vcmp.eq.s32.totalorder %v7637_v55, %v6758_v45  ;;  %vm902_vm6 = vcmp.eq.s32.totalorder %v5854_v1, %v6703_v2 }
 0x20c   :  { %v1216_v62 = vmul.f32 %v6659_v29, %v1215_v28  ;;  %v6765_v28 = vstv %s6699_s26  ;;  %v4245_v26 = vsel %vm902_vm6, 1.0, %v7599_v11  ;;  %vm1007_vm6 = vcmp.eq.s32.totalorder %v5854_v1, %v6771_v54  ;;  %s4106_s26 = sshll.u32 %s5655_s24, 4  ;;  %s4107_s26 = int_to_ptr.vmem [resolvable:$true] %s4106_s26 }
 0x20d   :  { %vm994_vm14 = vcmp.eq.s32.totalorder %v7637_v55, %v6765_v28  ;;  %vm992_vm15 = vcmp.eq.s32.totalorder %v5854_v1, %v6765_v28  ;;  %v1047_v4 = vsel %vm620_vm0, %v4245_v26, %v4250_v60  ;;  %v4890_v26 = vld [vmem:[#allocation15 + $0x8] sm:$0xf0] }
 0x20e   :  { %v1217_v63 = vmul.f32 0.5, %v1216_v62  ;;  %v4277_v58 = vsel %vm994_vm14, 1.0, %v7599_v11  ;;  %v4315_v62 = vor.u32 %v4895_v52, %v4312_v57  ;;  %v4275_v15 = vsel %vm992_vm15, 1.0, %v7599_v11 }
 0x20f   :  { %vm980_vm15 = vcmp.eq.s32.totalorder %v5878_v7, %v6758_v45 }
 0x210   :  { %v1218_v10 = vsub.f32 1.5, %v1217_v63  ;;  %1471 = vmatpush.bf16.msra.mxu1 %v4315_v62  ;;  %v4255_v63 = vsel %vm932_vm9, 1.0, %v7599_v11  ;;  %vm920_vm9 = vcmp.eq.s32.totalorder %v5878_v7, %v6706_v21  ;;  %v4893_v21 = vld [vmem:[#allocation15 + $0x20] sm:$0xf0]  ;;  %v4306_v62 = vld [vmem:[#allocation15 + $0x20] sm:$0xf] }
 0x211   :  { %v4253_v13 = vsel %vm920_vm9, 1.0, %v7599_v11 }
 0x212   :  { %v1201_v5 = vpop.xlane.xlu1 %1200  ;;  %v1219_v44 = vmul.f32 %v6659_v29, %v1218_v10  ;;  %v1051_v10 = vsel %vm625_vm1, %v1047_v4, %v4255_v63  ;;  %v6896_v63 = vld [vmem:[#allocation13] ss:$0 sm:$0xff]  ;;  %v4889_v4 = vld [vmem:[#allocation15 + $0x4] sm:$0xf] }
 0x213   :  { %v1207_v19 = vmul.f32 %v1201_v5, %v6501_v22 }
 0x214   :  { %v1223_v9 = vsel %vm6741_vm10, %v6659_v29, %v1219_v44  ;;  %v4272_v29 = vsel %vm979_vm11, 1.0, %v7599_v11  ;;  %vm947_vm10 = vcmp.eq.s32.totalorder %v5854_v1, %v6732_v51  ;;  %v4280_v1 = vsel %vm1007_vm6, 1.0, %v7599_v11 }
 0x215   :  { %v6745_v49 = vadd.f32 1e-12, %v1207_v19  ;;  %v6788_v55 = vmul.f32 %v1223_v9, %v6504_v31  ;;  %v1065_v41 = vsel %vm640_vm4, %v1061_v59, %v4272_v29  ;;  %v4260_v12 = vsel %vm947_vm10, 1.0, %v7599_v11 }
 0x216   :  { %v1069_v47 = vsel %vm645_vm5, %v1065_v41, %v4277_v58  ;;  %v1055_v5 = vsel %vm630_vm2, %v1051_v10, %v4260_v12  ;;  %vm935_vm10 = vcmp.eq.s32.totalorder %v5878_v7, %v6722_v14  ;;  %v4248_v44 = vsel %vm905_vm8, 1.0, %v7599_v11 }
 0x217   :  { %5081 = vrsqrt.f32 %v6745_v49  ;;  %v1073_v32 = vsel %vm650_vm7, %v1069_v47, %v4282_v38  ;;  %vm1230_vm11 = vweird.f32 %v6745_v49  ;;  %v1059_v8 = vsel %vm635_vm3, %v1055_v5, %v4265_v0 }
 0x218   :  { %1140 = vmatmul.f32.gmra.mxu2 %v1073_v32  ;;  %v1063_v18 = vsel %vm640_vm4, %v1059_v8, %v4270_v3  ;;  %v4258_v23 = vsel %vm935_vm10, 1.0, %v7599_v11  ;;  %vm995_vm6 = vcmp.eq.s32.totalorder %v5878_v7, %v6765_v28  ;;  %vm1010_vm8 = vcmp.eq.s32.totalorder %v5878_v7, %v6771_v54  ;;  %v4891_v32 = vld [vmem:[#allocation15 + $0x10] sm:$0xf0]  ;;  %v4288_v3 = vld [vmem:[#allocation15 + $0xc] sm:$0xf0] }
 0x219   :  { %v1067_v25 = vsel %vm645_vm5, %v1063_v18, %v4275_v15  ;;  %v1050_v40 = vsel %vm620_vm0, %v4248_v44, %v4253_v13  ;;  %vm903_vm10 = vcmp.eq.s32.totalorder %v6019_v56, %v6703_v2  ;;  %v4278_v52 = vsel %vm995_vm6, 1.0, %v7599_v11  ;;  %v4298_v2 = vld [vmem:[#allocation15 + $0x18] sm:$0xf] }
 0x21a   :  { %v1071_v35 = vsel %vm650_vm7, %v1067_v25, %v4280_v1  ;;  %v1054_v57 = vsel %vm625_vm1, %v1050_v40, %v4258_v23  ;;  %v4283_v50 = vsel %vm1010_vm8, 1.0, %v7599_v11  ;;  %v4246_v53 = vsel %vm903_vm10, 1.0, %v7599_v11 }
 0x21b   :  { %1094 = vmatmul.f32.gmra.mxu0 %v1071_v35  ;;  %v1058_v42 = vsel %vm630_vm2, %v1054_v57, %v4263_v34  ;;  %v4251_v58 = vsel %vm918_vm12, 1.0, %v7599_v11  ;;  %v4266_v41 = vsel %vm963_vm13, 1.0, %v7599_v11  ;;  %vm993_vm6 = vcmp.eq.s32.totalorder %v6019_v56, %v6765_v28 }
 0x21c   :  { %v1062_v29 = vsel %vm635_vm3, %v1058_v42, %v4268_v43  ;;  %vm1008_vm8 = vcmp.eq.s32.totalorder %v6019_v56, %v6771_v54  ;;  %v1048_v47 = vsel %vm620_vm0, %v4246_v53, %v4251_v58  ;;  %v4299_v60 = vor.u32 %v4893_v21, %v4298_v2 }
 0x21d   :  { %v6792_v6 = vpop.eup %5081  ;;  %v4307_v0 = vor.u32 %v4894_v46, %v4306_v62  ;;  %v4276_v10 = vsel %vm993_vm6, 1.0, %v7599_v11  ;;  %v1261_v5 = vmul.f32 %v6872_v36, %v6788_v55  ;;  %v1092_v54 = vpop.f32.mrf.mxu0 }
 0x21e   :  { %v1225_v31 = vmul.f32 %v6792_v6, %v6745_v49  ;;  %vm1231_vm14 = vweird.f32 %v6792_v6  ;;  %v4273_v49 = vsel %vm980_vm15, 1.0, %v7599_v11  ;;  %vm978_vm15 = vcmp.eq.s32.totalorder %v6019_v56, %v6758_v45  ;;  %1453 = vmatpush.bf16.msra.mxu0 %v4299_v60 }
 0x21f   :  { %vm6850_vm9 = vmor %vm1230_vm11, %vm1231_vm14  ;;  %vm933_vm11 = vcmp.eq.s32.totalorder %v6019_v56, %v6722_v14  ;;  %vm948_vm14 = vcmp.eq.s32.totalorder %v6019_v56, %v6732_v51  ;;  %v1066_v38 = vsel %vm640_vm4, %v1062_v29, %v4273_v49  ;;  %v4271_v51 = vsel %vm978_vm15, 1.0, %v7599_v11  ;;  %1491 = vmatpush.bf16.msra.mxu2 %v4307_v0 }
 0x220   :  { %v1226_v37 = vmul.f32 %v6792_v6, %v1225_v31  ;;  %v4256_v33 = vsel %vm933_vm11, 1.0, %v7599_v11  ;;  %v1070_v59 = vsel %vm645_vm5, %v1066_v38, %v4278_v52  ;;  %v4261_v24 = vsel %vm948_vm14, 1.0, %v7599_v11  ;;  %v4294_v31 = vld [vmem:[#allocation15 + $0x8] sm:$0xf] }
 0x221   :  { %v1052_v12 = vsel %vm625_vm1, %v1048_v47, %v4256_v33  ;;  %v4281_v45 = vsel %vm1008_vm8, 1.0, %v7599_v11  ;;  %v4295_v8 = vor.u32 %v4891_v32, %v4294_v31  ;;  %v6919_v13 = vadd.f32 %v6896_v63, %v1261_v5 }
 0x222   :  { %v1227_v27 = vmul.f32 0.5, %v1226_v37  ;;  %v4303_v37 = vor.u32 %v4892_v16, %v4300_v39  ;;  %v1093_v25 = vadd.f32 %v1092_v54, %v6491_v48  ;;  %vm1507_vm1 = vcmask 523264  }
 0x223   :  { %1492 = vmatpush.bf16.msra.mxu2 %v4295_v8 }
 0x224   :  { %v1228_v19 = vsub.f32 1.5, %v1227_v27  ;;  %v1056_v27 = vsel %vm630_vm2, %v1052_v12, %v4261_v24  ;;  %1472 = vmatpush.bf16.msra.mxu1 %v4303_v37  ;;  %vm1532_vm2 = vcmask 130048  }
 0x225   :  { %v1060_v1 = vsel %vm635_vm3, %v1056_v27, %v4266_v41 }
 0x226   :  { %v1229_v20 = vmul.f32 %v6792_v6, %v1228_v19  ;;  %v1064_v44 = vsel %vm640_vm4, %v1060_v1, %v4271_v51  ;;  %v4291_v19 = vor.u32 %v4889_v4, %v4288_v3 }
 0x227   :  { %v1068_v18 = vsel %vm645_vm5, %v1064_v44, %v4276_v10 }
 0x228   :  { %v1233_v7 = vsel %vm6850_vm9, %v6792_v6, %v1229_v20  ;;  %v1074_v6 = vsel %vm650_vm7, %v1070_v59, %v4283_v50  ;;  %v1072_v56 = vsel %vm650_vm7, %v1068_v18, %v4281_v45  ;;  %1473 = vmatpush.bf16.msra.mxu1 %v4291_v19  ;;  %v1138_v20 = vpop.f32.mrf.mxu2  ;;  %v1311_v50 = vld [vmem:[%s7504_s8] sm:$0x7] }
 0x229   :  { %v1255_v14 = vmul.f32 %v1233_v7, %v6509_v61  ;;  %v4286_v61 = vld [vmem:[#allocation15] sm:$0xf]  ;;  %1163 = vmatmul.f32.gmra.mxu3 %v1074_v6  ;;  %1117 = vmatmul.f32.gmra.mxu1 %v1072_v56  ;;  %v1161_v34 = vpop.f32.mrf.mxu3  ;;  %v6933_v2 = vperm.slane %v1311_v50, 1  ;;  %v6935_v48 = vperm.slane %v1311_v50, 2  ;;  %v6943_v62 = vperm.slane %v1311_v50, 0 }
 0x22a   :  { %v4287_v15 = vor.u32 %v4890_v26, %v4286_v61  ;;  %v1272_v61 = vld [vmem:[#allocation4] sm:$0x3] }
 0x22b   :  { %v1262_v28 = vmul.f32 %v6872_v36, %v1255_v14  ;;  %v1273_v26 = vsub.f32 1.0, %v1272_v61 }
 0x22c   :  { %1454 = vmatpush.bf16.msra.mxu0 %v4287_v15 }
 0x22d   :  { %v6922_v55 = vadd.f32 %v6896_v63, %v1262_v28  ;;  %v6950_v47 = vmul.f32 -10000.0, %v1273_v26 }
 0x22f   :  { %v1277_v11 = vpack.c.bf16 %v6922_v55, %v6919_v13  ;;  %v6953_v60 = vperm.slane %v6950_v47, 0 }
 0x231   :  { %1455 = vmatmul.bf16.vlgmr.msra.gmra.mxu0 %v1277_v11  ;;  %1493 = vmatmul.bf16.vlgmr.msra.gmra.mxu2 %v1277_v11 }
 0x232   :  { %1474 = vmatmul.bf16.vlgmr.msra.gmra.mxu1 %v1277_v11 }
 0x283   :  { %v1115_v23 = vpop.f32.mrf.mxu1 }
 0x284   :  { %v1116_v35 = vadd.f32 %v1115_v23, %v1093_v25 }
 0x286   :  { %v1139_v9 = vadd.f32 %v1138_v20, %v1116_v35 }
 0x288   :  { %v6928_v43 = vadd.f32 %v1161_v34, %v1139_v9 }
 0x28a   :  { %v1167_v23 = vadd.f32 %v6494_v17, %v6928_v43 }
 0x298   :  { %v1095_v49 = vpop.f32.mrf.mxu0 }
 0x299   :  { %v1096_v56 = vadd.f32 %v1095_v49, %v6497_v30 }
 0x29b   :  { %v1141_v7 = vpop.f32.mrf.mxu2 }
 0x2a6   :  { %v1118_v40 = vpop.f32.mrf.mxu1 }
 0x2a7   :  { %v1119_v54 = vadd.f32 %v1118_v40, %v1096_v56 }
 0x2a9   :  { %v1142_v25 = vadd.f32 %v1141_v7, %v1119_v54 }
 0x2ac   :  { %v1164_v6 = vpop.f32.mrf.mxu3 }
 0x2ad   :  { %v1165_v20 = vadd.f32 %v1164_v6, %v1142_v25 }
 0x2ae   :  { %v1456_v42 = vpop.f32.mrf.mxu0 }
 0x2af   :  { %v1475_v52 = vpop.f32.mrf.mxu1  ;;  %v1457_v24 = vadd.f32 %v1456_v42, %v6943_v62  ;;  %v1168_v35 = vadd.f32 %v6494_v17, %v1165_v20 }
 0x2b0   :  { %v1476_v29 = vadd.f32 %v1475_v52, %v6933_v2 }
 0x2b4   :  { %v1494_v57 = vpop.f32.mrf.mxu2 }
 0x2b5   :  { %v1495_v16 = vadd.f32 %v1494_v57, %v6935_v48 }
 0x2b6   :  { %v1458_v38 = vpop.f32.mrf.mxu0 }
 0x2b7   :  { %v1477_v21 = vpop.f32.mrf.mxu1  ;;  %v1459_v59 = vadd.f32 %v1458_v38, %v6943_v62 }
 0x2b8   :  { %v1478_v53 = vadd.f32 %v1477_v21, %v6933_v2 }
 0x2b9   :  { %v1504_v41 = vpack.c.bf16 %v1459_v59, %v1457_v24 }
 0x2ba   :  { %v1505_v14 = vpack.c.bf16 %v1478_v53, %v1476_v29 }
 0x2bc   :  { %v1496_v58 = vpop.f32.mrf.mxu2  ;;  %v1512_v46 = vsel %vm1507_vm1, %v1505_v14, 0 }
 0x2bd   :  { %v1497_v39 = vadd.f32 %v1496_v58, %v6935_v48  ;;  %1521 = vmatpush.bf16.xpose.msra.mxu3 %v1512_v46 }
 0x2bf   :  { %v6941_v33 = vpack.c.bf16 %v1497_v39, %v1495_v16 }
 0x2c4   :  { %4380 = vmatmul.msk.bf16.vlgmr.msra.gmra.mxu3 %vm1507_vm1, %v1504_v41 }
 0x2c5   :  { %1592 = vmatpush.bf16.msrb.mxu3 %v6941_v33 }
 0x347   :  { %v1523_v31 = vpop.f32.mrf.mxu3 }
 0x348   :  { %v1528_v32 = vmul.f32 0.125, %v1523_v31 }
 0x34a   :  { %v1530_v51 = vadd.f32 %v1528_v32, %v6953_v60 }
 0x34c   :  { %v1533_v12 = vsel %vm1532_vm2, %v1530_v51, -inf }
 0x34d   :  { %1534 = vmax.xlane.f32.xlu2 %v1533_v12 }
 0x34f   :  { %v1525_v37 = vpop.f32.mrf.mxu3 }
 0x350   :  { %v1529_v0 = vmul.f32 0.125, %v1525_v37 }
 0x352   :  { %v1531_v4 = vadd.f32 %v1529_v0, %v6953_v60 }
 0x354   :  { %v1536_v3 = vsel %vm1532_vm2, %v1531_v4, -inf }
 0x355   :  { %1537 = vmax.xlane.f32.xlu2 %v1536_v3 }
 0x36d   :  { %1612 = vrot.lane.b32.xlu2 %v1505_v14, %s7575_s30 }
 0x3c0   :  { %v1535_v10 = vpop.xlane.xlu2 %1534 }
 0x3c1   :  { %v1539_v27 = vsub.f32 %v1530_v51, %v1535_v10 }
 0x3c3   :  { %v1541_v15 = vmul.f32 1.442695, %v1539_v27 }
 0x3c5   :  { %5083 = vpow2.f32 %v1541_v15 }
 0x3c8   :  { %v1538_v5 = vpop.xlane.xlu2 %1537 }
 0x3c9   :  { %v1540_v45 = vsub.f32 %v1531_v4, %v1538_v5 }
 0x3cb   :  { %v5084_v1 = vpop.eup %5083  ;;  %v1543_v8 = vmul.f32 1.442695, %v1540_v45 }
 0x3cc   :  { %v1545_v28 = vsel %vm1532_vm2, %v5084_v1, 0.0 }
 0x3cd   :  { %5085 = vpow2.f32 %v1543_v8  ;;  %1546 = vadd.xlane.f32.xlu0 %v1545_v28 }
 0x3d0   :  { %v1613_v44 = vpop.permute.xlu2 %1612 }
 0x3d1   :  { %v1618_v19 = vsel %vm1507_vm1, %v1613_v44, 0 }
 0x3d2   :  { %1627 = vmatpush.bf16.xpose.msra.mxu3 %v1618_v19 }
 0x3d3   :  { %v5086_v18 = vpop.eup %5085 }
 0x3d4   :  { %v1548_v11 = vsel %vm1532_vm2, %v5086_v18, 0.0 }
 0x3d5   :  { %1549 = vadd.xlane.f32.xlu1 %v1548_v11 }
 0x3dd   :  { %1175 = vadd.xlane.f32.xlu1 %v1167_v23 }
 0x3e1   :  { %1609 = vrot.lane.b32.xlu0 %v1504_v41, %s7575_s30 }
 0x3e5   :  { %1177 = vadd.xlane.f32.xlu1 %v1168_v35 }
 0x440   :  { %v1547_v34 = vpop.xlane.xlu0 %1546 }
 0x441   :  { %5087 = vrcp.f32 %v1547_v34  ;;  %v1562_v42 = vand.u32 2147483648, %v1547_v34  ;;  %vm1556_vm4 = vweird.f32 %v1547_v34  ;;  %v1560_v29 = vand.u32 2147483647, %v1547_v34 }
 0x443   :  { %v1563_v38 = vor.u32 1.1754944e-38, %v1562_v42  ;;  %vm1561_vm9 = vcmp.eq.f32.partialorder %v1560_v29, 8.507059e+37 }
 0x447   :  { %v5088_v9 = vpop.eup %5087 }
 0x448   :  { %v1552_v52 = vmul.f32 %v5088_v9, %v1547_v34  ;;  %v1550_v30 = vpop.xlane.xlu1 %1549  ;;  %vm1557_vm3 = vweird.f32 %v5088_v9 }
 0x449   :  { %5089 = vrcp.f32 %v1550_v30  ;;  %vm1558_vm5 = vmor %vm1556_vm4, %vm1557_vm3  ;;  %v1577_v53 = vand.u32 2147483648, %v1550_v30  ;;  %v1575_v14 = vand.u32 2147483647, %v1550_v30  ;;  %vm1571_vm10 = vweird.f32 %v1550_v30 }
 0x44a   :  { %v1553_v49 = vsub.f32 1.0, %v1552_v52 }
 0x44b   :  { %v1578_v41 = vor.u32 1.1754944e-38, %v1577_v53  ;;  %vm1576_vm11 = vcmp.eq.f32.partialorder %v1575_v14, 8.507059e+37 }
 0x44c   :  { %v1554_v57 = vmul.f32 %v5088_v9, %v1553_v49 }
 0x44e   :  { %v1555_v7 = vadd.f32 %v5088_v9, %v1554_v57  ;;  %v6989_v57 = vld [vmem:[#allocation16 + $0x10] sm:$0xff] }
 0x44f   :  { %v5090_v40 = vpop.eup %5089 }
 0x450   :  { %v1567_v50 = vmul.f32 %v5090_v40, %v1550_v30  ;;  %v1176_v43 = vpop.xlane.xlu1 %1175  ;;  %v1559_v16 = vsel %vm1558_vm5, %v5088_v9, %v1555_v7  ;;  %vm1572_vm7 = vweird.f32 %v5090_v40 }
 0x451   :  { %v1188_v21 = vmul.f32 %v6501_v22, %v1176_v43  ;;  %v1564_v24 = vsel %vm1561_vm9, %v1563_v38, %v1559_v16  ;;  %vm1573_vm12 = vmor %vm1571_vm10, %vm1572_vm7 }
 0x452   :  { %v1568_v17 = vsub.f32 1.0, %v1567_v50  ;;  %v1565_v6 = vmul.f32 %v5084_v1, %v1564_v24 }
 0x453   :  { %v6969_v58 = vsub.f32 %v1167_v23, %v1188_v21  ;;  %v1610_v51 = vpop.permute.xlu0 %1609  ;;  %v6996_v21 = vld [vmem:[#allocation16 + $0x8] sm:$0xff] }
 0x454   :  { %v1569_v39 = vmul.f32 %v5090_v40, %v1568_v17  ;;  %v6999_v17 = vld [vmem:[#allocation16] sm:$0xff] }
 0x455   :  { %v1196_v46 = vmul.f32 %v6969_v58, %v6969_v58 }
 0x456   :  { %v1570_v59 = vadd.f32 %v5090_v40, %v1569_v39 }
 0x457   :  { %1202 = vadd.xlane.f32.xlu0 %v1196_v46 }
 0x458   :  { %v1574_v61 = vsel %vm1573_vm12, %v5090_v40, %v1570_v59  ;;  %v1178_v4 = vpop.xlane.xlu1 %1177 }
 0x459   :  { %v1579_v26 = vsel %vm1576_vm11, %v1578_v41, %v1574_v61  ;;  %v1189_v27 = vmul.f32 %v6501_v22, %v1178_v4 }
 0x45a   :  { %v1580_v31 = vmul.f32 %v5086_v18, %v1579_v26 }
 0x45b   :  { %v1193_v5 = vsub.f32 %v1168_v35, %v1189_v27  ;;  %v6985_v35 = vld [vmem:[#allocation16 + $0x18] sm:$0xff] }
 0x45c   :  { %v1581_v32 = vpack.c.bf16 %v1580_v31, %v1565_v6  ;;  %1789 = vmatpush.bf16.msrb.mxu2 %v6985_v35 }
 0x45d   :  { %v1197_v28 = vmul.f32 %v1193_v5, %v1193_v5 }
 0x45e   :  { %4381 = vmatmul.msk.bf16.vlgmr.msrb.gmra.mxu3 %vm1532_vm2, %v1581_v32 }
 0x460   :  { %1790 = vmatpush.bf16.msrb.mxu2 %v6989_v57 }
 0x464   :  { %1791 = vmatpush.bf16.msrb.mxu2 %v6996_v21 }
 0x468   :  { %1792 = vmatpush.bf16.msrb.mxu2 %v6999_v17 }
 0x46e   :  { %4382 = vmatmul.msk.bf16.vlgmr.msra.gmra.mxu3 %vm1507_vm1, %v1610_v51 }
 0x4ca   :  { %v1203_v19 = vpop.xlane.xlu0 %1202 }
 0x4cb   :  { %v1208_v18 = vmul.f32 %v1203_v19, %v6501_v22 }
 0x4cd   :  { %v1212_v56 = vadd.f32 1e-12, %v1208_v18 }
 0x4cf   :  { %5091 = vrsqrt.f32 %v1212_v56  ;;  %vm1240_vm13 = vweird.f32 %v1212_v56 }
 0x4d5   :  { %v5092_v54 = vpop.eup %5091 }
 0x4d6   :  { %v1235_v20 = vmul.f32 %v5092_v54, %v1212_v56  ;;  %vm1241_vm14 = vweird.f32 %v5092_v54 }
 0x4d7   :  { %vm1242_vm15 = vmor %vm1240_vm13, %vm1241_vm14 }
 0x4d8   :  { %v1236_v34 = vmul.f32 %v5092_v54, %v1235_v20 }
 0x4da   :  { %v1237_v43 = vmul.f32 0.5, %v1236_v34 }
 0x4dc   :  { %v1238_v29 = vsub.f32 1.5, %v1237_v43  ;;  %v4919_v43 = vld [vmem:[#allocation16 + $0x30] sm:$0xff] }
 0x4de   :  { %v1239_v39 = vmul.f32 %v5092_v54, %v1238_v29 }
 0x4e0   :  { %v1243_v59 = vsel %vm1242_vm15, %v5092_v54, %v1239_v39 }
 0x4e1   :  { %v6975_v12 = vpop.f32.mrf.mxu3  ;;  %v1256_v61 = vmul.f32 %v1243_v59, %v6969_v58 }
 0x4e3   :  { %v1263_v32 = vmul.f32 %v6872_v36, %v1256_v61 }
 0x4e9   :  { %v6977_v37 = vpop.f32.mrf.mxu3 }
 0x4ea   :  { %v1599_v58 = vpack.c.bf16 %v6977_v37, %v6975_v12 }
 0x4f1   :  { %v1629_v0 = vpop.f32.mrf.mxu3 }
 0x4f2   :  { %v1634_v3 = vmul.f32 0.125, %v1629_v0  ;;  %v7010_v0 = vadd.f32 %v6896_v63, %v1263_v32 }
 0x4f4   :  { %v1636_v10 = vadd.f32 %v1634_v3, %v6953_v60 }
 0x4f6   :  { %v1638_v15 = vsel %vm1532_vm2, %v1636_v10, -inf }
 0x4f7   :  { %1639 = vmax.xlane.f32.xlu1 %v1638_v15 }
 0x4f9   :  { %v1631_v45 = vpop.f32.mrf.mxu3 }
 0x4fa   :  { %v1635_v1 = vmul.f32 0.125, %v1631_v45 }
 0x4fc   :  { %v1637_v8 = vadd.f32 %v1635_v1, %v6953_v60 }
 0x4fe   :  { %v1641_v44 = vsel %vm1532_vm2, %v1637_v8, -inf }
 0x4ff   :  { %1204 = vadd.xlane.f32.xlu1 %v1197_v28  ;;  %1642 = vmax.xlane.f32.xlu2 %v1641_v44 }
 0x56a   :  { %v1640_v11 = vpop.xlane.xlu1 %1639 }
 0x56b   :  { %v1644_v25 = vsub.f32 %v1636_v10, %v1640_v11 }
 0x56d   :  { %v1646_v23 = vmul.f32 1.442695, %v1644_v25 }
 0x56f   :  { %5093 = vpow2.f32 %v1646_v23 }
 0x572   :  { %v1205_v9 = vpop.xlane.xlu1 %1204  ;;  %v1643_v52 = vpop.xlane.xlu2 %1642 }
 0x573   :  { %v1209_v30 = vmul.f32 %v1205_v9, %v6501_v22  ;;  %v1645_v49 = vsub.f32 %v1637_v8, %v1643_v52 }
 0x575   :  { %v6991_v40 = vpop.eup %5093  ;;  %v1213_v7 = vadd.f32 1e-12, %v1209_v30  ;;  %v1648_v50 = vmul.f32 1.442695, %v1645_v49  ;;  %v4920_v49 = vld [vmem:[#allocation16 + $0x38] sm:$0xff] }
 0x576   :  { %v1650_v42 = vsel %vm1532_vm2, %v6991_v40, 0.0  ;;  %1748 = vmatpush.bf16.msrb.mxu1 %v4920_v49 }
 0x577   :  { %5095 = vrsqrt.f32 %v1213_v7  ;;  %1651 = vadd.xlane.f32.xlu1 %v1650_v42  ;;  %vm1250_vm8 = vweird.f32 %v1213_v7  ;;  %v4918_v42 = vld [vmem:[#allocation16 + $0x28] sm:$0xff] }
 0x578   :  { %5097 = vpow2.f32 %v1648_v50 }
 0x57a   :  { %1749 = vmatpush.bf16.msrb.mxu1 %v4919_v43 }
 0x57d   :  { %v5096_v53 = vpop.eup %5095 }
 0x57e   :  { %v7001_v16 = vpop.eup %5097  ;;  %v1245_v14 = vmul.f32 %v5096_v53, %v1213_v7  ;;  %vm1251_vm6 = vweird.f32 %v5096_v53  ;;  %1750 = vmatpush.bf16.msrb.mxu1 %v4918_v42 }
 0x57f   :  { %v1653_v38 = vsel %vm1532_vm2, %v7001_v16, 0.0  ;;  %vm1252_vm3 = vmor %vm1250_vm8, %vm1251_vm6 }
 0x580   :  { %v1246_v46 = vmul.f32 %v5096_v53, %v1245_v14  ;;  %1654 = vadd.xlane.f32.xlu1 %v1653_v38 }
 0x582   :  { %v1247_v24 = vmul.f32 0.5, %v1246_v46 }
 0x584   :  { %v1248_v41 = vsub.f32 1.5, %v1247_v24 }
 0x586   :  { %v1249_v26 = vmul.f32 %v5096_v53, %v1248_v41 }
 0x588   :  { %v1253_v6 = vsel %vm1252_vm3, %v5096_v53, %v1249_v26 }
 0x589   :  { %v1257_v31 = vmul.f32 %v1253_v6, %v1193_v5 }
 0x58b   :  { %v1264_v51 = vmul.f32 %v6872_v36, %v1257_v31 }
 0x58d   :  { %v7013_v4 = vadd.f32 %v6896_v63, %v1264_v51 }
 0x58f   :  { %v1278_v3 = vpack.c.bf16 %v7013_v4, %v7010_v0 }
 0x591   :  { %1460 = vmatmul.bf16.gmra.mxu0 %v1278_v3  ;;  %1479 = vmatmul.bf16.gmra.mxu1 %v1278_v3 }
 0x592   :  { %1498 = vmatmul.bf16.gmra.mxu2 %v1278_v3 }
 0x599   :  { %1688 = vrot.lane.b32.xlu1 %v6941_v33, %s7575_s30 }
 0x5a2   :  { %4417 = vmatmul.msk.bf16.vlgmr.msrb.gmra.mxu2 %vm1507_vm1, %v1599_v58 }
 0x5ea   :  { %v1652_v36 = vpop.xlane.xlu1 %1651 }
 0x5eb   :  { %5099 = vrcp.f32 %v1652_v36  ;;  %v1667_v37 = vand.u32 2147483648, %v1652_v36  ;;  %vm1661_vm10 = vweird.f32 %v1652_v36  ;;  %v1665_v18 = vand.u32 2147483647, %v1652_v36 }
 0x5ed   :  { %v1668_v25 = vor.u32 1.1754944e-38, %v1667_v37  ;;  %vm1666_vm14 = vcmp.eq.f32.partialorder %v1665_v18, 8.507059e+37 }
 0x5f1   :  { %v5100_v10 = vpop.eup %5099 }
 0x5f2   :  { %v1657_v63 = vmul.f32 %v5100_v10, %v1652_v36  ;;  %vm1662_vm5 = vweird.f32 %v5100_v10 }
 0x5f3   :  { %v1655_v27 = vpop.xlane.xlu1 %1654  ;;  %vm1663_vm12 = vmor %vm1661_vm10, %vm1662_vm5 }
 0x5f4   :  { %5101 = vrcp.f32 %v1655_v27  ;;  %v1658_v15 = vsub.f32 1.0, %v1657_v63  ;;  %v1682_v33 = vand.u32 2147483648, %v1655_v27  ;;  %vm1676_vm7 = vweird.f32 %v1655_v27 }
 0x5f5   :  { %v1680_v12 = vand.u32 2147483647, %v1655_v27 }
 0x5f6   :  { %v1659_v1 = vmul.f32 %v5100_v10, %v1658_v15  ;;  %v1683_v11 = vor.u32 1.1754944e-38, %v1682_v33 }
 0x5f7   :  { %vm1681_vm11 = vcmp.eq.f32.partialorder %v1680_v12, 8.507059e+37  ;;  %v7054_v12 = vld [vmem:[#allocation18] ss:$0 sm:$0xff] }
 0x5f8   :  { %v1660_v44 = vadd.f32 %v5100_v10, %v1659_v1 }
 0x5fa   :  { %v5102_v5 = vpop.eup %5101  ;;  %v1664_v54 = vsel %vm1663_vm12, %v5100_v10, %v1660_v44 }
 0x5fb   :  { %v1672_v45 = vmul.f32 %v5102_v5, %v1655_v27  ;;  %vm1677_vm4 = vweird.f32 %v5102_v5  ;;  %v1669_v20 = vsel %vm1666_vm14, %v1668_v25, %v1664_v54 }
 0x5fc   :  { %vm1678_vm9 = vmor %vm1676_vm7, %vm1677_vm4  ;;  %v1670_v9 = vmul.f32 %v6991_v40, %v1669_v20 }
 0x5fd   :  { %v1673_v8 = vsub.f32 1.0, %v1672_v45 }
 0x5ff   :  { %v1674_v28 = vmul.f32 %v5102_v5, %v1673_v8 }
 0x601   :  { %v1675_v19 = vadd.f32 %v5102_v5, %v1674_v28 }
 0x603   :  { %v1679_v56 = vsel %vm1678_vm9, %v5102_v5, %v1675_v19 }
 0x604   :  { %v1684_v23 = vsel %vm1681_vm11, %v1683_v11, %v1679_v56 }
 0x605   :  { %v1685_v34 = vmul.f32 %v7001_v16, %v1684_v23 }
 0x607   :  { %v1686_v30 = vpack.c.bf16 %v1685_v34, %v1670_v9 }
 0x60b   :  { %v1689_v52 = vpop.permute.xlu1 %1688 }
 0x60c   :  { %1701 = vmatpush.bf16.msrb.mxu0 %v1689_v52 }
 0x60e   :  { %v1461_v7 = vpop.f32.mrf.mxu0  ;;  %v1480_v50 = vpop.f32.mrf.mxu1 }
 0x60f   :  { %4383 = vmatmul.msk.bf16.vlgmr.msrb.gmra.mxu0 %vm1532_vm2, %v1686_v30  ;;  %v1462_v14 = vadd.f32 %v1461_v7, %v6943_v62  ;;  %v1481_v16 = vadd.f32 %v1480_v50, %v6933_v2 }
 0x615   :  { %v1499_v29 = vpop.f32.mrf.mxu2 }
 0x616   :  { %v1463_v53 = vpop.f32.mrf.mxu0  ;;  %v1482_v39 = vpop.f32.mrf.mxu1  ;;  %v1500_v61 = vadd.f32 %v1499_v29, %v6935_v48 }
 0x617   :  { %v1464_v40 = vadd.f32 %v1463_v53, %v6943_v62  ;;  %v1483_v38 = vadd.f32 %v1482_v39, %v6933_v2  ;;  %v4917_v2 = vld [vmem:[#allocation16 + $0x20] sm:$0xff] }
 0x618   :  { %1751 = vmatpush.bf16.msrb.mxu1 %v4917_v2 }
 0x619   :  { %v1799_v46 = vpack.c.bf16 %v1464_v40, %v1462_v14  ;;  %v1800_v59 = vpack.c.bf16 %v1483_v38, %v1481_v16 }
 0x61b   :  { %1894 = vrot.lane.b32.xlu0 %v1799_v46, %s7575_s30  ;;  %1897 = vrot.lane.b32.xlu2 %v1800_v59, %s7575_s30  ;;  %v1806_v24 = vsel %vm1507_vm1, %v1800_v59, 0 }
 0x61c   :  { %1815 = vmatpush.bf16.xpose.msrb.mxu3 %v1806_v24 }
 0x61d   :  { %v1501_v41 = vpop.f32.mrf.mxu2 }
 0x61e   :  { %v1502_v26 = vadd.f32 %v1501_v41, %v6935_v48 }
 0x620   :  { %v7034_v6 = vpack.c.bf16 %v1502_v26, %v1500_v61 }
 0x622   :  { %1885 = vmatpush.bf16.msra.mxu0 %v7034_v6 }
 0x623   :  { %4418 = vmatmul.msk.bf16.vlgmr.msrb.gmra.mxu3 %vm1507_vm1, %v1799_v46 }
 0x624   :  { %2001 = vmatpush.bf16.msra.mxu3 %v4920_v49 }
 0x625   :  { %v1794_v8 = vpop.f32.mrf.mxu2 }
 0x626   :  { %2018 = vmatpush.bf16.msrb.mxu0 %v6985_v35  ;;  %v7045_v35 = vperm.slane %v6950_v47, 1 }
 0x628   :  { %2002 = vmatpush.bf16.msra.mxu3 %v4919_v43 }
 0x62a   :  { %2019 = vmatpush.bf16.msrb.mxu0 %v6989_v57 }
 0x62c   :  { %2003 = vmatpush.bf16.msra.mxu3 %v4918_v42 }
 0x62d   :  { %v1796_v46 = vpop.f32.mrf.mxu2 }
 0x62e   :  { %2020 = vmatpush.bf16.msrb.mxu0 %v6996_v21 }
 0x630   :  { %2004 = vmatpush.bf16.msra.mxu3 %v4917_v2 }
 0x632   :  { %2021 = vmatpush.bf16.msrb.mxu0 %v6999_v17 }
 0x675   :  { %v1898_v48 = vpop.permute.xlu2 %1897 }
 0x676   :  { %v1903_v62 = vsel %vm1507_vm1, %v1898_v48, 0 }
 0x677   :  { %1912 = vmatpush.bf16.xpose.msra.mxu1 %v1903_v62 }
 0x68c   :  { %v1703_v31 = vpop.f32.mrf.mxu0 }
 0x68d   :  { %v1895_v57 = vpop.permute.xlu0 %1894 }
 0x694   :  { %v1705_v32 = vpop.f32.mrf.mxu0 }
 0x695   :  { %v1708_v51 = vpack.c.bf16 %v1705_v32, %v1703_v31 }
 0x697   :  { %4400 = vmatmul.msk.bf16.vlgmr.msrb.gmra.mxu1 %vm1507_vm1, %v1708_v51  ;;  %v4482_v51 = vld [vmem:[#allocation22 + $0x70] sm:$0xf] }
 0x6a6   :  { %v1817_v3 = vpop.f32.mrf.mxu3 }
 0x6a7   :  { %v1822_v21 = vmul.f32 0.125, %v1817_v3  ;;  %4420 = vmatmul.msk.bf16.vlgmr.msra.gmra.mxu1 %vm1507_vm1, %v1895_v57  ;;  %v4936_v57 = vld [vmem:[#allocation22 + $0x74] sm:$0xf0] }
 0x6a8   :  { %v4483_v3 = vor.u32 %v4936_v57, %v4482_v51 }
 0x6a9   :  { %v1824_v17 = vadd.f32 %v1822_v21, %v7045_v35 }
 0x6aa   :  { %2240 = vmatpush.bf16.msrb.mxu1 %v4483_v3 }
 0x6ab   :  { %v1826_v58 = vsel %vm1532_vm2, %v1824_v17, -inf }
 0x6ac   :  { %1827 = vmax.xlane.f32.xlu0 %v1826_v58 }
 0x6ae   :  { %v1819_v47 = vpop.f32.mrf.mxu3 }
 0x6af   :  { %v1823_v28 = vmul.f32 0.125, %v1819_v47 }
 0x6b1   :  { %v1825_v11 = vadd.f32 %v1823_v28, %v7045_v35 }
 0x6b3   :  { %v1829_v23 = vsel %vm1532_vm2, %v1825_v11, -inf }
 0x714   :  { %v1753_v36 = vpop.f32.mrf.mxu1 }
 0x715   :  { %v1795_v19 = vadd.f32 %v1794_v8, %v1753_v36 }
 0x717   :  { %v2032_v54 = vadd.f32 %v7054_v12, %v1795_v19 }
 0x719   :  { %v2036_v34 = vadd.f32 %v2032_v54, %v6919_v13 }
 0x71c   :  { %v1755_v10 = vpop.f32.mrf.mxu1 }
 0x71d   :  { %v1797_v24 = vadd.f32 %v1796_v46, %v1755_v10 }
 0x71f   :  { %v1828_v27 = vpop.xlane.xlu0 %1827  ;;  %v2033_v2 = vadd.f32 %v7054_v12, %v1797_v24 }
 0x720   :  { %v1832_v63 = vsub.f32 %v1824_v17, %v1828_v27 }
 0x721   :  { %v2037_v48 = vadd.f32 %v2033_v2, %v6922_v55 }
 0x722   :  { %v1834_v15 = vmul.f32 1.442695, %v1832_v63 }
 0x724   :  { %5103 = vpow2.f32 %v1834_v15  ;;  %v1914_v5 = vpop.f32.mrf.mxu1 }
 0x725   :  { %v1919_v45 = vmul.f32 0.125, %v1914_v5 }
 0x727   :  { %v1921_v1 = vadd.f32 %v1919_v45, %v7045_v35 }
 0x729   :  { %v1923_v33 = vsel %vm1532_vm2, %v1921_v1, -inf }
 0x72a   :  { %v7052_v44 = vpop.eup %5103  ;;  %1924 = vmax.xlane.f32.xlu1 %v1923_v33  ;;  %v4929_v33 = vld [vmem:[#allocation22 + $0x44] sm:$0xf] }
 0x72b   :  { %v1838_v37 = vsel %vm1532_vm2, %v7052_v44, 0.0 }
 0x72c   :  { %v1916_v18 = vpop.f32.mrf.mxu1  ;;  %1839 = vadd.xlane.f32.xlu0 %v1838_v37 }
 0x72d   :  { %v1920_v56 = vmul.f32 0.125, %v1916_v18 }
 0x72f   :  { %v1922_v25 = vadd.f32 %v1920_v56, %v7045_v35 }
 0x731   :  { %v1926_v20 = vsel %vm1532_vm2, %v1922_v25, -inf }
 0x732   :  { %1830 = vmax.xlane.f32.xlu1 %v1829_v23  ;;  %1927 = vmax.xlane.f32.xlu2 %v1926_v20 }
 0x734   :  { %2042 = vadd.xlane.f32.xlu0 %v2036_v34 }
 0x79d   :  { %v1925_v9 = vpop.xlane.xlu1 %1924 }
 0x79e   :  { %v1929_v52 = vsub.f32 %v1921_v1, %v1925_v9 }
 0x79f   :  { %v7064_v30 = vpop.xlane.xlu0 %1839 }
 0x7a0   :  { %v1931_v49 = vmul.f32 1.442695, %v1929_v52  ;;  %v1853_v10 = vand.u32 2147483647, %v7064_v30  ;;  %v1855_v5 = vand.u32 2147483648, %v7064_v30  ;;  %vm1849_vm15 = vweird.f32 %v7064_v30 }
 0x7a2   :  { %5105 = vpow2.f32 %v1931_v49  ;;  %vm7104_vm8 = vcmp.eq.f32.partialorder %v1853_v10, 8.507059e+37  ;;  %v1856_v54 = vor.u32 1.1754944e-38, %v1855_v5  ;;  %v4476_v10 = vld [vmem:[#allocation22 + $0x68] sm:$0xf0]  ;;  %v4931_v5 = vld [vmem:[#allocation22 + $0x54] sm:$0xf] }
 0x7a5   :  { %v1831_v7 = vpop.xlane.xlu1 %1830  ;;  %v1928_v50 = vpop.xlane.xlu2 %1927 }
 0x7a6   :  { %v1833_v43 = vsub.f32 %v1825_v11, %v1831_v7  ;;  %v1930_v42 = vsub.f32 %v1922_v25, %v1928_v50 }
 0x7a7   :  { %v2043_v29 = vpop.xlane.xlu0 %2042 }
 0x7a8   :  { %v7066_v53 = vpop.eup %5105  ;;  %v1836_v39 = vmul.f32 1.442695, %v1833_v43  ;;  %v1933_v14 = vmul.f32 1.442695, %v1930_v42  ;;  %v2050_v16 = vmul.f32 %v2043_v29, %v6501_v22  ;;  %v4924_v29 = vld [vmem:[#allocation22 + $0x14] sm:$0xf0] }
 0x7a9   :  { %v1935_v13 = vsel %vm1532_vm2, %v7066_v53, 0.0 }
 0x7aa   :  { %5107 = vpow2.f32 %v1836_v39  ;;  %v7071_v40 = vsub.f32 %v2036_v34, %v2050_v16  ;;  %1936 = vadd.xlane.f32.xlu2 %v1935_v13 }
 0x7ab   :  { %5109 = vpow2.f32 %v1933_v14 }
 0x7ac   :  { %v2058_v38 = vmul.f32 %v7071_v40, %v7071_v40  ;;  %5111 = vrcp.f32 %v7064_v30 }
 0x7ae   :  { %2062 = vadd.xlane.f32.xlu0 %v2058_v38 }
 0x7b0   :  { %v7075_v59 = vpop.eup %5107 }
 0x7b1   :  { %v7077_v41 = vpop.eup %5109  ;;  %v1841_v61 = vsel %vm1532_vm2, %v7075_v59, 0.0 }
 0x7b2   :  { %1842 = vadd.xlane.f32.xlu2 %v1841_v61  ;;  %v1938_v26 = vsel %vm1532_vm2, %v7077_v41, 0.0  ;;  %v5112_v31 = vpop.eup %5111 }
 0x7b3   :  { %1939 = vadd.xlane.f32.xlu1 %v1938_v26  ;;  %v1845_v32 = vmul.f32 %v5112_v31, %v7064_v30  ;;  %vm1850_vm13 = vweird.f32 %v5112_v31 }
 0x7b4   :  { %vm7100_vm6 = vmor %vm1849_vm15, %vm1850_vm13 }
 0x7b5   :  { %v1846_v17 = vsub.f32 1.0, %v1845_v32  ;;  %v4484_v32 = vld [vmem:[#allocation22 + $0x78] sm:$0xf0] }
 0x7b7   :  { %v1847_v36 = vmul.f32 %v5112_v31, %v1846_v17 }
 0x7b9   :  { %v1848_v15 = vadd.f32 %v5112_v31, %v1847_v36 }
 0x7ba   :  { %2044 = vadd.xlane.f32.xlu2 %v2037_v48 }
 0x7bb   :  { %v1852_v11 = vsel %vm7100_vm6, %v5112_v31, %v1848_v15  ;;  %v4935_v31 = vld [vmem:[#allocation22 + $0x74] sm:$0xf]  ;;  %v4932_v15 = vld [vmem:[#allocation22 + $0x54] sm:$0xf0] }
 0x7bc   :  { %v1857_v43 = vsel %vm7104_vm8, %v1856_v54, %v1852_v11  ;;  %v4487_v17 = vor.u32 %v4935_v31, %v4484_v32  ;;  %v4450_v54 = vld [vmem:[#allocation22 + $0x30] sm:$0xf] }
 0x7bd   :  { %v1858_v26 = vmul.f32 %v7052_v44, %v1857_v43  ;;  %v4474_v44 = vld [vmem:[#allocation22 + $0x60] sm:$0xf] }
 0x7cc   :  { %1973 = vrot.lane.b32.xlu1 %v7034_v6, %s7575_s30 }
 0x81d   :  { %v7088_v62 = vpop.xlane.xlu2 %1936 }
 0x81e   :  { %5113 = vrcp.f32 %v7088_v62  ;;  %v1952_v42 = vand.u32 2147483648, %v7088_v62  ;;  %vm1946_vm12 = vweird.f32 %v7088_v62  ;;  %v1950_v14 = vand.u32 2147483647, %v7088_v62 }
 0x820   :  { %v1953_v2 = vor.u32 1.1754944e-38, %v1952_v42  ;;  %vm1951_vm6 = vcmp.eq.f32.partialorder %v1950_v14, 8.507059e+37  ;;  %v4434_v42 = vld [vmem:[#allocation22 + $0x10] sm:$0xf] }
 0x821   :  { %v4435_v14 = vor.u32 %v4924_v29, %v4434_v42  ;;  %v4937_v29 = vld [vmem:[#allocation24] sm:$0xff] }
 0x824   :  { %v7092_v21 = vpop.eup %5113 }
 0x825   :  { %v1843_v55 = vpop.xlane.xlu2 %1842  ;;  %v1942_v6 = vmul.f32 %v7092_v21, %v7088_v62  ;;  %vm1947_vm3 = vweird.f32 %v7092_v21 }
 0x826   :  { %v1940_v58 = vpop.xlane.xlu1 %1939  ;;  %v1870_v20 = vand.u32 2147483648, %v1843_v55  ;;  %v1868_v30 = vand.u32 2147483647, %v1843_v55  ;;  %vm1864_vm10 = vweird.f32 %v1843_v55  ;;  %vm1948_vm14 = vmor %vm1946_vm12, %vm1947_vm3 }
 0x827   :  { %5115 = vrcp.f32 %v1940_v58  ;;  %v1943_v27 = vsub.f32 1.0, %v1942_v6  ;;  %v1967_v9 = vand.u32 2147483648, %v1940_v58  ;;  %vm1961_vm7 = vweird.f32 %v1940_v58  ;;  %v4933_v6 = vld [vmem:[#allocation22 + $0x64] sm:$0xf] }
 0x828   :  { %5117 = vrcp.f32 %v1843_v55  ;;  %v1965_v50 = vand.u32 2147483647, %v1940_v58  ;;  %v1871_v13 = vor.u32 1.1754944e-38, %v1870_v20  ;;  %vm1869_vm13 = vcmp.eq.f32.partialorder %v1868_v30, 8.507059e+37  ;;  %v4926_v30 = vld [vmem:[#allocation22 + $0x24] sm:$0xf0] }
 0x829   :  { %v1944_v37 = vmul.f32 %v7092_v21, %v1943_v27  ;;  %v1968_v38 = vor.u32 1.1754944e-38, %v1967_v9  ;;  %v4479_v27 = vor.u32 %v4933_v6, %v4476_v10 }
 0x82a   :  { %vm1966_vm15 = vcmp.eq.f32.partialorder %v1965_v50, 8.507059e+37  ;;  %v4444_v50 = vld [vmem:[#allocation22 + $0x28] sm:$0xf0] }
 0x82b   :  { %v1945_v49 = vadd.f32 %v7092_v21, %v1944_v37  ;;  %v4460_v37 = vld [vmem:[#allocation22 + $0x48] sm:$0xf0] }
 0x82d   :  { %v5116_v63 = vpop.eup %5115  ;;  %v2045_v45 = vpop.xlane.xlu2 %2044  ;;  %v1949_v24 = vsel %vm1948_vm14, %v7092_v21, %v1945_v49  ;;  %v4925_v49 = vld [vmem:[#allocation22 + $0x24] sm:$0xf] }
 0x82e   :  { %v5118_v47 = vpop.eup %5117  ;;  %v1957_v1 = vmul.f32 %v5116_v63, %v1940_v58  ;;  %v2051_v8 = vmul.f32 %v2045_v45, %v6501_v22  ;;  %vm1962_vm4 = vweird.f32 %v5116_v63  ;;  %v1954_v51 = vsel %vm1951_vm6, %v1953_v2, %v1949_v24  ;;  %v4922_v24 = vld [vmem:[#allocation22 + $0x4] sm:$0xf0] }
 0x82f   :  { %v1860_v28 = vmul.f32 %v5118_v47, %v1843_v55  ;;  %vm1865_vm5 = vweird.f32 %v5118_v47  ;;  %vm7120_vm9 = vmor %vm1961_vm7, %vm1962_vm4  ;;  %v1955_v21 = vmul.f32 %v7066_v53, %v1954_v51  ;;  %v4468_v53 = vld [vmem:[#allocation22 + $0x58] sm:$0xf0]  ;;  %v4447_v43 = vor.u32 %v4925_v49, %v4444_v50  ;;  %v4938_v50 = vld [vmem:[#allocation24 + $0x8] sm:$0xff] }
 0x830   :  { %v1958_v18 = vsub.f32 1.0, %v1957_v1  ;;  %v7109_v56 = vsub.f32 %v2037_v48, %v2051_v8  ;;  %vm1866_vm11 = vmor %vm1864_vm10, %vm1865_vm5  ;;  %v4458_v8 = vld [vmem:[#allocation22 + $0x40] sm:$0xf]  ;;  %v4948_v49 = vld [vmem:[#allocation24 + $0x58] sm:$0xff] }
 0x831   :  { %v1861_v25 = vsub.f32 1.0, %v1860_v28  ;;  %v4930_v28 = vld [vmem:[#allocation22 + $0x44] sm:$0xf0] }
 0x832   :  { %v1959_v23 = vmul.f32 %v5116_v63, %v1958_v18  ;;  %v2059_v34 = vmul.f32 %v7109_v56, %v7109_v56  ;;  %v4459_v19 = vor.u32 %v4930_v28, %v4458_v8  ;;  %v4463_v18 = vor.u32 %v4929_v33, %v4460_v37 }
 0x833   :  { %v1862_v52 = vmul.f32 %v5118_v47, %v1861_v25  ;;  %v4928_v25 = vld [vmem:[#allocation22 + $0x34] sm:$0xf0] }
 0x834   :  { %v1960_v7 = vadd.f32 %v5116_v63, %v1959_v23  ;;  %2064 = vadd.xlane.f32.xlu2 %v2059_v34  ;;  %v4927_v23 = vld [vmem:[#allocation22 + $0x34] sm:$0xf]  ;;  %v4451_v20 = vor.u32 %v4928_v25, %v4450_v54  ;;  %v4452_v34 = vld [vmem:[#allocation22 + $0x38] sm:$0xf0]  ;;  %v4942_v25 = vld [vmem:[#allocation24 + $0x28] sm:$0xff] }
 0x835   :  { %v1863_v39 = vadd.f32 %v5118_v47, %v1862_v52  ;;  %v4455_v9 = vor.u32 %v4927_v23, %v4452_v34  ;;  %v4442_v52 = vld [vmem:[#allocation22 + $0x20] sm:$0xf]  ;;  %v4952_v54 = vld [vmem:[#allocation24 + $0x78] sm:$0xff]  ;;  %v4951_v23 = vld [vmem:[#allocation24 + $0x70] sm:$0xff] }
 0x836   :  { %v1964_v16 = vsel %vm7120_vm9, %v5116_v63, %v1960_v7  ;;  %v2063_v63 = vpop.xlane.xlu0 %2062  ;;  %v4443_v7 = vor.u32 %v4926_v30, %v4442_v52  ;;  %v4950_v34 = vld [vmem:[#allocation24 + $0x68] sm:$0xff]  ;;  %v4949_v52 = vld [vmem:[#allocation24 + $0x60] sm:$0xff]  ;;  %v4939_v30 = vld [vmem:[#allocation24 + $0x10] sm:$0xff] }
 0x837   :  { %v1867_v46 = vsel %vm1866_vm11, %v5118_v47, %v1863_v39  ;;  %v1969_v48 = vsel %vm1966_vm15, %v1968_v38, %v1964_v16  ;;  %v4471_v47 = vor.u32 %v4931_v5, %v4468_v53  ;;  %v2070_v1 = vmul.f32 %v2063_v63, %v6501_v22  ;;  %v4923_v39 = vld [vmem:[#allocation22 + $0x14] sm:$0xf]  ;;  %v4436_v16 = vld [vmem:[#allocation22 + $0x18] sm:$0xf0] }
 0x838   :  { %v1872_v61 = vsel %vm1869_vm13, %v1871_v13, %v1867_v46  ;;  %v1970_v3 = vmul.f32 %v7077_v41, %v1969_v48  ;;  %v4466_v41 = vld [vmem:[#allocation22 + $0x50] sm:$0xf]  ;;  %v4439_v38 = vor.u32 %v4923_v39, %v4436_v16  ;;  %v4426_v46 = vld [vmem:[#allocation22] sm:$0xf]  ;;  %v4428_v48 = vld [vmem:[#allocation22 + $0x8] sm:$0xf0] }
 0x839   :  { %v1873_v62 = vmul.f32 %v7075_v59, %v1872_v61  ;;  %v4934_v59 = vld [vmem:[#allocation22 + $0x64] sm:$0xf0]  ;;  %v4467_v45 = vor.u32 %v4932_v15, %v4466_v41  ;;  %v2074_v11 = vadd.f32 1e-12, %v2070_v1  ;;  %v4921_v61 = vld [vmem:[#allocation22 + $0x4] sm:$0xf]  ;;  %v4427_v2 = vor.u32 %v4922_v24, %v4426_v46 }
 0x83a   :  { %v1971_v58 = vpack.c.bf16 %v1970_v3, %v1955_v21  ;;  %v4475_v36 = vor.u32 %v4934_v59, %v4474_v44  ;;  %v7141_v63 = vld [vmem:[#allocation19] ss:$0 sm:$0xff]  ;;  %v7145_v53 = vld [vmem:[#allocation21] ss:$0 sm:$0xff]  ;;  %v4946_v39 = vld [vmem:[#allocation24 + $0x48] sm:$0xff] }
 0x83b   :  { %v1874_v57 = vpack.c.bf16 %v1873_v62, %v1858_v26  ;;  %5119 = vrsqrt.f32 %v2074_v11  ;;  %v4431_v62 = vor.u32 %v4921_v61, %v4428_v48  ;;  %vm2084_vm3 = vweird.f32 %v2074_v11  ;;  %v4945_v46 = vld [vmem:[#allocation24 + $0x40] sm:$0xff] }
 0x83c   :  { %2241 = vmatpush.bf16.msrb.mxu1 %v4475_v36 }
 0x83d   :  { %4419 = vmatmul.msk.bf16.vlgmr.msra.gmra.mxu0 %vm1532_vm2, %v1874_v57 }
 0x83e   :  { %v1974_v55 = vpop.permute.xlu1 %1973  ;;  %2505 = vmatpush.bf16.msra.mxu0 %v4952_v54 }
 0x83f   :  { %1986 = vmatpush.bf16.msra.mxu2 %v1974_v55 }
 0x840   :  { %2242 = vmatpush.bf16.msrb.mxu1 %v4467_v45 }
 0x841   :  { %v5120_v13 = vpop.eup %5119 }
 0x842   :  { %4421 = vmatmul.msk.bf16.vlgmr.msra.gmra.mxu2 %vm1532_vm2, %v1971_v58  ;;  %v2079_v26 = vmul.f32 %v5120_v13, %v2074_v11  ;;  %vm2085_vm8 = vweird.f32 %v5120_v13  ;;  %v4943_v11 = vld [vmem:[#allocation24 + $0x30] sm:$0xff]  ;;  %2506 = vmatpush.bf16.msra.mxu0 %v4951_v23 }
 0x843   :  { %2259 = vmatpush.bf16.msrb.mxu2 %v4487_v17  ;;  %vm2086_vm4 = vmor %vm2084_vm3, %vm2085_vm8 }
 0x844   :  { %2243 = vmatpush.bf16.msrb.mxu1 %v4459_v19  ;;  %v2080_v31 = vmul.f32 %v5120_v13, %v2079_v26 }
 0x846   :  { %v2081_v3 = vmul.f32 0.5, %v2080_v31  ;;  %2507 = vmatpush.bf16.msra.mxu0 %v4950_v34 }
 0x847   :  { %2260 = vmatpush.bf16.msrb.mxu2 %v4479_v27 }
 0x848   :  { %2244 = vmatpush.bf16.msrb.mxu1 %v4451_v20  ;;  %v2082_v17 = vsub.f32 1.5, %v2081_v3  ;;  %v4941_v20 = vld [vmem:[#allocation24 + $0x20] sm:$0xff] }
 0x84a   :  { %v2083_v55 = vmul.f32 %v5120_v13, %v2082_v17  ;;  %2508 = vmatpush.bf16.msra.mxu0 %v4949_v52 }
 0x84b   :  { %2261 = vmatpush.bf16.msrb.mxu2 %v4471_v47 }
 0x84c   :  { %2245 = vmatpush.bf16.msrb.mxu1 %v4443_v7  ;;  %v2087_v59 = vsel %vm2086_vm4, %v5120_v13, %v2083_v55  ;;  %v2154_v7 = vld [vmem:[%s7510_s14] sm:$0x3] }
 0x84d   :  { %v2118_v10 = vmul.f32 %v2087_v59, %v7071_v40  ;;  %v7161_v42 = vperm.slane %v2154_v7, 0 }
 0x84e   :  { %2509 = vmatpush.bf16.msra.mxu0 %v4948_v49 }
 0x84f   :  { %2262 = vmatpush.bf16.msrb.mxu2 %v4463_v18  ;;  %v2125_v45 = vmul.f32 %v7141_v63, %v2118_v10  ;;  %v4944_v18 = vld [vmem:[#allocation24 + $0x38] sm:$0xff] }
 0x850   :  { %2246 = vmatpush.bf16.msrb.mxu1 %v4435_v14  ;;  %2486 = vmatpush.bf16.msrb.mxu3 %v4944_v18 }
 0x851   :  { %v7149_v8 = vadd.f32 %v7145_v53, %v2125_v45 }
 0x853   :  { %2263 = vmatpush.bf16.msrb.mxu2 %v4455_v9  ;;  %v4940_v9 = vld [vmem:[#allocation24 + $0x18] sm:$0xff] }
 0x854   :  { %2247 = vmatpush.bf16.msrb.mxu1 %v4427_v2  ;;  %2487 = vmatpush.bf16.msrb.mxu3 %v4943_v11 }
 0x857   :  { %2264 = vmatpush.bf16.msrb.mxu2 %v4447_v43  ;;  %v4947_v43 = vld [vmem:[#allocation24 + $0x50] sm:$0xff] }
 0x858   :  { %2488 = vmatpush.bf16.msrb.mxu3 %v4942_v25  ;;  %2510 = vmatpush.bf16.msra.mxu0 %v4947_v43 }
 0x85b   :  { %2265 = vmatpush.bf16.msrb.mxu2 %v4439_v38  ;;  %v7164_v38 = vperm.slane %v2154_v7, 1 }
 0x85c   :  { %2489 = vmatpush.bf16.msrb.mxu3 %v4941_v20  ;;  %2511 = vmatpush.bf16.msra.mxu0 %v4946_v39 }
 0x85f   :  { %2266 = vmatpush.bf16.msrb.mxu2 %v4431_v62 }
 0x860   :  { %2490 = vmatpush.bf16.msrb.mxu3 %v4940_v9  ;;  %2512 = vmatpush.bf16.msra.mxu0 %v4945_v46 }
 0x864   :  { %2491 = vmatpush.bf16.msrb.mxu3 %v4939_v30 }
 0x868   :  { %2492 = vmatpush.bf16.msrb.mxu3 %v4938_v50 }
 0x86c   :  { %2493 = vmatpush.bf16.msrb.mxu3 %v4937_v29 }
 0x8a7   :  { %v2065_v32 = vpop.xlane.xlu2 %2064 }
 0x8a8   :  { %v2071_v51 = vmul.f32 %v2065_v32, %v6501_v22 }
 0x8aa   :  { %v2075_v57 = vadd.f32 1e-12, %v2071_v51 }
 0x8ac   :  { %5121 = vrsqrt.f32 %v2075_v57  ;;  %vm2094_vm7 = vweird.f32 %v2075_v57 }
 0x8b2   :  { %v5122_v21 = vpop.eup %5121 }
 0x8b3   :  { %v2089_v58 = vmul.f32 %v5122_v21, %v2075_v57  ;;  %vm2095_vm5 = vweird.f32 %v5122_v21 }
 0x8b4   :  { %vm2096_vm9 = vmor %vm2094_vm7, %vm2095_vm5 }
 0x8b5   :  { %v2090_v44 = vmul.f32 %v5122_v21, %v2089_v58 }
 0x8b7   :  { %v2091_v6 = vmul.f32 0.5, %v2090_v44 }
 0x8b9   :  { %v2092_v36 = vsub.f32 1.5, %v2091_v6 }
 0x8ba   :  { %v1887_v27 = vpop.f32.mrf.mxu0 }
 0x8bb   :  { %v2093_v41 = vmul.f32 %v5122_v21, %v2092_v36 }
 0x8bd   :  { %v2097_v15 = vsel %vm2096_vm9, %v5122_v21, %v2093_v41 }
 0x8be   :  { %v2119_v5 = vmul.f32 %v2097_v15, %v7109_v56 }
 0x8c0   :  { %v2126_v47 = vmul.f32 %v7141_v63, %v2119_v5 }
 0x8c2   :  { %v1889_v1 = vpop.f32.mrf.mxu0  ;;  %v7152_v40 = vadd.f32 %v7145_v53, %v2126_v47 }
 0x8c3   :  { %v1892_v28 = vpack.c.bf16 %v1889_v1, %v1887_v27 }
 0x8c4   :  { %v2136_v33 = vpack.c.bf16 %v7152_v40, %v7149_v8 }
 0x8c5   :  { %4423 = vmatmul.msk.bf16.vlgmr.msrb.gmra.mxu0 %vm1507_vm1, %v1892_v28  ;;  %v1988_v56 = vpop.f32.mrf.mxu2 }
 0x8c6   :  { %2248 = vmatmul.bf16.vlgmr.msrb.gmra.mxu1 %v2136_v33  ;;  %2267 = vmatmul.bf16.vlgmr.msrb.gmra.mxu2 %v2136_v33 }
 0x8cd   :  { %v1990_v19 = vpop.f32.mrf.mxu2 }
 0x8ce   :  { %v1993_v37 = vpack.c.bf16 %v1990_v19, %v1988_v56 }
 0x8d0   :  { %4422 = vmatmul.msk.bf16.vlgmr.msra.gmra.mxu3 %vm1507_vm1, %v1993_v37 }
 0x942   :  { %v2023_v55 = vpop.f32.mrf.mxu0 }
 0x943   :  { %v2249_v14 = vpop.f32.mrf.mxu1 }
 0x944   :  { %v2250_v16 = vadd.f32 %v2249_v14, %v7161_v42 }
 0x946   :  { %v2286_v13 = vmul.f32 0.044715, %v2250_v16  ;;  %v2278_v20 = vmul.f32 0.5, %v2250_v16 }
 0x948   :  { %v2294_v24 = vmul.f32 %v2286_v13, %v2250_v16 }
 0x949   :  { %v2268_v61 = vpop.f32.mrf.mxu2 }
 0x94a   :  { %v2302_v26 = vmul.f32 %v2294_v24, %v2250_v16  ;;  %v2269_v2 = vadd.f32 %v2268_v61, %v7164_v38  ;;  %v2025_v19 = vpop.f32.mrf.mxu0 }
 0x94b   :  { %v2251_v48 = vpop.f32.mrf.mxu1 }
 0x94c   :  { %v2310_v62 = vadd.f32 %v2302_v26, %v2250_v16  ;;  %v2287_v31 = vmul.f32 0.044715, %v2269_v2  ;;  %v2252_v32 = vadd.f32 %v2251_v48, %v7161_v42  ;;  %v2279_v29 = vmul.f32 0.5, %v2269_v2 }
 0x94e   :  { %v2295_v51 = vmul.f32 %v2287_v31, %v2269_v2  ;;  %v2288_v57 = vmul.f32 0.044715, %v2252_v32  ;;  %v2318_v3 = vmul.f32 0.7978846, %v2310_v62  ;;  %v2280_v34 = vmul.f32 0.5, %v2252_v32 }
 0x950   :  { %v2303_v17 = vmul.f32 %v2295_v51, %v2269_v2  ;;  %v2296_v21 = vmul.f32 %v2288_v57, %v2252_v32  ;;  %5123 = vtanh.f32 %v2318_v3 }
 0x951   :  { %v2270_v58 = vpop.f32.mrf.mxu2 }
 0x952   :  { %v2311_v44 = vadd.f32 %v2303_v17, %v2269_v2  ;;  %v2304_v59 = vmul.f32 %v2296_v21, %v2252_v32  ;;  %v2271_v6 = vadd.f32 %v2270_v58, %v7164_v38  ;;  %v7178_v2 = vld [vmem:[%s7512_s16] ss:$0 sm:$0xff] }
 0x953   :  { %v2006_v36 = vpop.f32.mrf.mxu3 }
 0x954   :  { %v2312_v10 = vadd.f32 %v2304_v59, %v2252_v32  ;;  %v2289_v27 = vmul.f32 0.044715, %v2271_v6  ;;  %v2024_v41 = vadd.f32 %v2023_v55, %v2006_v36  ;;  %v2319_v15 = vmul.f32 0.7978846, %v2311_v44 }
 0x955   :  { %v2281_v39 = vmul.f32 0.5, %v2271_v6 }
 0x956   :  { %v2320_v5 = vmul.f32 0.7978846, %v2312_v10  ;;  %v2297_v45 = vmul.f32 %v2289_v27, %v2271_v6  ;;  %v2034_v47 = vadd.f32 %v7054_v12, %v2024_v41  ;;  %v5124_v33 = vpop.eup %5123 }
 0x957   :  { %v2334_v54 = vadd.f32 1.0, %v5124_v33 }
 0x958   :  { %v2305_v1 = vmul.f32 %v2297_v45, %v2271_v6  ;;  %v2038_v28 = vadd.f32 %v2034_v47, %v7010_v0  ;;  %5125 = vtanh.f32 %v2320_v5 }
 0x959   :  { %5127 = vtanh.f32 %v2319_v15  ;;  %v2342_v30 = vmul.f32 %v2334_v54, %v2278_v20 }
 0x95a   :  { %v2313_v56 = vadd.f32 %v2305_v1, %v2271_v6  ;;  %2046 = vadd.xlane.f32.xlu0 %v2038_v28 }
 0x95b   :  { %v2008_v37 = vpop.f32.mrf.mxu3 }
 0x95c   :  { %v2321_v18 = vmul.f32 0.7978846, %v2313_v56  ;;  %v2026_v11 = vadd.f32 %v2025_v19, %v2008_v37 }
 0x95e   :  { %v5126_v25 = vpop.eup %5125  ;;  %v2035_v23 = vadd.f32 %v7054_v12, %v2026_v11  ;;  %5129 = vtanh.f32 %v2321_v18 }
 0x95f   :  { %v2336_v9 = vadd.f32 1.0, %v5126_v25  ;;  %v5128_v52 = vpop.eup %5127 }
 0x960   :  { %v2039_v0 = vadd.f32 %v2035_v23, %v7013_v4  ;;  %v2335_v50 = vadd.f32 1.0, %v5128_v52 }
 0x961   :  { %v2344_v49 = vmul.f32 %v2336_v9, %v2280_v34 }
 0x962   :  { %2048 = vadd.xlane.f32.xlu2 %v2039_v0  ;;  %v2343_v13 = vmul.f32 %v2335_v50, %v2279_v29 }
 0x963   :  { %v2350_v7 = vpack.c.bf16 %v2344_v49, %v2342_v30 }
 0x964   :  { %v5130_v43 = vpop.eup %5129 }
 0x965   :  { %2494 = vmatmul.bf16.vlgmr.msrb.gmra.mxu3 %v2350_v7  ;;  %v2337_v14 = vadd.f32 1.0, %v5130_v43 }
 0x967   :  { %v2345_v46 = vmul.f32 %v2337_v14, %v2281_v39  ;;  %v4639_v14 = vld [vmem:[#allocation15 + $0x168] sm:$0xf] }
 0x969   :  { %v2351_v12 = vpack.c.bf16 %v2345_v46, %v2343_v13  ;;  %v4975_v13 = vld [vmem:[#allocation15 + $0x170] sm:$0xf0]  ;;  %v4974_v46 = vld [vmem:[#allocation15 + $0x16c] sm:$0xf] }
 0x96b   :  { %2513 = vmatmul.bf16.vlgmr.msra.gmra.mxu0 %v2351_v12  ;;  %v4640_v12 = vor.u32 %v4975_v13, %v4639_v14 }
 0x96d   :  { %2796 = vmatpush.bf16.msra.mxu1 %v4640_v12  ;;  %v4623_v12 = vld [vmem:[#allocation15 + $0x140] sm:$0xf] }
 0x9cd   :  { %v2047_v16 = vpop.xlane.xlu0 %2046 }
 0x9ce   :  { %v2052_v24 = vmul.f32 %v2047_v16, %v6501_v22  ;;  %v4641_v16 = vld [vmem:[#allocation15 + $0x174] sm:$0xf0] }
 0x9d0   :  { %v2056_v61 = vsub.f32 %v2038_v28, %v2052_v24  ;;  %v4627_v24 = vld [vmem:[#allocation15 + $0x150] sm:$0xf] }
 0x9d2   :  { %v2060_v26 = vmul.f32 %v2056_v61, %v2056_v61 }
 0x9d4   :  { %2066 = vadd.xlane.f32.xlu0 %v2060_v26  ;;  %v4971_v26 = vld [vmem:[#allocation15 + $0x154] sm:$0xf] }
 0x9d5   :  { %v2049_v4 = vpop.xlane.xlu2 %2048 }
 0x9d6   :  { %v2053_v48 = vmul.f32 %v2049_v4, %v6501_v22 }
 0x9d8   :  { %v2057_v62 = vsub.f32 %v2039_v0, %v2053_v48  ;;  %v4629_v48 = vld [vmem:[#allocation15 + $0x15c] sm:$0xf0] }
 0x9da   :  { %v2061_v31 = vmul.f32 %v2057_v62, %v2057_v62 }
 0x9dc   :  { %2068 = vadd.xlane.f32.xlu1 %v2061_v31  ;;  %v4615_v31 = vld [vmem:[#allocation15 + $0x138] sm:$0xf] }
 0x9e8   :  { %v2495_v32 = vpop.f32.mrf.mxu3  ;;  %v2514_v51 = vpop.f32.mrf.mxu0 }
 0x9e9   :  { %v2496_v57 = vadd.f32 %v7178_v2, %v2495_v32  ;;  %v4969_v32 = vld [vmem:[#allocation15 + $0x140] sm:$0xf0] }
 0x9eb   :  { %v2515_v3 = vadd.f32 %v2514_v51, %v2496_v57  ;;  %v4968_v51 = vld [vmem:[#allocation15 + $0x13c] sm:$0xf]  ;;  %v4616_v57 = vor.u32 %v4969_v32, %v4615_v31 }
 0x9ed   :  { %v2524_v17 = vadd.f32 %v2515_v3, %v7149_v8  ;;  %v4617_v3 = vld [vmem:[#allocation15 + $0x144] sm:$0xf0] }
 0x9ef   :  { %2530 = vadd.xlane.f32.xlu2 %v2524_v17 }
 0x9f0   :  { %v2497_v21 = vpop.f32.mrf.mxu3  ;;  %v2516_v58 = vpop.f32.mrf.mxu0 }
 0x9f1   :  { %v2498_v55 = vadd.f32 %v7178_v2, %v2497_v21  ;;  %v4603_v21 = vld [vmem:[#allocation15 + $0x120] sm:$0xf] }
 0x9f3   :  { %v2517_v44 = vadd.f32 %v2516_v58, %v2498_v55  ;;  %v4966_v55 = vld [vmem:[#allocation15 + $0x128] sm:$0xf0]  ;;  %v4965_v58 = vld [vmem:[#allocation15 + $0x124] sm:$0xf] }
 0x9f5   :  { %v2525_v59 = vadd.f32 %v2517_v44, %v7152_v40  ;;  %v4604_v44 = vor.u32 %v4966_v55, %v4603_v21  ;;  %v4599_v21 = vld [vmem:[#allocation15 + $0x110] sm:$0xf]  ;;  %v4964_v55 = vld [vmem:[#allocation15 + $0x118] sm:$0xf0] }
 0x9f7   :  { %2532 = vadd.xlane.f32.xlu0 %v2525_v59 }
 0xa47   :  { %v2067_v6 = vpop.xlane.xlu0 %2066 }
 0xa48   :  { %v2072_v36 = vmul.f32 %v2067_v6, %v6501_v22 }
 0xa4a   :  { %v2076_v10 = vadd.f32 1e-12, %v2072_v36  ;;  %v4591_v36 = vld [vmem:[#allocation15 + $0x108] sm:$0xf] }
 0xa4c   :  { %5131 = vrsqrt.f32 %v2076_v10  ;;  %vm2104_vm12 = vweird.f32 %v2076_v10 }
 0xa4f   :  { %v2069_v27 = vpop.xlane.xlu1 %2068 }
 0xa50   :  { %v2073_v41 = vmul.f32 %v2069_v27, %v6501_v22  ;;  %v4962_v27 = vld [vmem:[#allocation15 + $0x10c] sm:$0xf] }
 0xa52   :  { %v5132_v15 = vpop.eup %5131  ;;  %v2077_v5 = vadd.f32 1e-12, %v2073_v41 }
 0xa53   :  { %v2099_v8 = vmul.f32 %v5132_v15, %v2076_v10  ;;  %vm2105_vm10 = vweird.f32 %v5132_v15  ;;  %v4963_v10 = vld [vmem:[#allocation15 + $0x110] sm:$0xf0] }
 0xa54   :  { %5133 = vrsqrt.f32 %v2077_v5  ;;  %vm2106_vm11 = vmor %vm2104_vm12, %vm2105_vm10  ;;  %vm2114_vm13 = vweird.f32 %v2077_v5  ;;  %v4592_v41 = vor.u32 %v4963_v10, %v4591_v36 }
 0xa55   :  { %v2100_v45 = vmul.f32 %v5132_v15, %v2099_v8  ;;  %v4579_v8 = vld [vmem:[#allocation15 + $0xf0] sm:$0xf] }
 0xa57   :  { %v2101_v47 = vmul.f32 0.5, %v2100_v45  ;;  %v4960_v45 = vld [vmem:[#allocation15 + $0xf8] sm:$0xf0] }
 0xa59   :  { %v2102_v1 = vsub.f32 1.5, %v2101_v47  ;;  %v4959_v47 = vld [vmem:[#allocation15 + $0xf4] sm:$0xf] }
 0xa5a   :  { %v5134_v28 = vpop.eup %5133 }
 0xa5b   :  { %v2103_v33 = vmul.f32 %v5132_v15, %v2102_v1  ;;  %v2109_v40 = vmul.f32 %v5134_v28, %v2077_v5  ;;  %vm2115_vm14 = vweird.f32 %v5134_v28  ;;  %v4580_v1 = vor.u32 %v4960_v45, %v4579_v8 }
 0xa5c   :  { %vm2116_vm15 = vmor %vm2114_vm13, %vm2115_vm14 }
 0xa5d   :  { %v2110_v56 = vmul.f32 %v5134_v28, %v2109_v40  ;;  %v2107_v37 = vsel %vm2106_vm11, %v5132_v15, %v2103_v33  ;;  %v4593_v15 = vld [vmem:[#allocation15 + $0x114] sm:$0xf0] }
 0xa5e   :  { %v2120_v54 = vmul.f32 %v2107_v37, %v2056_v61  ;;  %v4972_v61 = vld [vmem:[#allocation15 + $0x158] sm:$0xf0]  ;;  %v4596_v5 = vor.u32 %v4962_v27, %v4593_v15  ;;  %v4567_v40 = vld [vmem:[#allocation15 + $0xd8] sm:$0xf] }
 0xa5f   :  { %v2111_v19 = vmul.f32 0.5, %v2110_v56  ;;  %v4628_v4 = vor.u32 %v4972_v61, %v4627_v24  ;;  %v4957_v56 = vld [vmem:[#allocation15 + $0xe0] sm:$0xf0]  ;;  %v4611_v61 = vld [vmem:[#allocation15 + $0x128] sm:$0xf] }
 0xa60   :  { %v2127_v52 = vmul.f32 %v7141_v63, %v2120_v54  ;;  %v4647_v54 = vld [vmem:[#allocation15 + $0x170] sm:$0xf] }
 0xa61   :  { %v2112_v18 = vsub.f32 1.5, %v2111_v19  ;;  %2797 = vmatpush.bf16.msra.mxu1 %v4628_v4  ;;  %v4956_v19 = vld [vmem:[#allocation15 + $0xdc] sm:$0xf] }
 0xa62   :  { %v2531_v11 = vpop.xlane.xlu2 %2530  ;;  %v7194_v7 = vadd.f32 %v7145_v53, %v2127_v52  ;;  %v4555_v52 = vld [vmem:[#allocation15 + $0xc0] sm:$0xf] }
 0xa63   :  { %v2113_v25 = vmul.f32 %v5134_v28, %v2112_v18  ;;  %v2538_v23 = vmul.f32 %v2531_v11, %v6501_v22  ;;  %v4568_v18 = vor.u32 %v4957_v56, %v4567_v40  ;;  %v4569_v11 = vld [vmem:[#allocation15 + $0xe4] sm:$0xf0]  ;;  %v4575_v56 = vld [vmem:[#allocation15 + $0xe0] sm:$0xf] }
 0xa65   :  { %v7187_v20 = vsub.f32 %v2524_v17, %v2538_v23  ;;  %v2117_v34 = vsel %vm2116_vm15, %v5134_v28, %v2113_v25  ;;  %v4620_v17 = vor.u32 %v4968_v51, %v4617_v3  ;;  %2798 = vmatpush.bf16.msra.mxu1 %v4616_v57  ;;  %v4581_v28 = vld [vmem:[#allocation15 + $0xfc] sm:$0xf0]  ;;  %v4976_v25 = vld [vmem:[#allocation15 + $0x178] sm:$0xf0] }
 0xa66   :  { %v2121_v9 = vmul.f32 %v2117_v34, %v2057_v62  ;;  %v4632_v62 = vor.u32 %v4971_v26, %v4629_v48  ;;  %v4584_v33 = vor.u32 %v4959_v47, %v4581_v28  ;;  %v4572_v34 = vor.u32 %v4956_v19, %v4569_v11  ;;  %v4967_v26 = vld [vmem:[#allocation15 + $0x130] sm:$0xf0]  ;;  %v4958_v19 = vld [vmem:[#allocation15 + $0xe8] sm:$0xf0] }
 0xa67   :  { %v2546_v0 = vmul.f32 %v7187_v20, %v7187_v20  ;;  %v4612_v31 = vor.u32 %v4967_v26, %v4611_v61 }
 0xa68   :  { %v2128_v30 = vmul.f32 %v7141_v63, %v2121_v9  ;;  %v4648_v9 = vor.u32 %v4976_v25, %v4647_v54 }
 0xa69   :  { %2550 = vadd.xlane.f32.xlu2 %v2546_v0  ;;  %2799 = vmatpush.bf16.msra.mxu1 %v4604_v44  ;;  %v4954_v0 = vld [vmem:[#allocation15 + $0xc8] sm:$0xf0]  ;;  %v4587_v44 = vld [vmem:[#allocation15 + $0xf8] sm:$0xf] }
 0xa6a   :  { %v2533_v49 = vpop.xlane.xlu0 %2532  ;;  %v7197_v50 = vadd.f32 %v7145_v53, %v2128_v30  ;;  %v4644_v53 = vor.u32 %v4974_v46, %v4641_v16  ;;  %v4953_v30 = vld [vmem:[#allocation15 + $0xc4] sm:$0xf]  ;;  %2834 = vmatpush.bf16.msra.mxu3 %v4648_v9  ;;  %v4970_v16 = vld [vmem:[#allocation15 + $0x148] sm:$0xf0] }
 0xa6b   :  { %v2539_v43 = vmul.f32 %v2533_v49, %v6501_v22  ;;  %v4556_v49 = vor.u32 %v4954_v0, %v4555_v52  ;;  %v4624_v24 = vor.u32 %v4970_v16, %v4623_v12 }
 0xa6c   :  { %v2137_v29 = vpack.c.bf16 %v7197_v50, %v7194_v7  ;;  %2815 = vmatpush.bf16.msra.mxu2 %v4644_v53 }
 0xa6d   :  { %v7202_v39 = vsub.f32 %v2525_v59, %v2539_v43  ;;  %v4605_v59 = vld [vmem:[#allocation15 + $0x12c] sm:$0xf0]  ;;  %2800 = vmatpush.bf16.msra.mxu1 %v4592_v41 }
 0xa6e   :  { %2253 = vmatmul.bf16.gmra.mxu1 %v2137_v29  ;;  %2272 = vmatmul.bf16.gmra.mxu2 %v2137_v29  ;;  %v4608_v6 = vor.u32 %v4965_v58, %v4605_v59  ;;  %v4557_v43 = vld [vmem:[#allocation15 + $0xcc] sm:$0xf0]  ;;  %v4635_v29 = vld [vmem:[#allocation15 + $0x158] sm:$0xf]  ;;  %v4600_v58 = vor.u32 %v4964_v55, %v4599_v21  ;;  %v4961_v59 = vld [vmem:[#allocation15 + $0x100] sm:$0xf0] }
 0xa6f   :  { %v2547_v63 = vmul.f32 %v7202_v39, %v7202_v39  ;;  %v4560_v13 = vor.u32 %v4953_v30, %v4557_v43  ;;  %v4588_v27 = vor.u32 %v4961_v59, %v4587_v44  ;;  %v7230_v30 = vld [vmem:[%s7650_s27] ss:$0 sm:$0xff] }
 0xa70   :  { %2816 = vmatpush.bf16.msra.mxu2 %v4632_v62 }
 0xa71   :  { %2552 = vadd.xlane.f32.xlu0 %v2547_v63  ;;  %2801 = vmatpush.bf16.msra.mxu1 %v4580_v1  ;;  %v4973_v63 = vld [vmem:[#allocation15 + $0x160] sm:$0xf0] }
 0xa72   :  { %v4636_v46 = vor.u32 %v4973_v63, %v4635_v29 }
 0xa74   :  { %2817 = vmatpush.bf16.msra.mxu2 %v4620_v17  ;;  %2835 = vmatpush.bf16.msra.mxu3 %v4636_v46 }
 0xa75   :  { %2802 = vmatpush.bf16.msra.mxu1 %v4568_v18 }
 0xa78   :  { %2818 = vmatpush.bf16.msra.mxu2 %v4608_v6  ;;  %2836 = vmatpush.bf16.msra.mxu3 %v4624_v24  ;;  %v7240_v24 = vld [vmem:[%s7514_s18] ss:$0 sm:$0xff] }
 0xa79   :  { %2803 = vmatpush.bf16.msra.mxu1 %v4556_v49 }
 0xa7c   :  { %2819 = vmatpush.bf16.msra.mxu2 %v4596_v5  ;;  %2837 = vmatpush.bf16.msra.mxu3 %v4612_v31 }
 0xa80   :  { %2820 = vmatpush.bf16.msra.mxu2 %v4584_v33  ;;  %2838 = vmatpush.bf16.msra.mxu3 %v4600_v58 }
 0xa84   :  { %2821 = vmatpush.bf16.msra.mxu2 %v4572_v34  ;;  %2839 = vmatpush.bf16.msra.mxu3 %v4588_v27  ;;  %v4576_v34 = vor.u32 %v4958_v19, %v4575_v56 }
 0xa88   :  { %2822 = vmatpush.bf16.msra.mxu2 %v4560_v13  ;;  %2840 = vmatpush.bf16.msra.mxu3 %v4576_v34 }
 0xadc   :  { %v2551_v37 = vpop.xlane.xlu2 %2550 }
 0xadd   :  { %v2558_v23 = vmul.f32 %v2551_v37, %v6501_v22  ;;  %v4563_v37 = vld [vmem:[#allocation15 + $0xc8] sm:$0xf] }
 0xadf   :  { %v2562_v14 = vadd.f32 1e-12, %v2558_v23  ;;  %v4955_v23 = vld [vmem:[#allocation15 + $0xd0] sm:$0xf0] }
 0xae0   :  { %v4564_v43 = vor.u32 %v4955_v23, %v4563_v37  ;;  %v4552_v37 = vld [vmem:[%s7504_s8 + $0x3] sm:$0x7] }
 0xae1   :  { %5135 = vrsqrt.f32 %v2562_v14  ;;  %vm2572_vm8 = vweird.f32 %v2562_v14 }
 0xae2   :  { %2841 = vmatpush.bf16.msra.mxu3 %v4564_v43 }
 0xae4   :  { %v2553_v53 = vpop.xlane.xlu0 %2552 }
 0xae5   :  { %v2559_v4 = vmul.f32 %v2553_v53, %v6501_v22 }
 0xae7   :  { %v5136_v48 = vpop.eup %5135  ;;  %v2563_v62 = vadd.f32 1e-12, %v2559_v4 }
 0xae8   :  { %v2567_v32 = vmul.f32 %v5136_v48, %v2562_v14  ;;  %vm2573_vm6 = vweird.f32 %v5136_v48 }
 0xae9   :  { %5137 = vrsqrt.f32 %v2563_v62  ;;  %vm7213_vm3 = vmor %vm2572_vm8, %vm2573_vm6  ;;  %vm2582_vm5 = vweird.f32 %v2563_v62 }
 0xaea   :  { %v2568_v51 = vmul.f32 %v5136_v48, %v2567_v32 }
 0xaeb   :  { %v2254_v57 = vpop.f32.mrf.mxu1 }
 0xaec   :  { %v2569_v3 = vmul.f32 0.5, %v2568_v51  ;;  %v7209_v17 = vadd.f32 %v2254_v57, %v7161_v42 }
 0xaee   :  { %v2570_v6 = vsub.f32 1.5, %v2569_v3  ;;  %v2290_v36 = vmul.f32 0.044715, %v7209_v17  ;;  %v2282_v59 = vmul.f32 0.5, %v7209_v17 }
 0xaef   :  { %v5138_v10 = vpop.eup %5137 }
 0xaf0   :  { %v2571_v41 = vmul.f32 %v5136_v48, %v2570_v6  ;;  %v2577_v15 = vmul.f32 %v5138_v10, %v2563_v62  ;;  %v2298_v5 = vmul.f32 %v2290_v36, %v7209_v17  ;;  %vm2583_vm4 = vweird.f32 %v5138_v10 }
 0xaf1   :  { %v2273_v8 = vpop.f32.mrf.mxu2  ;;  %vm2584_vm7 = vmor %vm2582_vm5, %vm2583_vm4 }
 0xaf2   :  { %v2578_v47 = vmul.f32 %v5138_v10, %v2577_v15  ;;  %v7218_v1 = vadd.f32 %v2273_v8, %v7164_v38  ;;  %v2306_v28 = vmul.f32 %v2298_v5, %v7209_v17  ;;  %v2575_v33 = vsel %vm7213_vm3, %v5136_v48, %v2571_v41 }
 0xaf3   :  { %v2256_v40 = vpop.f32.mrf.mxu1  ;;  %v2606_v0 = vmul.f32 %v2575_v33, %v7187_v20 }
 0xaf4   :  { %v2579_v18 = vmul.f32 0.5, %v2578_v47  ;;  %v2291_v11 = vmul.f32 0.044715, %v7218_v1  ;;  %v2257_v54 = vadd.f32 %v2256_v40, %v7161_v42  ;;  %v2314_v25 = vadd.f32 %v2306_v28, %v7209_v17 }
 0xaf5   :  { %v2613_v53 = vmul.f32 %v7230_v30, %v2606_v0  ;;  %v2283_v45 = vmul.f32 0.5, %v7218_v1  ;;  %v7262_v0 = vperm.slane %v4552_v37, 0 }
 0xaf6   :  { %v2580_v9 = vsub.f32 1.5, %v2579_v18  ;;  %v2292_v52 = vmul.f32 0.044715, %v2257_v54  ;;  %v2299_v49 = vmul.f32 %v2291_v11, %v7218_v1  ;;  %v2322_v63 = vmul.f32 0.7978846, %v2314_v25 }
 0xaf7   :  { %v2284_v6 = vmul.f32 0.5, %v2257_v54  ;;  %v7257_v18 = vperm.slane %v4552_v37, 1 }
 0xaf8   :  { %v2581_v29 = vmul.f32 %v5138_v10, %v2580_v9  ;;  %v2300_v42 = vmul.f32 %v2292_v52, %v2257_v54  ;;  %v2307_v13 = vmul.f32 %v2299_v49, %v7218_v1  ;;  %5139 = vtanh.f32 %v2322_v63 }
 0xaf9   :  { %v2275_v14 = vpop.f32.mrf.mxu2 }
 0xafa   :  { %v2585_v46 = vsel %vm2584_vm7, %v5138_v10, %v2581_v29  ;;  %v2276_v20 = vadd.f32 %v2275_v14, %v7164_v38  ;;  %v2308_v12 = vmul.f32 %v2300_v42, %v2257_v54  ;;  %v2315_v61 = vadd.f32 %v2307_v13, %v7218_v1 }
 0xafb   :  { %v2607_v16 = vmul.f32 %v2585_v46, %v7202_v39  ;;  %v7245_v39 = vadd.f32 %v7240_v24, %v2613_v53 }
 0xafc   :  { %v2293_v26 = vmul.f32 0.044715, %v2276_v20  ;;  %v2316_v4 = vadd.f32 %v2308_v12, %v2257_v54  ;;  %v2323_v31 = vmul.f32 0.7978846, %v2315_v61  ;;  %v2285_v47 = vmul.f32 0.5, %v2276_v20 }
 0xafd   :  { %v2614_v48 = vmul.f32 %v7230_v30, %v2607_v16  ;;  %v7271_v61 = vperm.slane %v4552_v37, 2 }
 0xafe   :  { %v2324_v62 = vmul.f32 0.7978846, %v2316_v4  ;;  %v2301_v38 = vmul.f32 %v2293_v26, %v2276_v20  ;;  %v5140_v3 = vpop.eup %5139 }
 0xaff   :  { %v7248_v32 = vadd.f32 %v7240_v24, %v2614_v48  ;;  %v2338_v58 = vadd.f32 1.0, %v5140_v3 }
 0xb00   :  { %5141 = vtanh.f32 %v2324_v62  ;;  %v2309_v51 = vmul.f32 %v2301_v38, %v2276_v20 }
 0xb01   :  { %v2624_v57 = vpack.c.bf16 %v7248_v32, %v7245_v39  ;;  %5143 = vtanh.f32 %v2323_v31  ;;  %v2346_v27 = vmul.f32 %v2338_v58, %v2282_v59 }
 0xb02   :  { %v2317_v21 = vadd.f32 %v2309_v51, %v2276_v20 }
 0xb03   :  { %2804 = vmatmul.bf16.vlgmr.msra.gmra.mxu1 %v2624_v57  ;;  %2823 = vmatmul.bf16.vlgmr.msra.gmra.mxu2 %v2624_v57 }
 0xb04   :  { %v2325_v55 = vmul.f32 0.7978846, %v2317_v21 }
 0xb06   :  { %v5142_v44 = vpop.eup %5141  ;;  %5145 = vtanh.f32 %v2325_v55 }
 0xb07   :  { %v2340_v36 = vadd.f32 1.0, %v5142_v44  ;;  %v5144_v10 = vpop.eup %5143 }
 0xb08   :  { %v2339_v5 = vadd.f32 1.0, %v5144_v10 }
 0xb09   :  { %v2348_v41 = vmul.f32 %v2340_v36, %v2284_v6 }
 0xb0a   :  { %v2347_v33 = vmul.f32 %v2339_v5, %v2283_v45 }
 0xb0b   :  { %v2352_v15 = vpack.c.bf16 %v2348_v41, %v2346_v27 }
 0xb0c   :  { %v5146_v8 = vpop.eup %5145 }
 0xb0d   :  { %2499 = vmatmul.bf16.gmra.mxu3 %v2352_v15  ;;  %v2341_v28 = vadd.f32 1.0, %v5146_v8 }
 0xb0f   :  { %v2349_v40 = vmul.f32 %v2341_v28, %v2285_v47 }
 0xb11   :  { %v2353_v56 = vpack.c.bf16 %v2349_v40, %v2347_v33 }
 0xb13   :  { %2518 = vmatmul.bf16.gmra.mxu0 %v2353_v56 }
 0xb1d   :  { %2842 = vmatmul.bf16.vlgmr.msra.gmra.mxu3 %v2624_v57 }
 0xb80   :  { %v2805_v17 = vpop.f32.mrf.mxu1 }
 0xb81   :  { %v2806_v63 = vadd.f32 %v2805_v17, %v7262_v0 }
 0xb86   :  { %v2824_v19 = vpop.f32.mrf.mxu2 }
 0xb87   :  { %v2825_v54 = vadd.f32 %v2824_v19, %v7257_v18 }
 0xb88   :  { %v2807_v52 = vpop.f32.mrf.mxu1 }
 0xb89   :  { %v2808_v29 = vadd.f32 %v2807_v52, %v7262_v0 }
 0xb8b   :  { %v2853_v13 = vpack.c.bf16 %v2808_v29, %v2806_v63 }
 0xb8e   :  { %v2826_v11 = vpop.f32.mrf.mxu2 }
 0xb8f   :  { %v2827_v1 = vadd.f32 %v2826_v11, %v7257_v18 }
 0xb90   :  { %v2500_v25 = vpop.f32.mrf.mxu3  ;;  %v2519_v23 = vpop.f32.mrf.mxu0 }
 0xb91   :  { %v2854_v34 = vpack.c.bf16 %v2827_v1, %v2825_v54  ;;  %v2501_v9 = vadd.f32 %v7178_v2, %v2500_v25 }
 0xb93   :  { %v2520_v49 = vadd.f32 %v2519_v23, %v2501_v9  ;;  %v2860_v43 = vsel %vm1507_vm1, %v2854_v34, 0 }
 0xb94   :  { %2869 = vmatpush.bf16.xpose.msrb.mxu0 %v2860_v43 }
 0xb95   :  { %v2526_v42 = vadd.f32 %v2520_v49, %v7194_v7 }
 0xb97   :  { %2534 = vadd.xlane.f32.xlu2 %v2526_v42 }
 0xb98   :  { %v2502_v14 = vpop.f32.mrf.mxu3  ;;  %v2521_v20 = vpop.f32.mrf.mxu0 }
 0xb99   :  { %v2503_v46 = vadd.f32 %v7178_v2, %v2502_v14 }
 0xb9b   :  { %v2522_v12 = vadd.f32 %v2521_v20, %v2503_v46  ;;  %4649 = vmatmul.msk.bf16.vlgmr.msrb.gmra.mxu0 %vm1507_vm1, %v2853_v13 }
 0xb9d   :  { %v2527_v16 = vadd.f32 %v2522_v12, %v7197_v50 }
 0xb9f   :  { %2536 = vadd.xlane.f32.xlu0 %v2527_v16 }
 0xba0   :  { %v2843_v53 = vpop.f32.mrf.mxu3 }
 0xba1   :  { %v2844_v7 = vadd.f32 %v2843_v53, %v7271_v61 }
 0xba8   :  { %v2845_v26 = vpop.f32.mrf.mxu3 }
 0xba9   :  { %v2846_v4 = vadd.f32 %v2845_v26, %v7271_v61 }
 0xbab   :  { %v2855_v48 = vpack.c.bf16 %v2846_v4, %v2844_v7 }
 0xbad   :  { %2939 = vmatpush.bf16.msra.mxu0 %v2855_v48 }
 0xc0a   :  { %v2535_v62 = vpop.xlane.xlu2 %2534 }
 0xc0b   :  { %v2540_v2 = vmul.f32 %v2535_v62, %v6501_v22 }
 0xc0d   :  { %v2544_v38 = vsub.f32 %v2526_v42, %v2540_v2 }
 0xc0f   :  { %v2548_v31 = vmul.f32 %v2544_v38, %v2544_v38 }
 0xc11   :  { %2554 = vadd.xlane.f32.xlu2 %v2548_v31 }
 0xc12   :  { %v2537_v51 = vpop.xlane.xlu0 %2536 }
 0xc13   :  { %v2541_v50 = vmul.f32 %v2537_v51, %v6501_v22 }
 0xc15   :  { %v2545_v57 = vsub.f32 %v2527_v16, %v2541_v50 }
 0xc17   :  { %v2549_v3 = vmul.f32 %v2545_v57, %v2545_v57 }
 0xc18   :  { %v2871_v51 = vpop.f32.mrf.mxu0 }
 0xc19   :  { %2556 = vadd.xlane.f32.xlu0 %v2549_v3  ;;  %v2876_v50 = vmul.f32 0.125, %v2871_v51 }
 0xc29   :  { %2960 = vrot.lane.b32.xlu2 %v2854_v34, %s7575_s30 }
 0xc2d   :  { %2957 = vrot.lane.b32.xlu0 %v2853_v13, %s7575_s30 }
 0xc31   :  { %3036 = vrot.lane.b32.xlu2 %v2855_v48, %s7575_s30 }
 0xc84   :  { %v2555_v21 = vpop.xlane.xlu2 %2554 }
 0xc85   :  { %v2560_v55 = vmul.f32 %v2555_v21, %v6501_v22 }
 0xc87   :  { %v2564_v58 = vadd.f32 1e-12, %v2560_v55 }
 0xc89   :  { %5147 = vrsqrt.f32 %v2564_v58  ;;  %vm2592_vm10 = vweird.f32 %v2564_v58 }
 0xc8c   :  { %v2557_v44 = vpop.xlane.xlu0 %2556  ;;  %v2961_v59 = vpop.permute.xlu2 %2960 }
 0xc8d   :  { %v2561_v6 = vmul.f32 %v2557_v44, %v6501_v22  ;;  %v2966_v36 = vsel %vm1507_vm1, %v2961_v59, 0 }
 0xc8e   :  { %2975 = vmatpush.bf16.xpose.msrb.mxu1 %v2966_v36 }
 0xc8f   :  { %v5148_v10 = vpop.eup %5147  ;;  %v2565_v27 = vadd.f32 1e-12, %v2561_v6 }
 0xc90   :  { %v2587_v41 = vmul.f32 %v5148_v10, %v2564_v58  ;;  %vm2593_vm9 = vweird.f32 %v5148_v10 }
 0xc91   :  { %5149 = vrsqrt.f32 %v2565_v27  ;;  %vm2594_vm12 = vmor %vm2592_vm10, %vm2593_vm9  ;;  %vm2602_vm14 = vweird.f32 %v2565_v27 }
 0xc92   :  { %v2588_v15 = vmul.f32 %v5148_v10, %v2587_v41 }
 0xc94   :  { %v2589_v5 = vmul.f32 0.5, %v2588_v15  ;;  %v3037_v8 = vpop.permute.xlu2 %3036 }
 0xc95   :  { %3049 = vmatpush.bf16.msrb.mxu2 %v3037_v8 }
 0xc96   :  { %v2590_v45 = vsub.f32 1.5, %v2589_v5 }
 0xc97   :  { %v5150_v47 = vpop.eup %5149 }
 0xc98   :  { %v2591_v28 = vmul.f32 %v5148_v10, %v2590_v45  ;;  %v2597_v33 = vmul.f32 %v5150_v47, %v2565_v27  ;;  %vm2603_vm11 = vweird.f32 %v5150_v47 }
 0xc99   :  { %vm2604_vm13 = vmor %vm2602_vm14, %vm2603_vm11 }
 0xc9a   :  { %v2598_v40 = vmul.f32 %v5150_v47, %v2597_v33  ;;  %v2595_v56 = vsel %vm2594_vm12, %v5148_v10, %v2591_v28 }
 0xc9b   :  { %v2608_v37 = vmul.f32 %v2595_v56, %v2544_v38 }
 0xc9c   :  { %v2599_v19 = vmul.f32 0.5, %v2598_v40 }
 0xc9d   :  { %v2615_v25 = vmul.f32 %v7230_v30, %v2608_v37  ;;  %v2873_v37 = vpop.f32.mrf.mxu0 }
 0xc9e   :  { %v2600_v17 = vsub.f32 1.5, %v2599_v19 }
 0xc9f   :  { %v7286_v34 = vadd.f32 %v7240_v24, %v2615_v25  ;;  %v2958_v49 = vpop.permute.xlu0 %2957  ;;  %v4984_v25 = vld [vmem:[#allocation16 + $0x78] sm:$0xff] }
 0xca0   :  { %v2601_v11 = vmul.f32 %v5150_v47, %v2600_v17  ;;  %3096 = vmatpush.bf16.msrb.mxu3 %v4984_v25 }
 0xca2   :  { %v2605_v54 = vsel %vm2604_vm13, %v5150_v47, %v2601_v11  ;;  %v2877_v11 = vmul.f32 0.125, %v2873_v37 }
 0xca3   :  { %v2609_v1 = vmul.f32 %v2605_v54, %v2545_v57  ;;  %v2878_v57 = vadd.f32 %v2876_v50, %v6953_v60 }
 0xca4   :  { %v2879_v54 = vadd.f32 %v2877_v11, %v6953_v60 }
 0xca5   :  { %v2616_v23 = vmul.f32 %v7230_v30, %v2609_v1  ;;  %v2880_v3 = vsel %vm1532_vm2, %v2878_v57, -inf }
 0xca6   :  { %v2883_v1 = vsel %vm1532_vm2, %v2879_v54, -inf }
 0xca7   :  { %v7289_v9 = vadd.f32 %v7240_v24, %v2616_v23  ;;  %v4983_v23 = vld [vmem:[#allocation16 + $0x70] sm:$0xff] }
 0xca8   :  { %3097 = vmatpush.bf16.msrb.mxu3 %v4983_v23 }
 0xca9   :  { %v2625_v52 = vpack.c.bf16 %v7289_v9, %v7286_v34 }
 0xcab   :  { %2809 = vmatmul.bf16.gmra.mxu1 %v2625_v52  ;;  %2828 = vmatmul.bf16.gmra.mxu2 %v2625_v52 }
 0xcac   :  { %2847 = vmatmul.bf16.gmra.mxu3 %v2625_v52  ;;  %v4982_v52 = vld [vmem:[#allocation16 + $0x68] sm:$0xff] }
 0xcad   :  { %3098 = vmatpush.bf16.msrb.mxu3 %v4982_v52 }
 0xcbb   :  { %4651 = vmatmul.msk.bf16.vlgmr.msrb.gmra.mxu1 %vm1507_vm1, %v2958_v49  ;;  %v4981_v49 = vld [vmem:[#allocation16 + $0x60] sm:$0xff] }
 0xcbc   :  { %3099 = vmatpush.bf16.msrb.mxu3 %v4981_v49 }
 0xd28   :  { %v2810_v43 = vpop.f32.mrf.mxu1 }
 0xd29   :  { %v2811_v30 = vadd.f32 %v2810_v43, %v7262_v0 }
 0xd2e   :  { %v2829_v29 = vpop.f32.mrf.mxu2 }
 0xd2f   :  { %v2848_v42 = vpop.f32.mrf.mxu3  ;;  %v2830_v46 = vadd.f32 %v2829_v29, %v7257_v18 }
 0xd30   :  { %v2812_v63 = vpop.f32.mrf.mxu1  ;;  %v2849_v16 = vadd.f32 %v2848_v42, %v7271_v61 }
 0xd31   :  { %v2813_v14 = vadd.f32 %v2812_v63, %v7262_v0 }
 0xd33   :  { %v3147_v13 = vpack.c.bf16 %v2813_v14, %v2811_v30 }
 0xd35   :  { %3242 = vrot.lane.b32.xlu2 %v3147_v13, %s7575_s30 }
 0xd36   :  { %v2831_v24 = vpop.f32.mrf.mxu2 }
 0xd37   :  { %v2832_v20 = vadd.f32 %v2831_v24, %v7257_v18  ;;  %v2850_v12 = vpop.f32.mrf.mxu3 }
 0xd38   :  { %v2851_v53 = vadd.f32 %v2850_v12, %v7271_v61  ;;  %v2977_v26 = vpop.f32.mrf.mxu1 }
 0xd39   :  { %v3148_v7 = vpack.c.bf16 %v2832_v20, %v2830_v46  ;;  %v2982_v4 = vmul.f32 0.125, %v2977_v26 }
 0xd3a   :  { %v7301_v48 = vpack.c.bf16 %v2851_v53, %v2849_v16 }
 0xd3b   :  { %v3154_v0 = vsel %vm1507_vm1, %v3148_v7, 0  ;;  %v2984_v62 = vadd.f32 %v2982_v4, %v6953_v60 }
 0xd3c   :  { %3233 = vmatpush.bf16.msra.mxu2 %v7301_v48  ;;  %3163 = vmatpush.bf16.xpose.msra.mxu1 %v3154_v0 }
 0xd3d   :  { %v2986_v2 = vsel %vm1532_vm2, %v2984_v62, -inf }
 0xd3e   :  { %2987 = vmax.xlane.f32.xlu1 %v2986_v2 }
 0xd40   :  { %v2979_v18 = vpop.f32.mrf.mxu1 }
 0xd41   :  { %v2983_v38 = vmul.f32 0.125, %v2979_v18 }
 0xd43   :  { %4687 = vmatmul.msk.bf16.vlgmr.msra.gmra.mxu1 %vm1507_vm1, %v3147_v13  ;;  %v2985_v61 = vadd.f32 %v2983_v38, %v6953_v60 }
 0xd44   :  { %3349 = vmatpush.bf16.msrb.mxu1 %v4984_v25 }
 0xd45   :  { %v2989_v31 = vsel %vm1532_vm2, %v2985_v61, -inf }
 0xd46   :  { %2990 = vmax.xlane.f32.xlu1 %v2989_v31 }
 0xd48   :  { %3350 = vmatpush.bf16.msrb.mxu1 %v4983_v23 }
 0xd4c   :  { %3351 = vmatpush.bf16.msrb.mxu1 %v4982_v52 }
 0xd50   :  { %3352 = vmatpush.bf16.msrb.mxu1 %v4981_v49 }
 0xd5e   :  { %2881 = vmax.xlane.f32.xlu2 %v2880_v3 }
 0xd8f   :  { %v7322_v8 = vpop.permute.xlu2 %3242 }
 0xdb1   :  { %v2988_v21 = vpop.xlane.xlu1 %2987 }
 0xdb2   :  { %v2992_v55 = vsub.f32 %v2984_v62, %v2988_v21 }
 0xdb4   :  { %v2994_v58 = vmul.f32 1.442695, %v2992_v55 }
 0xdb6   :  { %5151 = vpow2.f32 %v2994_v58 }
 0xdb9   :  { %v2991_v44 = vpop.xlane.xlu1 %2990 }
 0xdba   :  { %v2993_v59 = vsub.f32 %v2985_v61, %v2991_v44 }
 0xdbc   :  { %v7312_v6 = vpop.eup %5151  ;;  %v2996_v36 = vmul.f32 1.442695, %v2993_v59 }
 0xdbd   :  { %v2998_v10 = vsel %vm1532_vm2, %v7312_v6, 0.0 }
 0xdbe   :  { %5153 = vpow2.f32 %v2996_v36  ;;  %2999 = vadd.xlane.f32.xlu1 %v2998_v10 }
 0xdc0   :  { %v7316_v27 = vpop.f32.mrf.mxu1 }
 0xdc1   :  { %v3170_v44 = vmul.f32 0.125, %v7316_v27 }
 0xdc3   :  { %v3172_v36 = vadd.f32 %v3170_v44, %v7045_v35 }
 0xdc4   :  { %v7318_v41 = vpop.eup %5153 }
 0xdc5   :  { %v3001_v15 = vsel %vm1532_vm2, %v7318_v41, 0.0 }
 0xdc6   :  { %3002 = vadd.xlane.f32.xlu0 %v3001_v15 }
 0xdc8   :  { %v3167_v5 = vpop.f32.mrf.mxu1 }
 0xdc9   :  { %v3171_v45 = vmul.f32 0.125, %v3167_v5 }
 0xdcb   :  { %v7325_v47 = vadd.f32 %v3171_v45, %v7045_v35 }
 0xdcd   :  { %v3177_v28 = vsel %vm1532_vm2, %v7325_v47, -inf }
 0xdce   :  { %3178 = vmax.xlane.f32.xlu2 %v3177_v28 }
 0xdd1   :  { %v2882_v33 = vpop.xlane.xlu2 %2881 }
 0xdd2   :  { %v2886_v40 = vsub.f32 %v2878_v57, %v2882_v33 }
 0xdd4   :  { %v2888_v56 = vmul.f32 1.442695, %v2886_v40 }
 0xdd6   :  { %5155 = vpow2.f32 %v2888_v56 }
 0xdd7   :  { %3245 = vrot.lane.b32.xlu1 %v3148_v7, %s7575_s30 }
 0xddc   :  { %v7330_v19 = vpop.eup %5155 }
 0xddd   :  { %v2892_v17 = vsel %vm1532_vm2, %v7330_v19, 0.0 }
 0xdde   :  { %2893 = vadd.xlane.f32.xlu0 %v2892_v17 }
 0xe01   :  { %2884 = vmax.xlane.f32.xlu1 %v2883_v1 }
 0xe31   :  { %v3000_v43 = vpop.xlane.xlu1 %2999 }
 0xe32   :  { %5157 = vrcp.f32 %v3000_v43  ;;  %v3015_v46 = vand.u32 2147483648, %v3000_v43  ;;  %vm3009_vm6 = vweird.f32 %v3000_v43  ;;  %v3013_v20 = vand.u32 2147483647, %v3000_v43 }
 0xe34   :  { %v3016_v4 = vor.u32 1.1754944e-38, %v3015_v46  ;;  %vm3014_vm4 = vcmp.eq.f32.partialorder %v3013_v20, 8.507059e+37 }
 0xe38   :  { %v5158_v29 = vpop.eup %5157 }
 0xe39   :  { %v3005_v42 = vmul.f32 %v5158_v29, %v3000_v43  ;;  %v3003_v60 = vpop.xlane.xlu0 %3002  ;;  %vm3010_vm15 = vweird.f32 %v5158_v29 }
 0xe3a   :  { %5159 = vrcp.f32 %v3003_v60  ;;  %vm3011_vm8 = vmor %vm3009_vm6, %vm3010_vm15  ;;  %v3030_v16 = vand.u32 2147483648, %v3003_v60  ;;  %v3028_v7 = vand.u32 2147483647, %v3003_v60  ;;  %vm3024_vm5 = vweird.f32 %v3003_v60 }
 0xe3b   :  { %v3006_v63 = vsub.f32 1.0, %v3005_v42 }
 0xe3c   :  { %v3031_v2 = vor.u32 1.1754944e-38, %v3030_v16  ;;  %vm3029_vm9 = vcmp.eq.f32.partialorder %v3028_v7, 8.507059e+37  ;;  %v4979_v7 = vld [vmem:[#allocation16 + $0x50] sm:$0xff] }
 0xe3d   :  { %v3007_v30 = vmul.f32 %v5158_v29, %v3006_v63 }
 0xe3f   :  { %v3008_v13 = vadd.f32 %v5158_v29, %v3007_v30 }
 0xe40   :  { %v5160_v14 = vpop.eup %5159 }
 0xe41   :  { %v3020_v24 = vmul.f32 %v5160_v14, %v3003_v60  ;;  %v3012_v53 = vsel %vm3011_vm8, %v5158_v29, %v3008_v13  ;;  %vm3025_vm3 = vweird.f32 %v5160_v14 }
 0xe42   :  { %v3017_v62 = vsel %vm3014_vm4, %v3016_v4, %v3012_v53  ;;  %vm3026_vm7 = vmor %vm3024_vm5, %vm3025_vm3 }
 0xe43   :  { %v3021_v12 = vsub.f32 1.0, %v3020_v24  ;;  %v3018_v51 = vmul.f32 %v7312_v6, %v3017_v62  ;;  %v3174_v6 = vsel %vm1532_vm2, %v3172_v36, -inf }
 0xe45   :  { %v3022_v26 = vmul.f32 %v5160_v14, %v3021_v12 }
 0xe47   :  { %v3023_v0 = vadd.f32 %v5160_v14, %v3022_v26  ;;  %v4980_v26 = vld [vmem:[#allocation16 + $0x58] sm:$0xff] }
 0xe48   :  { %3137 = vmatpush.bf16.msrb.mxu0 %v4980_v26 }
 0xe49   :  { %v3027_v18 = vsel %vm3026_vm7, %v5160_v14, %v3023_v0  ;;  %v3246_v38 = vpop.permute.xlu1 %3245  ;;  %v4978_v0 = vld [vmem:[#allocation16 + $0x48] sm:$0xff] }
 0xe4a   :  { %v3032_v61 = vsel %vm3029_vm9, %v3031_v2, %v3027_v18  ;;  %v3251_v31 = vsel %vm1507_vm1, %v3246_v38, 0  ;;  %v4977_v2 = vld [vmem:[#allocation16 + $0x40] sm:$0xff] }
 0xe4b   :  { %v3033_v50 = vmul.f32 %v7318_v41, %v3032_v61  ;;  %3260 = vmatpush.bf16.xpose.msra.mxu3 %v3251_v31 }
 0xe4c   :  { %3138 = vmatpush.bf16.msrb.mxu0 %v4979_v7 }
 0xe4d   :  { %v3034_v57 = vpack.c.bf16 %v3033_v50, %v3018_v51 }
 0xe4f   :  { %4652 = vmatmul.msk.bf16.vlgmr.msrb.gmra.mxu2 %vm1532_vm2, %v3034_v57 }
 0xe50   :  { %3366 = vmatpush.bf16.msrb.mxu2 %v4980_v26  ;;  %3139 = vmatpush.bf16.msrb.mxu0 %v4978_v0  ;;  %v7376_v26 = vld [vmem:[#allocation18 + $0x1] ss:$0 sm:$0xff] }
 0xe51   :  { %v2894_v5 = vpop.xlane.xlu0 %2893 }
 0xe52   :  { %vm2903_vm12 = vweird.f32 %v2894_v5  ;;  %v2907_v25 = vand.u32 2147483647, %v2894_v5 }
 0xe54   :  { %vm2908_vm13 = vcmp.eq.f32.partialorder %v2907_v25, 8.507059e+37  ;;  %3367 = vmatpush.bf16.msrb.mxu2 %v4979_v7  ;;  %3140 = vmatpush.bf16.msrb.mxu0 %v4977_v2 }
 0xe58   :  { %3368 = vmatpush.bf16.msrb.mxu2 %v4978_v0 }
 0xe5c   :  { %3369 = vmatpush.bf16.msrb.mxu2 %v4977_v2 }
 0xe74   :  { %v2885_v3 = vpop.xlane.xlu1 %2884 }
 0xe75   :  { %v2887_v21 = vsub.f32 %v2879_v54, %v2885_v3  ;;  %v2909_v54 = vand.u32 2147483648, %v2894_v5 }
 0xe77   :  { %v2890_v55 = vmul.f32 1.442695, %v2887_v21  ;;  %v2910_v42 = vor.u32 1.1754944e-38, %v2909_v54 }
 0xe79   :  { %5161 = vpow2.f32 %v2890_v55 }
 0xe7a   :  { %5163 = vrcp.f32 %v2894_v5 }
 0xe7f   :  { %v5162_v58 = vpop.eup %5161 }
 0xe80   :  { %v2895_v59 = vsel %vm1532_vm2, %v5162_v58, 0.0  ;;  %v5164_v45 = vpop.eup %5163 }
 0xe81   :  { %2896 = vadd.xlane.f32.xlu0 %v2895_v59  ;;  %v2899_v27 = vmul.f32 %v5164_v45, %v2894_v5  ;;  %vm2904_vm10 = vweird.f32 %v5164_v45 }
 0xe82   :  { %vm2905_vm11 = vmor %vm2903_vm12, %vm2904_vm10 }
 0xe83   :  { %v2900_v28 = vsub.f32 1.0, %v2899_v27 }
 0xe85   :  { %v2901_v40 = vmul.f32 %v5164_v45, %v2900_v28 }
 0xe87   :  { %v2902_v17 = vadd.f32 %v5164_v45, %v2901_v40 }
 0xe89   :  { %3175 = vmax.xlane.f32.xlu0 %v3174_v6  ;;  %v2906_v43 = vsel %vm2905_vm11, %v5164_v45, %v2902_v17 }
 0xe8a   :  { %v2911_v63 = vsel %vm2908_vm13, %v2910_v42, %v2906_v43 }
 0xe8b   :  { %v2912_v24 = vmul.f32 %v7330_v19, %v2911_v63  ;;  %v3179_v19 = vpop.xlane.xlu2 %3178 }
 0xe8c   :  { %v3181_v62 = vsub.f32 %v7325_v47, %v3179_v19 }
 0xe8e   :  { %v3184_v18 = vmul.f32 1.442695, %v3181_v62 }
 0xed2   :  { %v3051_v10 = vpop.f32.mrf.mxu2 }
 0xeda   :  { %v3053_v41 = vpop.f32.mrf.mxu2 }
 0xedb   :  { %v3056_v15 = vpack.c.bf16 %v3053_v41, %v3051_v10 }
 0xedd   :  { %4669 = vmatmul.msk.bf16.vlgmr.msrb.gmra.mxu3 %vm1507_vm1, %v3056_v15 }
 0xeed   :  { %4689 = vmatmul.msk.bf16.vlgmr.msra.gmra.mxu3 %vm1507_vm1, %v7322_v8 }
 0xef4   :  { %v2897_v33 = vpop.xlane.xlu0 %2896 }
 0xef5   :  { %5165 = vrcp.f32 %v2897_v33  ;;  %v2924_v52 = vand.u32 2147483648, %v2897_v33  ;;  %v2922_v29 = vand.u32 2147483647, %v2897_v33  ;;  %vm2918_vm15 = vweird.f32 %v2897_v33 }
 0xef7   :  { %v2925_v30 = vor.u32 1.1754944e-38, %v2924_v52  ;;  %vm2923_vm8 = vcmp.eq.f32.partialorder %v2922_v29, 8.507059e+37 }
 0xefb   :  { %v5166_v56 = vpop.eup %5165 }
 0xefc   :  { %v2914_v37 = vmul.f32 %v5166_v56, %v2897_v33  ;;  %v3176_v11 = vpop.xlane.xlu0 %3175  ;;  %vm2919_vm14 = vweird.f32 %v5166_v56 }
 0xefd   :  { %v3180_v1 = vsub.f32 %v3172_v36, %v3176_v11  ;;  %vm2920_vm6 = vmor %vm2918_vm15, %vm2919_vm14 }
 0xefe   :  { %v2915_v23 = vsub.f32 1.0, %v2914_v37 }
 0xeff   :  { %v3182_v49 = vmul.f32 1.442695, %v3180_v1 }
 0xf00   :  { %v2916_v8 = vmul.f32 %v5166_v56, %v2915_v23 }
 0xf01   :  { %5167 = vpow2.f32 %v3182_v49 }
 0xf02   :  { %v2917_v60 = vadd.f32 %v5166_v56, %v2916_v8  ;;  %5169 = vpow2.f32 %v3184_v18 }
 0xf04   :  { %v2921_v14 = vsel %vm2920_vm6, %v5166_v56, %v2917_v60 }
 0xf05   :  { %v2926_v13 = vsel %vm2923_vm8, %v2925_v30, %v2921_v14 }
 0xf06   :  { %v2927_v46 = vmul.f32 %v5162_v58, %v2926_v13 }
 0xf07   :  { %v7348_v20 = vpop.eup %5167 }
 0xf08   :  { %v3186_v12 = vsel %vm1532_vm2, %v7348_v20, 0.0  ;;  %v2928_v16 = vpack.c.bf16 %v2927_v46, %v2912_v24  ;;  %v5170_v3 = vpop.eup %5169 }
 0xf09   :  { %3187 = vadd.xlane.f32.xlu1 %v3186_v12  ;;  %v3189_v47 = vsel %vm1532_vm2, %v5170_v3, 0.0 }
 0xf0a   :  { %4650 = vmatmul.msk.bf16.vlgmr.msra.gmra.mxu0 %vm1532_vm2, %v2928_v16 }
 0xf60   :  { %v7353_v53 = vpop.f32.mrf.mxu3 }
 0xf68   :  { %v7355_v4 = vpop.f32.mrf.mxu3 }
 0xf70   :  { %v3262_v38 = vpop.f32.mrf.mxu3 }
 0xf71   :  { %v3267_v61 = vmul.f32 0.125, %v3262_v38 }
 0xf73   :  { %v3269_v31 = vadd.f32 %v3267_v61, %v7045_v35 }
 0xf75   :  { %v3271_v51 = vsel %vm1532_vm2, %v3269_v31, -inf }
 0xf76   :  { %3272 = vmax.xlane.f32.xlu0 %v3271_v51 }
 0xf78   :  { %v3264_v50 = vpop.f32.mrf.mxu3 }
 0xf79   :  { %v3268_v57 = vmul.f32 0.125, %v3264_v50 }
 0xf7b   :  { %v3270_v21 = vadd.f32 %v3268_v57, %v7045_v35 }
 0xf7c   :  { %v3188_v36 = vpop.xlane.xlu1 %3187 }
 0xf7d   :  { %v3274_v55 = vsel %vm1532_vm2, %v3270_v21, -inf  ;;  %5171 = vrcp.f32 %v3188_v36  ;;  %v3203_v54 = vand.u32 2147483648, %v3188_v36  ;;  %vm3197_vm4 = vweird.f32 %v3188_v36 }
 0xf7e   :  { %3190 = vadd.xlane.f32.xlu0 %v3189_v47  ;;  %3275 = vmax.xlane.f32.xlu2 %v3274_v55  ;;  %v3201_v1 = vand.u32 2147483647, %v3188_v36 }
 0xf7f   :  { %v3204_v29 = vor.u32 1.1754944e-38, %v3203_v54 }
 0xf80   :  { %vm3202_vm9 = vcmp.eq.f32.partialorder %v3201_v1, 8.507059e+37 }
 0xf83   :  { %v5172_v10 = vpop.eup %5171 }
 0xf84   :  { %v3193_v15 = vmul.f32 %v5172_v10, %v3188_v36  ;;  %vm3198_vm3 = vweird.f32 %v5172_v10 }
 0xf85   :  { %vm3199_vm5 = vmor %vm3197_vm4, %vm3198_vm3 }
 0xf86   :  { %v3194_v5 = vsub.f32 1.0, %v3193_v15 }
 0xf87   :  { %v2941_v58 = vpop.f32.mrf.mxu0 }
 0xf88   :  { %v3195_v40 = vmul.f32 %v5172_v10, %v3194_v5 }
 0xf8a   :  { %v3196_v37 = vadd.f32 %v5172_v10, %v3195_v40 }
 0xf8c   :  { %v3200_v49 = vsel %vm3199_vm5, %v5172_v10, %v3196_v37 }
 0xf8d   :  { %v3205_v63 = vsel %vm3202_vm9, %v3204_v29, %v3200_v49 }
 0xf8e   :  { %v3206_v24 = vmul.f32 %v7348_v20, %v3205_v63 }
 0xf8f   :  { %v2943_v44 = vpop.f32.mrf.mxu0 }
 0xf90   :  { %v2946_v59 = vpack.c.bf16 %v2943_v44, %v2941_v58 }
 0xf92   :  { %4686 = vmatmul.msk.bf16.vlgmr.msrb.gmra.mxu0 %vm1507_vm1, %v2946_v59  ;;  %3321 = vrot.lane.b32.xlu0 %v7301_v48, %s7575_s30 }
 0xfe9   :  { %v3273_v6 = vpop.xlane.xlu0 %3272 }
 0xfea   :  { %v3277_v41 = vsub.f32 %v3269_v31, %v3273_v6 }
 0xfec   :  { %v3279_v35 = vmul.f32 1.442695, %v3277_v41 }
 0xfee   :  { %5173 = vpow2.f32 %v3279_v35 }
 0xff1   :  { %v3191_v45 = vpop.xlane.xlu0 %3190  ;;  %v3276_v27 = vpop.xlane.xlu2 %3275 }
 0xff2   :  { %5175 = vrcp.f32 %v3191_v45  ;;  %v3278_v28 = vsub.f32 %v3270_v21, %v3276_v27  ;;  %v3218_v23 = vand.u32 2147483648, %v3191_v45  ;;  %v3216_v8 = vand.u32 2147483647, %v3191_v45 }
 0xff3   :  { %vm3212_vm10 = vweird.f32 %v3191_v45 }
 0xff4   :  { %v7366_v33 = vpop.eup %5173  ;;  %v3281_v56 = vmul.f32 1.442695, %v3278_v28  ;;  %v3219_v30 = vor.u32 1.1754944e-38, %v3218_v23  ;;  %vm3217_vm11 = vcmp.eq.f32.partialorder %v3216_v8, 8.507059e+37 }
 0xff5   :  { %v3283_v48 = vsel %vm1532_vm2, %v7366_v33, 0.0 }
 0xff6   :  { %3284 = vadd.xlane.f32.xlu2 %v3283_v48  ;;  %5177 = vpow2.f32 %v3281_v56 }
 0xff8   :  { %v5176_v17 = vpop.eup %5175 }
 0xff9   :  { %v3208_v11 = vmul.f32 %v5176_v17, %v3191_v45  ;;  %vm3213_vm7 = vweird.f32 %v5176_v17 }
 0xffa   :  { %vm3214_vm12 = vmor %vm3212_vm10, %vm3213_vm7 }
 0xffb   :  { %v3209_v25 = vsub.f32 1.0, %v3208_v11 }
 0xffc   :  { %v7370_v52 = vpop.eup %5177 }
 0xffd   :  { %v3210_v43 = vmul.f32 %v5176_v17, %v3209_v25  ;;  %v3286_v42 = vsel %vm1532_vm2, %v7370_v52, 0.0 }
 0xffe   :  { %3287 = vadd.xlane.f32.xlu1 %v3286_v42 }
 0xfff   :  { %v3211_v60 = vadd.f32 %v5176_v17, %v3210_v43 }
0x1001   :  { %v3215_v14 = vsel %vm3214_vm12, %v5176_v17, %v3211_v60 }
0x1002   :  { %v3220_v13 = vsel %vm3217_vm11, %v3219_v30, %v3215_v14 }
0x1003   :  { %v3221_v46 = vmul.f32 %v5170_v3, %v3220_v13 }
0x1004   :  { %v3322_v12 = vpop.permute.xlu0 %3321 }
0x1005   :  { %3334 = vmatpush.bf16.msra.mxu0 %v3322_v12  ;;  %v3222_v16 = vpack.c.bf16 %v3221_v46, %v3206_v24  ;;  %v5000_v46 = vld [vmem:[#allocation22 + $0xf4] sm:$0xf0]  ;;  %v4999_v12 = vld [vmem:[#allocation22 + $0xf4] sm:$0xf] }
0x1007   :  { %4688 = vmatmul.msk.bf16.vlgmr.msra.gmra.mxu2 %vm1532_vm2, %v3222_v16 }
0x100f   :  { %v3142_v7 = vpop.f32.mrf.mxu0 }
0x1010   :  { %v3143_v19 = vadd.f32 %v3142_v7, %v7353_v53  ;;  %v4754_v7 = vld [vmem:[#allocation22 + $0xf8] sm:$0xf0] }
0x1012   :  { %v3381_v0 = vadd.f32 %v7376_v26, %v3143_v19  ;;  %v4757_v19 = vor.u32 %v4999_v12, %v4754_v7 }
0x1014   :  { %v7381_v62 = vadd.f32 %v3381_v0, %v7245_v39  ;;  %3612 = vmatpush.bf16.msrb.mxu0 %v4757_v19  ;;  %v4744_v0 = vld [vmem:[#allocation22 + $0xe0] sm:$0xf] }
0x1016   :  { %3393 = vadd.xlane.f32.xlu2 %v7381_v62 }
0x1017   :  { %v3144_v2 = vpop.f32.mrf.mxu0 }
0x1018   :  { %v3145_v20 = vadd.f32 %v3144_v2, %v7355_v4 }
0x101a   :  { %v3382_v18 = vadd.f32 %v7376_v26, %v3145_v20 }
0x101c   :  { %v3386_v38 = vadd.f32 %v3382_v18, %v7248_v32  ;;  %v4736_v18 = vld [vmem:[#allocation22 + $0xd0] sm:$0xf] }
0x101e   :  { %3395 = vadd.xlane.f32.xlu1 %v3386_v38 }
0x1069   :  { %v3285_v61 = vpop.xlane.xlu2 %3284 }
0x106a   :  { %5179 = vrcp.f32 %v3285_v61  ;;  %v3300_v47 = vand.u32 2147483648, %v3285_v61  ;;  %vm3294_vm13 = vweird.f32 %v3285_v61  ;;  %v3298_v4 = vand.u32 2147483647, %v3285_v61 }
0x106c   :  { %v3301_v36 = vor.u32 1.1754944e-38, %v3300_v47  ;;  %vm3299_vm8 = vcmp.eq.f32.partialorder %v3298_v4, 8.507059e+37  ;;  %v4730_v4 = vld [vmem:[#allocation22 + $0xc8] sm:$0xf0] }
0x1070   :  { %v5180_v31 = vpop.eup %5179 }
0x1071   :  { %v3290_v51 = vmul.f32 %v5180_v31, %v3285_v61  ;;  %v3288_v53 = vpop.xlane.xlu1 %3287  ;;  %vm3295_vm14 = vweird.f32 %v5180_v31  ;;  %v4995_v61 = vld [vmem:[#allocation22 + $0xd4] sm:$0xf] }
0x1072   :  { %5181 = vrcp.f32 %v3288_v53  ;;  %vm3296_vm15 = vmor %vm3294_vm13, %vm3295_vm14  ;;  %v3315_v58 = vand.u32 2147483648, %v3288_v53  ;;  %v3313_v59 = vand.u32 2147483647, %v3288_v53  ;;  %vm3309_vm3 = vweird.f32 %v3288_v53 }
0x1073   :  { %v3291_v50 = vsub.f32 1.0, %v3290_v51  ;;  %v4738_v51 = vld [vmem:[#allocation22 + $0xd8] sm:$0xf0] }
0x1074   :  { %v3316_v41 = vor.u32 1.1754944e-38, %v3315_v58  ;;  %vm3314_vm5 = vcmp.eq.f32.partialorder %v3313_v59, 8.507059e+37  ;;  %v4720_v58 = vld [vmem:[#allocation22 + $0xb0] sm:$0xf] }
0x1075   :  { %v3292_v57 = vmul.f32 %v5180_v31, %v3291_v50  ;;  %v4741_v50 = vor.u32 %v4995_v61, %v4738_v51 }
0x1077   :  { %v3293_v3 = vadd.f32 %v5180_v31, %v3292_v57  ;;  %v4728_v57 = vld [vmem:[#allocation22 + $0xc0] sm:$0xf] }
0x1078   :  { %v5182_v39 = vpop.eup %5181 }
0x1079   :  { %v3305_v21 = vmul.f32 %v5182_v39, %v3288_v53  ;;  %v3297_v32 = vsel %vm3296_vm15, %v5180_v31, %v3293_v3  ;;  %vm3310_vm6 = vweird.f32 %v5182_v39  ;;  %v4993_v3 = vld [vmem:[#allocation22 + $0xc4] sm:$0xf] }
0x107a   :  { %v3302_v10 = vsel %vm3299_vm8, %v3301_v36, %v3297_v32  ;;  %vm3311_vm4 = vmor %vm3309_vm3, %vm3310_vm6  ;;  %v4992_v32 = vld [vmem:[#allocation22 + $0xb4] sm:$0xf0] }
0x107b   :  { %v3306_v55 = vsub.f32 1.0, %v3305_v21  ;;  %v3303_v5 = vmul.f32 %v7366_v33, %v3302_v10  ;;  %v4721_v36 = vor.u32 %v4992_v32, %v4720_v58 }
0x107d   :  { %v3307_v44 = vmul.f32 %v5182_v39, %v3306_v55  ;;  %v4733_v55 = vor.u32 %v4993_v3, %v4730_v4 }
0x107f   :  { %v3308_v6 = vadd.f32 %v5182_v39, %v3307_v44  ;;  %v4991_v44 = vld [vmem:[#allocation22 + $0xb4] sm:$0xf] }
0x1081   :  { %v3312_v35 = vsel %vm3311_vm4, %v5182_v39, %v3308_v6  ;;  %v4994_v39 = vld [vmem:[#allocation22 + $0xc4] sm:$0xf0]  ;;  %v4722_v6 = vld [vmem:[#allocation22 + $0xb8] sm:$0xf0] }
0x1082   :  { %v3317_v15 = vsel %vm3314_vm5, %v3316_v41, %v3312_v35  ;;  %v4729_v47 = vor.u32 %v4994_v39, %v4728_v57  ;;  %v4725_v10 = vor.u32 %v4991_v44, %v4722_v6  ;;  %v4712_v41 = vld [vmem:[#allocation22 + $0xa0] sm:$0xf]  ;;  %v4990_v35 = vld [vmem:[#allocation22 + $0xa4] sm:$0xf0] }
0x1083   :  { %v3318_v45 = vmul.f32 %v7370_v52, %v3317_v15  ;;  %v4989_v15 = vld [vmem:[#allocation22 + $0xa4] sm:$0xf] }
0x1085   :  { %v3319_v27 = vpack.c.bf16 %v3318_v45, %v3303_v5  ;;  %v4713_v5 = vor.u32 %v4990_v35, %v4712_v41  ;;  %v4714_v45 = vld [vmem:[#allocation22 + $0xa8] sm:$0xf0]  ;;  %v5015_v41 = vld [vmem:[#allocation24 + $0xf0] sm:$0xff] }
0x1087   :  { %4690 = vmatmul.msk.bf16.vlgmr.msra.gmra.mxu0 %vm1532_vm2, %v3319_v27  ;;  %v4717_v27 = vor.u32 %v4989_v15, %v4714_v45  ;;  %v5008_v15 = vld [vmem:[#allocation24 + $0xb8] sm:$0xff] }
0x1088   :  { %3841 = vmatpush.bf16.msra.mxu1 %v5008_v15 }
0x1089   :  { %v3394_v49 = vpop.xlane.xlu2 %3393 }
0x108a   :  { %v3235_v28 = vpop.f32.mrf.mxu2  ;;  %v3401_v8 = vmul.f32 %v3394_v49, %v6501_v22 }
0x108c   :  { %v7404_v63 = vsub.f32 %v7381_v62, %v3401_v8  ;;  %v4998_v62 = vld [vmem:[#allocation22 + $0xe4] sm:$0xf0]  ;;  %v4698_v8 = vld [vmem:[#allocation22 + $0x88] sm:$0xf0] }
0x108d   :  { %v4745_v2 = vor.u32 %v4998_v62, %v4744_v0 }
0x108e   :  { %v3409_v24 = vmul.f32 %v7404_v63, %v7404_v63 }
0x1091   :  { %v3396_v40 = vpop.xlane.xlu1 %3395 }
0x1092   :  { %v3402_v56 = vmul.f32 %v3396_v40, %v6501_v22  ;;  %v3237_v48 = vpop.f32.mrf.mxu2  ;;  %v4988_v40 = vld [vmem:[#allocation22 + $0x94] sm:$0xf0] }
0x1093   :  { %v3240_v17 = vpack.c.bf16 %v3237_v48, %v3235_v28  ;;  %v4704_v28 = vld [vmem:[#allocation22 + $0x90] sm:$0xf] }
0x1094   :  { %v7391_v37 = vsub.f32 %v3386_v38, %v3402_v56  ;;  %v4996_v38 = vld [vmem:[#allocation22 + $0xd4] sm:$0xf0]  ;;  %v4987_v56 = vld [vmem:[#allocation22 + $0x94] sm:$0xf]  ;;  %v4705_v48 = vor.u32 %v4988_v40, %v4704_v28  ;;  %v5014_v28 = vld [vmem:[#allocation24 + $0xe8] sm:$0xff] }
0x1095   :  { %4692 = vmatmul.msk.bf16.vlgmr.msrb.gmra.mxu2 %vm1507_vm1, %v3240_v17  ;;  %v4737_v31 = vor.u32 %v4996_v38, %v4736_v18  ;;  %v4706_v17 = vld [vmem:[#allocation22 + $0x98] sm:$0xf0] }
0x1096   :  { %v3410_v11 = vmul.f32 %v7391_v37, %v7391_v37 }
0x1098   :  { %3415 = vadd.xlane.f32.xlu0 %v3410_v11 }
0x1104   :  { %v3336_v33 = vpop.f32.mrf.mxu0 }
0x110b   :  { %v3416_v53 = vpop.xlane.xlu0 %3415 }
0x110c   :  { %v3338_v54 = vpop.f32.mrf.mxu0  ;;  %v3422_v21 = vmul.f32 %v3416_v53, %v6501_v22  ;;  %v7430_v53 = vld [vmem:[#allocation21 + $0x1] ss:$0 sm:$0xff] }
0x110d   :  { %v3341_v1 = vpack.c.bf16 %v3338_v54, %v3336_v33  ;;  %v4709_v33 = vor.u32 %v4987_v56, %v4706_v17  ;;  %v5007_v56 = vld [vmem:[#allocation24 + $0xb0] sm:$0xff] }
0x110e   :  { %v3426_v59 = vadd.f32 1e-12, %v3422_v21  ;;  %3842 = vmatpush.bf16.msra.mxu1 %v5007_v56 }
0x110f   :  { %4691 = vmatmul.msk.bf16.vlgmr.msrb.gmra.mxu1 %vm1507_vm1, %v3341_v1 }
0x1110   :  { %5183 = vrsqrt.f32 %v3426_v59  ;;  %vm3445_vm2 = vweird.f32 %v3426_v59 }
0x1116   :  { %v5184_v54 = vpop.eup %5183 }
0x1117   :  { %vm3446_vm1 = vweird.f32 %v5184_v54 }
0x1118   :  { %v3371_v25 = vpop.f32.mrf.mxu2  ;;  %vm3447_vm7 = vmor %vm3445_vm2, %vm3446_vm1 }
0x1120   :  { %v3373_v42 = vpop.f32.mrf.mxu2 }
0x118c   :  { %v3354_v23 = vpop.f32.mrf.mxu1 }
0x118d   :  { %v3372_v52 = vadd.f32 %v3371_v25, %v3354_v23  ;;  %v4696_v25 = vld [vmem:[#allocation22 + $0x80] sm:$0xf]  ;;  %v4986_v23 = vld [vmem:[#allocation22 + $0x84] sm:$0xf0] }
0x118f   :  { %v3383_v43 = vadd.f32 %v7376_v26, %v3372_v52  ;;  %v4985_v52 = vld [vmem:[#allocation22 + $0x84] sm:$0xf] }
0x1191   :  { %v7400_v29 = vadd.f32 %v3383_v43, %v7286_v34  ;;  %v4752_v34 = vld [vmem:[#allocation22 + $0xf0] sm:$0xf]  ;;  %v4697_v43 = vor.u32 %v4986_v23, %v4696_v25  ;;  %v5012_v23 = vld [vmem:[#allocation24 + $0xd8] sm:$0xff] }
0x1192   :  { %v4753_v16 = vor.u32 %v5000_v46, %v4752_v34 }
0x1193   :  { %3397 = vadd.xlane.f32.xlu2 %v7400_v29 }
0x1194   :  { %v3356_v60 = vpop.f32.mrf.mxu1  ;;  %3593 = vmatpush.bf16.msrb.mxu3 %v4753_v16 }
0x1195   :  { %v3374_v30 = vadd.f32 %v3373_v42, %v3356_v60  ;;  %v3440_v42 = vmul.f32 %v5184_v54, %v3426_v59  ;;  %v4701_v60 = vor.u32 %v4985_v52, %v4698_v8 }
0x1197   :  { %v3384_v14 = vadd.f32 %v7376_v26, %v3374_v30  ;;  %v4997_v26 = vld [vmem:[#allocation22 + $0xe4] sm:$0xf] }
0x1198   :  { %3594 = vmatpush.bf16.msrb.mxu3 %v4745_v2 }
0x1199   :  { %v7408_v13 = vadd.f32 %v3384_v14, %v7289_v9  ;;  %v4746_v9 = vld [vmem:[#allocation22 + $0xe8] sm:$0xf0]  ;;  %v3441_v14 = vmul.f32 %v5184_v54, %v3440_v42 }
0x119a   :  { %v4749_v20 = vor.u32 %v4997_v26, %v4746_v9 }
0x119b   :  { %3399 = vadd.xlane.f32.xlu1 %v7408_v13  ;;  %3413 = vadd.xlane.f32.xlu2 %v3409_v24  ;;  %v3442_v7 = vmul.f32 0.5, %v3441_v14  ;;  %v5004_v14 = vld [vmem:[#allocation24 + $0x98] sm:$0xff] }
0x119c   :  { %3613 = vmatpush.bf16.msrb.mxu0 %v4749_v20  ;;  %3595 = vmatpush.bf16.msrb.mxu3 %v4737_v31 }
0x119d   :  { %v3443_v0 = vsub.f32 1.5, %v3442_v7  ;;  %v5009_v7 = vld [vmem:[#allocation24 + $0xc0] sm:$0xff] }
0x119f   :  { %v3444_v26 = vmul.f32 %v5184_v54, %v3443_v0  ;;  %v5002_v0 = vld [vmem:[#allocation24 + $0x88] sm:$0xff] }
0x11a0   :  { %3614 = vmatpush.bf16.msrb.mxu0 %v4741_v50  ;;  %3596 = vmatpush.bf16.msrb.mxu3 %v4729_v47 }
0x11a1   :  { %v3448_v20 = vsel %vm3447_vm7, %v5184_v54, %v3444_v26  ;;  %v5006_v54 = vld [vmem:[#allocation24 + $0xa8] sm:$0xff]  ;;  %v5001_v26 = vld [vmem:[#allocation24 + $0x80] sm:$0xff] }
0x11a2   :  { %v3470_v61 = vmul.f32 %v3448_v20, %v7391_v37  ;;  %3843 = vmatpush.bf16.msra.mxu1 %v5006_v54 }
0x11a4   :  { %3615 = vmatpush.bf16.msrb.mxu0 %v4733_v55  ;;  %3597 = vmatpush.bf16.msrb.mxu3 %v4721_v36  ;;  %v5016_v36 = vld [vmem:[#allocation24 + $0xf8] sm:$0xff] }
0x11a5   :  { %3858 = vmatpush.bf16.msra.mxu2 %v5016_v36 }
0x11a8   :  { %3616 = vmatpush.bf16.msrb.mxu0 %v4725_v10  ;;  %3598 = vmatpush.bf16.msrb.mxu3 %v4713_v5 }
0x11a9   :  { %3859 = vmatpush.bf16.msra.mxu2 %v5015_v41 }
0x11ac   :  { %3617 = vmatpush.bf16.msrb.mxu0 %v4717_v27  ;;  %3599 = vmatpush.bf16.msrb.mxu3 %v4705_v48 }
0x11ad   :  { %3860 = vmatpush.bf16.msra.mxu2 %v5014_v28 }
0x11b0   :  { %3618 = vmatpush.bf16.msrb.mxu0 %v4709_v33  ;;  %3600 = vmatpush.bf16.msrb.mxu3 %v4697_v43  ;;  %v5005_v43 = vld [vmem:[#allocation24 + $0xa0] sm:$0xff] }
0x11b1   :  { %3844 = vmatpush.bf16.msra.mxu1 %v5005_v43 }
0x11b4   :  { %3619 = vmatpush.bf16.msrb.mxu0 %v4701_v60  ;;  %v5011_v60 = vld [vmem:[#allocation24 + $0xd0] sm:$0xff] }
0x11b5   :  { %3845 = vmatpush.bf16.msra.mxu1 %v5004_v14 }
0x1206   :  { %v3398_v11 = vpop.xlane.xlu2 %3397 }
0x1207   :  { %v3403_v1 = vmul.f32 %v3398_v11, %v6501_v22  ;;  %v5013_v11 = vld [vmem:[#allocation24 + $0xe0] sm:$0xff] }
0x1208   :  { %3861 = vmatpush.bf16.msra.mxu2 %v5013_v11 }
0x1209   :  { %v7416_v49 = vsub.f32 %v7400_v29, %v3403_v1 }
0x120b   :  { %v3411_v30 = vmul.f32 %v7416_v49, %v7416_v49 }
0x120c   :  { %3862 = vmatpush.bf16.msra.mxu2 %v5012_v23 }
0x120d   :  { %3417 = vadd.xlane.f32.xlu1 %v3411_v30 }
0x120e   :  { %v3400_v24 = vpop.xlane.xlu1 %3399  ;;  %v3414_v34 = vpop.xlane.xlu2 %3413 }
0x120f   :  { %v3404_v46 = vmul.f32 %v3400_v24, %v6501_v22  ;;  %v3421_v12 = vmul.f32 %v3414_v34, %v6501_v22  ;;  %v4693_v34 = vld [vmem:[%s7510_s14 + $0x2] sm:$0x3] }
0x1210   :  { %3863 = vmatpush.bf16.msra.mxu2 %v5011_v60 }
0x1211   :  { %v7423_v29 = vsub.f32 %v7408_v13, %v3404_v46  ;;  %v3425_v16 = vadd.f32 1e-12, %v3421_v12  ;;  %v7427_v13 = vld [vmem:[#allocation19 + $0x1] ss:$0 sm:$0xff]  ;;  %v5010_v46 = vld [vmem:[#allocation24 + $0xc8] sm:$0xff] }
0x1212   :  { %v3477_v50 = vmul.f32 %v7427_v13, %v3470_v61 }
0x1213   :  { %5185 = vrsqrt.f32 %v3425_v16  ;;  %v3412_v19 = vmul.f32 %v7423_v29, %v7423_v29  ;;  %vm3435_vm10 = vweird.f32 %v3425_v16 }
0x1214   :  { %v3484_v3 = vadd.f32 %v7430_v53, %v3477_v50  ;;  %3864 = vmatpush.bf16.msra.mxu2 %v5010_v46 }
0x1215   :  { %3419 = vadd.xlane.f32.xlu2 %v3412_v19 }
0x1218   :  { %3865 = vmatpush.bf16.msra.mxu2 %v5009_v7 }
0x1219   :  { %v5186_v62 = vpop.eup %5185 }
0x121a   :  { %v3430_v2 = vmul.f32 %v5186_v62, %v3425_v16  ;;  %vm3436_vm9 = vweird.f32 %v5186_v62  ;;  %v7454_v16 = vperm.slane %v4693_v34, 1 }
0x121b   :  { %vm3437_vm12 = vmor %vm3435_vm10, %vm3436_vm9 }
0x121c   :  { %v3431_v9 = vmul.f32 %v5186_v62, %v3430_v2 }
0x121e   :  { %v3432_v18 = vmul.f32 0.5, %v3431_v9  ;;  %v7457_v9 = vperm.slane %v4693_v34, 0 }
0x1220   :  { %v3433_v38 = vsub.f32 1.5, %v3432_v18 }
0x1222   :  { %v3434_v31 = vmul.f32 %v5186_v62, %v3433_v38 }
0x1224   :  { %v3438_v51 = vsel %vm3437_vm12, %v5186_v62, %v3434_v31 }
0x1225   :  { %v3469_v57 = vmul.f32 %v3438_v51, %v7404_v63 }
0x1227   :  { %v3476_v39 = vmul.f32 %v7427_v13, %v3469_v57 }
0x1229   :  { %v7437_v21 = vadd.f32 %v7430_v53, %v3476_v39 }
0x122b   :  { %v3487_v47 = vpack.c.bf16 %v3484_v3, %v7437_v21 }
0x122d   :  { %3601 = vmatmul.bf16.vlgmr.msrb.gmra.mxu3 %v3487_v47  ;;  %3620 = vmatmul.bf16.vlgmr.msrb.gmra.mxu0 %v3487_v47 }
0x1280   :  { %v3418_v37 = vpop.xlane.xlu1 %3417 }
0x1281   :  { %v3423_v4 = vmul.f32 %v3418_v37, %v6501_v22 }
0x1283   :  { %v3427_v55 = vadd.f32 1e-12, %v3423_v4 }
0x1285   :  { %5187 = vrsqrt.f32 %v3427_v55  ;;  %vm3455_vm14 = vweird.f32 %v3427_v55 }
0x1288   :  { %v3420_v58 = vpop.xlane.xlu2 %3419 }
0x1289   :  { %v3424_v32 = vmul.f32 %v3420_v58, %v6501_v22 }
0x128b   :  { %v5188_v63 = vpop.eup %5187  ;;  %v3428_v44 = vadd.f32 1e-12, %v3424_v32 }
0x128c   :  { %v3450_v59 = vmul.f32 %v5188_v63, %v3427_v55  ;;  %vm3456_vm11 = vweird.f32 %v5188_v63 }
0x128d   :  { %5189 = vrsqrt.f32 %v3428_v44  ;;  %vm3457_vm13 = vmor %vm3455_vm14, %vm3456_vm11  ;;  %vm3465_vm6 = vweird.f32 %v3428_v44 }
0x128e   :  { %v3451_v6 = vmul.f32 %v5188_v63, %v3450_v59 }
0x1290   :  { %v3452_v10 = vmul.f32 0.5, %v3451_v6 }
0x1292   :  { %v3453_v35 = vsub.f32 1.5, %v3452_v10 }
0x1293   :  { %v5190_v5 = vpop.eup %5189 }
0x1294   :  { %v3454_v45 = vmul.f32 %v5188_v63, %v3453_v35  ;;  %v3460_v27 = vmul.f32 %v5190_v5, %v3428_v44  ;;  %vm3466_vm15 = vweird.f32 %v5190_v5 }
0x1295   :  { %vm3467_vm8 = vmor %vm3465_vm6, %vm3466_vm15 }
0x1296   :  { %v3461_v40 = vmul.f32 %v5190_v5, %v3460_v27  ;;  %v3458_v48 = vsel %vm3457_vm13, %v5188_v63, %v3454_v45 }
0x1297   :  { %v3471_v1 = vmul.f32 %v3458_v48, %v7416_v49 }
0x1298   :  { %v3462_v17 = vmul.f32 0.5, %v3461_v40 }
0x1299   :  { %v3478_v42 = vmul.f32 %v7427_v13, %v3471_v1 }
0x129a   :  { %v3463_v33 = vsub.f32 1.5, %v3462_v17 }
0x129b   :  { %v7447_v49 = vadd.f32 %v7430_v53, %v3478_v42 }
0x129c   :  { %v3464_v25 = vmul.f32 %v5190_v5, %v3463_v33 }
0x129e   :  { %v3468_v52 = vsel %vm3467_vm8, %v5190_v5, %v3464_v25 }
0x129f   :  { %v3472_v8 = vmul.f32 %v3468_v52, %v7423_v29  ;;  %v5003_v29 = vld [vmem:[#allocation24 + $0x90] sm:$0xff] }
0x12a0   :  { %3846 = vmatpush.bf16.msra.mxu1 %v5003_v29 }
0x12a1   :  { %v3479_v30 = vmul.f32 %v7427_v13, %v3472_v8 }
0x12a3   :  { %v3486_v24 = vadd.f32 %v7430_v53, %v3479_v30 }
0x12a4   :  { %3847 = vmatpush.bf16.msra.mxu1 %v5002_v0 }
0x12a5   :  { %v3488_v12 = vpack.c.bf16 %v3486_v24, %v7447_v49 }
0x12a7   :  { %3606 = vmatmul.bf16.gmra.mxu3 %v3488_v12  ;;  %3625 = vmatmul.bf16.gmra.mxu0 %v3488_v12 }
0x12a8   :  { %3848 = vmatpush.bf16.msra.mxu1 %v5001_v26 }
0x12aa   :  { %v3621_v19 = vpop.f32.mrf.mxu0 }
0x12ab   :  { %v3622_v62 = vadd.f32 %v3621_v19, %v7454_v16 }
0x12ad   :  { %v3640_v2 = vmul.f32 0.044715, %v3622_v62  ;;  %v3632_v45 = vmul.f32 0.5, %v3622_v62 }
0x12af   :  { %v3648_v20 = vmul.f32 %v3640_v2, %v3622_v62 }
0x12b0   :  { %v3602_v18 = vpop.f32.mrf.mxu3 }
0x12b1   :  { %v3656_v38 = vmul.f32 %v3648_v20, %v3622_v62  ;;  %v3603_v13 = vadd.f32 %v3602_v18, %v7457_v9 }
0x12b2   :  { %v3623_v61 = vpop.f32.mrf.mxu0 }
0x12b3   :  { %v3664_v31 = vadd.f32 %v3656_v38, %v3622_v62  ;;  %v3639_v51 = vmul.f32 0.044715, %v3603_v13  ;;  %v3624_v53 = vadd.f32 %v3623_v61, %v7454_v16  ;;  %v3631_v54 = vmul.f32 0.5, %v3603_v13 }
0x12b5   :  { %v3647_v50 = vmul.f32 %v3639_v51, %v3603_v13  ;;  %v3642_v57 = vmul.f32 0.044715, %v3624_v53  ;;  %v3672_v39 = vmul.f32 0.7978846, %v3664_v31  ;;  %v3634_v27 = vmul.f32 0.5, %v3624_v53 }
0x12b7   :  { %v3655_v3 = vmul.f32 %v3647_v50, %v3603_v13  ;;  %v3650_v47 = vmul.f32 %v3642_v57, %v3624_v53  ;;  %5191 = vtanh.f32 %v3672_v39 }
0x12b8   :  { %v3604_v37 = vpop.f32.mrf.mxu3 }
0x12b9   :  { %v3663_v4 = vadd.f32 %v3655_v3, %v3603_v13  ;;  %v3658_v55 = vmul.f32 %v3650_v47, %v3624_v53  ;;  %v3605_v58 = vadd.f32 %v3604_v37, %v7457_v9 }
0x12bb   :  { %v3666_v32 = vadd.f32 %v3658_v55, %v3624_v53  ;;  %v3641_v63 = vmul.f32 0.044715, %v3605_v58  ;;  %v3671_v44 = vmul.f32 0.7978846, %v3663_v4  ;;  %v3633_v1 = vmul.f32 0.5, %v3605_v58 }
0x12bd   :  { %v3674_v59 = vmul.f32 0.7978846, %v3666_v32  ;;  %v3649_v36 = vmul.f32 %v3641_v63, %v3605_v58  ;;  %v5192_v10 = vpop.eup %5191 }
0x12be   :  { %v3688_v15 = vadd.f32 1.0, %v5192_v10 }
0x12bf   :  { %5193 = vtanh.f32 %v3674_v59  ;;  %v3657_v6 = vmul.f32 %v3649_v36, %v3605_v58 }
0x12c0   :  { %5195 = vtanh.f32 %v3671_v44  ;;  %v3696_v56 = vmul.f32 %v3688_v15, %v3632_v45  ;;  %v5072_v45 = vld [vmem:[%s7512_s16 + $0x1] ss:$0 sm:$0xff] }
0x12c1   :  { %v3665_v41 = vadd.f32 %v3657_v6, %v3605_v58 }
0x12c3   :  { %v3673_v35 = vmul.f32 0.7978846, %v3665_v41 }
0x12c5   :  { %v5194_v5 = vpop.eup %5193  ;;  %5197 = vtanh.f32 %v3673_v35 }
0x12c6   :  { %v3690_v28 = vadd.f32 1.0, %v5194_v5  ;;  %v5196_v40 = vpop.eup %5195 }
0x12c7   :  { %v3687_v17 = vadd.f32 1.0, %v5196_v40 }
0x12c8   :  { %v3698_v48 = vmul.f32 %v3690_v28, %v3634_v27 }
0x12c9   :  { %v3695_v23 = vmul.f32 %v3687_v17, %v3631_v54 }
0x12ca   :  { %v3704_v11 = vpack.c.bf16 %v3698_v48, %v3696_v56 }
0x12cb   :  { %v5198_v33 = vpop.eup %5197 }
0x12cc   :  { %v3689_v25 = vadd.f32 1.0, %v5198_v33  ;;  %3866 = vmatmul.bf16.vlgmr.msra.gmra.mxu2 %v3704_v11 }
0x12ce   :  { %v3697_v52 = vmul.f32 %v3689_v25, %v3633_v1 }
0x12d0   :  { %v3703_v43 = vpack.c.bf16 %v3697_v52, %v3695_v23 }
0x12d2   :  { %3849 = vmatmul.bf16.vlgmr.msra.gmra.mxu1 %v3703_v43 }
0x1324   :  { %v3626_v8 = vpop.f32.mrf.mxu0 }
0x1325   :  { %v3627_v42 = vadd.f32 %v3626_v8, %v7454_v16 }
0x1327   :  { %v3644_v60 = vmul.f32 0.044715, %v3627_v42  ;;  %v3636_v4 = vmul.f32 0.5, %v3627_v42 }
0x1329   :  { %v3652_v30 = vmul.f32 %v3644_v60, %v3627_v42 }
0x132a   :  { %v3607_v14 = vpop.f32.mrf.mxu3 }
0x132b   :  { %v3608_v24 = vadd.f32 %v3607_v14, %v7457_v9  ;;  %v3660_v34 = vmul.f32 %v3652_v30, %v3627_v42 }
0x132c   :  { %v3628_v46 = vpop.f32.mrf.mxu0 }
0x132d   :  { %v3643_v12 = vmul.f32 0.044715, %v3608_v24  ;;  %v3629_v29 = vadd.f32 %v3628_v46, %v7454_v16  ;;  %v3668_v7 = vadd.f32 %v3660_v34, %v3627_v42  ;;  %v3635_v6 = vmul.f32 0.5, %v3608_v24  ;;  %v5024_v46 = vld [vmem:[#allocation25 + $0x38] sm:$0xff] }
0x132e   :  { %4004 = vmatpush.bf16.msra.mxu3 %v5024_v46 }
0x132f   :  { %v3651_v19 = vmul.f32 %v3643_v12, %v3608_v24  ;;  %v3646_v0 = vmul.f32 0.044715, %v3629_v29  ;;  %v3676_v26 = vmul.f32 0.7978846, %v3668_v7  ;;  %v3638_v55 = vmul.f32 0.5, %v3629_v29  ;;  %v5023_v12 = vld [vmem:[#allocation25 + $0x30] sm:$0xff] }
0x1330   :  { %v5022_v7 = vld [vmem:[#allocation25 + $0x28] sm:$0xff] }
0x1331   :  { %v3654_v62 = vmul.f32 %v3646_v0, %v3629_v29  ;;  %v3659_v2 = vmul.f32 %v3651_v19, %v3608_v24  ;;  %5199 = vtanh.f32 %v3676_v26  ;;  %v5021_v19 = vld [vmem:[#allocation25 + $0x20] sm:$0xff]  ;;  %v5019_v26 = vld [vmem:[#allocation25 + $0x10] sm:$0xff] }
0x1332   :  { %v3609_v20 = vpop.f32.mrf.mxu3  ;;  %4005 = vmatpush.bf16.msra.mxu3 %v5023_v12 }
0x1333   :  { %v3610_v18 = vadd.f32 %v3609_v20, %v7457_v9  ;;  %v3662_v38 = vmul.f32 %v3654_v62, %v3629_v29  ;;  %v3667_v13 = vadd.f32 %v3659_v2, %v3608_v24  ;;  %v5020_v62 = vld [vmem:[#allocation25 + $0x18] sm:$0xff]  ;;  %v5018_v2 = vld [vmem:[#allocation25 + $0x8] sm:$0xff] }
0x1335   :  { %v3645_v61 = vmul.f32 0.044715, %v3610_v18  ;;  %v3670_v31 = vadd.f32 %v3662_v38, %v3629_v29  ;;  %v3675_v50 = vmul.f32 0.7978846, %v3667_v13  ;;  %v3637_v10 = vmul.f32 0.5, %v3610_v18 }
0x1336   :  { %4006 = vmatpush.bf16.msra.mxu3 %v5022_v7 }
0x1337   :  { %v3653_v51 = vmul.f32 %v3645_v61, %v3610_v18  ;;  %v3678_v53 = vmul.f32 0.7978846, %v3670_v31  ;;  %v5200_v16 = vpop.eup %5199 }
0x1338   :  { %v3692_v47 = vadd.f32 1.0, %v5200_v16  ;;  %v5030_v16 = vld [vmem:[#allocation27 + $0x28] sm:$0xff] }
0x1339   :  { %5201 = vtanh.f32 %v3678_v53  ;;  %v3661_v57 = vmul.f32 %v3653_v51, %v3610_v18  ;;  %v5032_v51 = vld [vmem:[#allocation27 + $0x38] sm:$0xff] }
0x133a   :  { %5203 = vtanh.f32 %v3675_v50  ;;  %v3700_v32 = vmul.f32 %v3692_v47, %v3636_v4  ;;  %4007 = vmatpush.bf16.msra.mxu3 %v5021_v19  ;;  %4087 = vmatpush.bf16.msra.mxu0 %v5032_v51  ;;  %v5031_v50 = vld [vmem:[#allocation27 + $0x30] sm:$0xff] }
0x133b   :  { %v3669_v39 = vadd.f32 %v3661_v57, %v3610_v18  ;;  %v5017_v18 = vld [vmem:[#allocation25] sm:$0xff] }
0x133d   :  { %v3677_v3 = vmul.f32 0.7978846, %v3669_v39 }
0x133e   :  { %4008 = vmatpush.bf16.msra.mxu3 %v5020_v62  ;;  %4088 = vmatpush.bf16.msra.mxu0 %v5031_v50 }
0x133f   :  { %v5202_v37 = vpop.eup %5201  ;;  %5205 = vtanh.f32 %v3677_v3 }
0x1340   :  { %v3694_v9 = vadd.f32 1.0, %v5202_v37  ;;  %v5204_v58 = vpop.eup %5203  ;;  %v5029_v37 = vld [vmem:[#allocation27 + $0x20] sm:$0xff] }
0x1341   :  { %v3691_v59 = vadd.f32 1.0, %v5204_v58 }
0x1342   :  { %v3702_v63 = vmul.f32 %v3694_v9, %v3638_v55  ;;  %4009 = vmatpush.bf16.msra.mxu3 %v5019_v26  ;;  %4089 = vmatpush.bf16.msra.mxu0 %v5030_v16 }
0x1343   :  { %v3699_v35 = vmul.f32 %v3691_v59, %v3635_v6 }
0x1344   :  { %v3706_v44 = vpack.c.bf16 %v3702_v63, %v3700_v32 }
0x1345   :  { %v5206_v36 = vpop.eup %5205 }
0x1346   :  { %3870 = vmatmul.bf16.gmra.mxu2 %v3706_v44  ;;  %v3693_v41 = vadd.f32 1.0, %v5206_v36  ;;  %4010 = vmatpush.bf16.msra.mxu3 %v5018_v2  ;;  %v5073_v44 = vld [vmem:[%s7650_s27 + $0x1] ss:$0 sm:$0xff] }
0x1347   :  { %4090 = vmatpush.bf16.msra.mxu0 %v5029_v37 }
0x1348   :  { %v3701_v15 = vmul.f32 %v3693_v41, %v3637_v10  ;;  %v5074_v10 = vld [vmem:[%s7514_s18 + $0x1] ss:$0 sm:$0xff] }
0x134a   :  { %v3705_v5 = vpack.c.bf16 %v3701_v15, %v3699_v35  ;;  %4011 = vmatpush.bf16.msra.mxu3 %v5017_v18 }
0x134c   :  { %3853 = vmatmul.bf16.gmra.mxu1 %v3705_v5 }
0x134f   :  { %v3850_v27 = vpop.f32.mrf.mxu1  ;;  %v3867_v28 = vpop.f32.mrf.mxu2 }
0x1350   :  { %v3851_v40 = vadd.f32 %v5072_v45, %v3850_v27 }
0x1352   :  { %v3868_v56 = vadd.f32 %v3867_v28, %v3851_v40  ;;  %v5027_v40 = vld [vmem:[#allocation27 + $0x10] sm:$0xff] }
0x1354   :  { %v3875_v48 = vadd.f32 %v3868_v56, %v7437_v21  ;;  %v5026_v56 = vld [vmem:[#allocation27 + $0x8] sm:$0xff] }
0x1356   :  { %3881 = vadd.xlane.f32.xlu2 %v3875_v48 }
0x1357   :  { %v3852_v17 = vpop.f32.mrf.mxu1  ;;  %v3869_v11 = vpop.f32.mrf.mxu2 }
0x1358   :  { %v5075_v17 = vld [vmem:[%s7516_s20] ss:$0 sm:$0xff] }
0x13c9   :  { %v3854_v33 = vpop.f32.mrf.mxu1  ;;  %v3871_v54 = vpop.f32.mrf.mxu2 }
0x13ca   :  { %v3855_v1 = vadd.f32 %v5072_v45, %v3854_v33  ;;  %v3882_v25 = vpop.xlane.xlu2 %3881 }
0x13cb   :  { %v3885_v23 = vmul.f32 %v3882_v25, %v6501_v22 }
0x13cc   :  { %v3872_v52 = vadd.f32 %v3871_v54, %v3855_v1 }
0x13cd   :  { %v7471_v43 = vsub.f32 %v3875_v48, %v3885_v23  ;;  %v5025_v48 = vld [vmem:[#allocation27] sm:$0xff]  ;;  %v5076_v23 = vld [vmem:[%s7518_s22] ss:$0 sm:$0xff] }
0x13ce   :  { %v3876_v8 = vadd.f32 %v3872_v52, %v7447_v49 }
0x13cf   :  { %v3889_v42 = vmul.f32 %v7471_v43, %v7471_v43 }
0x13d0   :  { %3883 = vadd.xlane.f32.xlu1 %v3876_v8 }
0x13d1   :  { %3891 = vadd.xlane.f32.xlu2 %v3889_v42  ;;  %v3856_v21 = vpop.f32.mrf.mxu1  ;;  %v3873_v60 = vpop.f32.mrf.mxu2 }
0x1443   :  { %v3884_v30 = vpop.xlane.xlu1 %3883 }
0x1444   :  { %v3886_v14 = vmul.f32 %v3884_v30, %v6501_v22  ;;  %v3892_v29 = vpop.xlane.xlu2 %3891 }
0x1445   :  { %v3895_v49 = vmul.f32 %v3892_v29, %v6501_v22 }
0x1446   :  { %v3888_v24 = vsub.f32 %v3876_v8, %v3886_v14 }
0x1447   :  { %v3897_v0 = vadd.f32 1e-12, %v3895_v49 }
0x1448   :  { %v3890_v34 = vmul.f32 %v3888_v24, %v3888_v24 }
0x1449   :  { %5207 = vrsqrt.f32 %v3897_v0  ;;  %vm3905_vm4 = vweird.f32 %v3897_v0 }
0x144a   :  { %3893 = vadd.xlane.f32.xlu1 %v3890_v34 }
0x144f   :  { %v5208_v20 = vpop.eup %5207 }
0x1450   :  { %v3900_v38 = vmul.f32 %v5208_v20, %v3897_v0  ;;  %vm3906_vm3 = vweird.f32 %v5208_v20 }
0x1451   :  { %vm3907_vm5 = vmor %vm3905_vm4, %vm3906_vm3 }
0x1452   :  { %v3901_v31 = vmul.f32 %v5208_v20, %v3900_v38 }
0x1454   :  { %v3902_v57 = vmul.f32 0.5, %v3901_v31 }
0x1456   :  { %v3903_v39 = vsub.f32 1.5, %v3902_v57 }
0x1458   :  { %v3904_v4 = vmul.f32 %v5208_v20, %v3903_v39 }
0x145a   :  { %v3908_v58 = vsel %vm3907_vm5, %v5208_v20, %v3904_v4 }
0x145b   :  { %v3919_v59 = vmul.f32 %v3908_v58, %v7471_v43 }
0x145d   :  { %v3924_v41 = vmul.f32 %v5073_v44, %v3919_v59 }
0x145f   :  { %v3929_v5 = vadd.f32 %v5074_v10, %v3924_v41 }
0x14bd   :  { %v3894_v13 = vpop.xlane.xlu1 %3893 }
0x14be   :  { %v3896_v61 = vmul.f32 %v3894_v13, %v6501_v22  ;;  %v5028_v22 = vld [vmem:[#allocation27 + $0x18] sm:$0xff] }
0x14bf   :  { %4091 = vmatpush.bf16.msra.mxu0 %v5028_v22 }
0x14c0   :  { %v3898_v53 = vadd.f32 1e-12, %v3896_v61 }
0x14c2   :  { %5209 = vrsqrt.f32 %v3898_v53  ;;  %vm3915_vm2 = vweird.f32 %v3898_v53 }
0x14c3   :  { %4092 = vmatpush.bf16.msra.mxu0 %v5027_v40 }
0x14c7   :  { %4093 = vmatpush.bf16.msra.mxu0 %v5026_v56 }
0x14c8   :  { %v5210_v3 = vpop.eup %5209 }
0x14c9   :  { %v3910_v47 = vmul.f32 %v5210_v3, %v3898_v53  ;;  %vm3916_vm1 = vweird.f32 %v5210_v3 }
0x14ca   :  { %vm3917_vm7 = vmor %vm3915_vm2, %vm3916_vm1 }
0x14cb   :  { %v3911_v55 = vmul.f32 %v5210_v3, %v3910_v47  ;;  %4094 = vmatpush.bf16.msra.mxu0 %v5025_v48 }
0x14cd   :  { %v3912_v9 = vmul.f32 0.5, %v3911_v55 }
0x14cf   :  { %v3913_v32 = vsub.f32 1.5, %v3912_v9 }
0x14d1   :  { %v3914_v63 = vmul.f32 %v5210_v3, %v3913_v32 }
0x14d3   :  { %v3918_v36 = vsel %vm3917_vm7, %v5210_v3, %v3914_v63 }
0x14d4   :  { %v3920_v6 = vmul.f32 %v3918_v36, %v3888_v24 }
0x14d6   :  { %v3925_v35 = vmul.f32 %v5073_v44, %v3920_v6 }
0x14d8   :  { %v3930_v15 = vadd.f32 %v5074_v10, %v3925_v35 }
0x14da   :  { %v3932_v45 = vrot.slane %v3930_v15, 7 }
0x14dc   :  { %v3934_v27 = vsel %vm620_vm0, %v3929_v5, %v3932_v45 }
0x14dd   :  { %v3935_v28 = vpack.c.bf16 %v3934_v27, %v3934_v27 }
0x14df   :  { %4012 = vmatmul.bf16.vlgmr.msra.gmra.mxu3 %v3935_v28 }
0x1562   :  { %v4013_v11 = vpop.f32.mrf.mxu3 }
0x1563   :  { %v4014_v33 = vadd.f32 %v5075_v17, %v4013_v11 }
0x1565   :  { %5211 = vtanh.f32 %v4014_v33 }
0x156a   :  { %v4015_v54 = vpop.f32.mrf.mxu3 }
0x156b   :  { %v5212_v1 = vpop.eup %5211 }
0x156c   :  { %v4018_v25 = vpack.c.bf16 %v5212_v1, %v5212_v1 }
0x156e   :  { %4095 = vmatmul.bf16.vlgmr.msra.gmra.mxu0 %v4018_v25 }
0x15eb   :  { %v4096_v52 = vpop.f32.mrf.mxu0 }
0x15ec   :  { %v4097_v43 = vadd.f32 %v5076_v23, %v4096_v52 }
0x15ee   :  { %4100 = vst [vmem:[#allocation28] sm:$0x3] %v4097_v43 }
0x15ef   :  { %4111 = dma.vmem_to_hbm [thread:$0]  %s4107_s26, 32, %s4109_s11, [#allocation6]  }
0x15f3   :  { %v4098_v8 = vpop.f32.mrf.mxu0 }
0x15f4   :  { %5627 = dma.done.wait [#allocation6], 32  }
0x15f5   :  { %5628 = vsyncadd [#allocation6], 4294967264 }
0x15f6   :  { %4116 = vsyncpa [#allocation5], 1 }
0x15f7   :  { %4117 = vsyncpa [#allocation8], 1 }
0x15f8   :  { %4118 = vsyncpa [#allocation11], 1 }
0x15f9   :  { %4119 = vsyncpa [#allocation14], 1 }
0x15fa   :  { %4120 = vsyncpa [#allocation17], 1 }
0x15fb   :  { %4121 = vsyncpa [#allocation20], 1 }
0x15fc   :  { %4122 = vsyncpa [#allocation23], 1 }
0x15fd   :  { %4123 = vsyncpa [#allocation26], 1 }
0x15fe   :  { %4124 = vsyncpa [#allocation6], 1 }

</bundles_post_ra>
